<compile_context>
chip_gen: v6e
topology: v6e:2x2x1
jax: 0.10.0
libtpu: 0.0.40
codegen_flags: <defaults>
</compile_context>

<pallas_src>
import math
import functools
import numpy as np
import jax
import jax.numpy as jnp
from jax.experimental import pallas as pl
from jax.experimental.pallas import tpu as pltpu


# ----------------------------- fused kernel --------------------------------

def _fused_st_transformer_kernel(
    src_ref, emb_w_ref, pe_ref, mask_ref, qkv_w_ref, fc_w_ref,
    bn_scale_ref, bn_shift_ref, out_w_ref, out_b_ref, o_ref,
    *, num_joints, embedding_dim, num_layers):
    J = num_joints
    A = embedding_dim                  # num_heads = 1 -> attention_dim == E
    C = J * A
    L = num_layers
    Bb, T, Din = src_ref.shape         # Bb = batch rows of this grid block
    N = Bb * T
    G = J * Bb                         # temporal-attention batch (joint, batch)

    src2 = src_ref[...].reshape(N, Din)

    # ---- joint embedding (block-diag matmul) + (pe + emb_bias) folded --------
    x = jnp.dot(src2, emb_w_ref[...], preferred_element_type=jnp.float32)
    x = (x.reshape(Bb, T, C) + pe_ref[...][None]).reshape(N, C)
    # TODO(synk): embedding / attention dropout are identity (eval mode).

    # hoisted once; reused by every layer (JAX does not CSE broadcast_in_dim)
    mask_g = jnp.broadcast_to(mask_ref[...][None], (G, T, T))

    for l in range(L):                 # static unroll; use lax.fori_loop if L grows
        # one fused MXU matmul for ALL temporal+spatial q/k/v of this layer
        qkv = jnp.dot(x, qkv_w_ref[l], preferred_element_type=jnp.float32)  # (N, 6C)

        # ---------- temporal attention: ONE batched softmax over (joint, batch)
        def gather_g(base):
            # column blocks (N, A) -> (J*Bb, T, A), batch order (j, b, t)
            parts = [qkv[:, base + j * A: base + (j + 1) * A] for j in range(J)]
            return jnp.concatenate(parts, axis=0).reshape(G, T, A)

        tq = gather_g(0 * C)           # q columns pre-scaled by 1/sqrt(A) host-side
        tk = gather_g(1 * C)
        tv = gather_g(2 * C)
        s = jnp.einsum('gta,gua->gtu', tq, tk,
                       preferred_element_type=jnp.float32) + mask_g        # (G,T,T)
        m = jnp.max(s, axis=-1, keepdims=True)
        p = jnp.exp(s - m)
        d = jnp.sum(p, axis=-1, keepdims=True)
        av = jnp.einsum('gtu,gua->gta', p, tv,
                        preferred_element_type=jnp.float32)                # (G,T,A)
        av = av * pl.reciprocal(d, approx=True)   # EUP; denom >= 1 (diag unmasked)
        av = av.reshape(J, N, A)
        tattn = jnp.concatenate([av[j] for j in range(J)], axis=-1)        # (N, C)

        # ---------- spatial attention: ONE batched softmax over joints per row
        sq = jnp.stack([qkv[:, 3 * C + j * A: 3 * C + (j + 1) * A]
                        for j in range(J)], axis=1)                        # (N,J,A)
        sk = jnp.stack([qkv[:, 4 * C + j * A: 4 * C + (j + 1) * A]
                        for j in range(J)], axis=1)
        sv = jnp.stack([qkv[:, 5 * C + j * A: 5 * C + (j + 1) * A]
                        for j in range(J)], axis=1)
        ss = jnp.einsum('nja,nka->njk', sq, sk,
                        preferred_element_type=jnp.float32)
        ms = jnp.max(ss, axis=-1, keepdims=True)
        ps = jnp.exp(ss - ms)
        ds = jnp.sum(ps, axis=-1, keepdims=True)
        o_s = jnp.einsum('njk,nka->nja', ps, sv,
                         preferred_element_type=jnp.float32)
        o_s = o_s * pl.reciprocal(ds, approx=True)                          # EUP
        sattn = jnp.concatenate([o_s[:, j, :] for j in range(J)], axis=-1)  # (N,C)

        # ---------- fused residual + eval-mode BatchNorm epilogue -------------
        # attn = (tattn+x)*s0+sh0 + (sattn+x)*s1+sh1, with (s0+s1) and (sh0+sh1)
        # pre-summed host-side.
        attn = (tattn * bn_scale_ref[l, 0] + sattn * bn_scale_ref[l, 1]
                + x * bn_scale_ref[l, 2] + bn_shift_ref[l, 0])
        fc = jnp.dot(attn, fc_w_ref[l], preferred_element_type=jnp.float32)
        # fc bias folded into bn_shift_ref[l, 1] host-side
        x = (fc + attn) * bn_scale_ref[l, 3] + bn_shift_ref[l, 1]

    # ---- output projection + residual connection to the raw input ----------
    out = jnp.dot(x, out_w_ref[...], preferred_element_type=jnp.float32)
    o_ref[...] = out + out_b_ref[...] + src2


# ----------------------------- wrapper --------------------------------------

def _pick_batch_block(B, T, max_rows=256):
    """Largest divisor of B whose row count (bt*T) stays modest."""
    if B * T <= max_rows:
        return B
    cap = max(1, max_rows // T)
    for d in range(min(cap, B), 0, -1):
        if B % d == 0:
            return d
    return 1


def st_transformer_forward(src, kp, *, batch_block=None):
    B, T, Din = src.shape
    J, E, L = kp['num_joints'], kp['embedding_dim'], kp['num_layers']
    C = J * E
    bt = batch_block if batch_block is not None else _pick_batch_block(B, T)
    assert B % bt == 0
    grid = (B // bt,)

    kernel = functools.partial(
        _fused_st_transformer_kernel,
        num_joints=J, embedding_dim=E, num_layers=L)

    # Weights use constant index_maps (block 0) -> DMA'd into VMEM once and kept
    # resident across the whole batch grid. At the current sizes (<1 MiB of
    # weights) this fits every generation; if C / L are scaled up, re-derive the
    # VMEM budget (v7x: 64 MiB physical / 32 MiB default scoped) and stream
    # per-layer weights instead.
    out2 = pl.pallas_call(
        kernel,
        grid=grid,
        in_specs=[
            pl.BlockSpec((bt, T, Din), lambda i: (i, 0, 0)),        # src (row-tiled)
            pl.BlockSpec((Din, C), lambda i: (0, 0)),               # emb_w
            pl.BlockSpec((T, C), lambda i: (0, 0)),                 # pe + emb_b
            pl.BlockSpec((T, T), lambda i: (0, 0)),                 # causal mask
            pl.BlockSpec((L, C, 6 * C), lambda i: (0, 0, 0)),       # fused qkv weights
            pl.BlockSpec((L, C, C), lambda i: (0, 0, 0)),           # fc weights
            pl.BlockSpec((L, 4, 1, C), lambda i: (0, 0, 0, 0)),     # BN scales (folded)
            pl.BlockSpec((L, 2, 1, C), lambda i: (0, 0, 0, 0)),     # BN shifts (folded)
            pl.BlockSpec((C, Din), lambda i: (0, 0)),               # out_w
            pl.BlockSpec((1, Din), lambda i: (0, 0)),               # out_b
        ],
        out_specs=pl.BlockSpec((bt * T, Din), lambda i: (i, 0)),
        out_shape=jax.ShapeDtypeStruct((B * T, Din), jnp.float32),
        compiler_params=pltpu.CompilerParams(
            dimension_semantics=("parallel",)),  # shards batch blocks over v7x's 2 TCs
    )(src, kp['emb_w'], kp['pe_b'], kp['mask'], kp['qkv_w'], kp['fc_w'],
      kp['bn_scale'], kp['bn_shift'], kp['out_w'], kp['out_b'])
    return out2.reshape(B, T, Din)   # metadata-only reshape in the wrapper


# ----------------------------- parameters -----------------------------------

def init_params(key, num_joints, joint_dim, seq_len, embedding_dim, attention_layers):
    """Module-faithful parameters (per-joint Linears folded into block-diag)."""
    J, E, T, L = num_joints, embedding_dim, seq_len, attention_layers
    A = E
    C = J * E
    D = J * joint_dim
    keys = iter(jax.random.split(key, 1024))

    def nrm(shape, scale=0.1):
        return scale * jax.random.normal(next(keys), shape, dtype=jnp.float32)

    def bdiag(mats):
        return jax.scipy.linalg.block_diag(*mats)

    emb_w = bdiag([nrm((joint_dim, E)) for _ in range(J)])
    emb_b = nrm((1, C))

    # sinusoidal positional encoding (identical buffer per joint) tiled over joints
    pos = np.arange(T, dtype=np.float32)[:, None]
    div = np.exp(np.arange(0, E, 2, dtype=np.float32) * (-np.log(10000.0) / E))
    pe = np.zeros((T, E), dtype=np.float32)
    pe[:, 0::2] = np.sin(pos * div)
    pe[:, 1::2] = np.cos(pos * div)
    pe_tiled = jnp.asarray(np.tile(pe, (1, J)))                      # (T, C)

    # additive causal mask, finite -1e9 instead of -inf
    row = np.arange(T)[:, None]
    col = np.arange(T)[None, :]
    mask = jnp.asarray(np.where(col <= row, 0.0, -1e9).astype(np.float32))

    eps = 1e-5
    t_q, t_k, t_v, s_q, s_k, s_v = [], [], [], [], [], []
    fc_w, fc_b, bn_scale, bn_shift = [], [], [], []
    for _ in range(L):
        t_q.append(bdiag([nrm((E, A)) for _ in range(J)]))
        t_k.append(bdiag([nrm((E, A)) for _ in range(J)]))
        t_v.append(bdiag([nrm((E, A)) for _ in range(J)]))
        s_q.append(bdiag([nrm((E, A)) for _ in range(J)]))
        wk, wv = nrm((E, A)), nrm((E, A))
        s_k.append(bdiag([wk] * J))         # spatial k shared across joints
        s_v.append(bdiag([wv] * J))         # spatial v shared across joints
        fc_w.append(nrm((C, C)))
        fc_b.append(nrm((1, C)))
        # eval-mode BatchNorm1d folded to per-channel scale/shift.
        # TODO(synk): train-mode batch statistics are not reproduced.
        sc, sh = [], []
        for _ in range(3):
            weight = 1.0 + nrm((1, C))
            bias = nrm((1, C))
            rmean = nrm((1, C))
            rvar = 1.0 + jnp.abs(nrm((1, C)))
            scale = weight / jnp.sqrt(rvar + eps)
            shift = bias - rmean * scale
            sc.append(scale)
            sh.append(shift)
        bn_scale.append(jnp.stack(sc))
        bn_shift.append(jnp.stack(sh))

    out_w = nrm((C, D))
    out_b = nrm((1, D))

    return dict(
        num_joints=J, embedding_dim=E, num_layers=L,
        emb_w=emb_w, emb_b=emb_b, pe=pe_tiled, mask=mask,
        t_q=jnp.stack(t_q), t_k=jnp.stack(t_k), t_v=jnp.stack(t_v),
        s_q=jnp.stack(s_q), s_k=jnp.stack(s_k), s_v=jnp.stack(s_v),
        fc_w=jnp.stack(fc_w), fc_b=jnp.stack(fc_b),
        bn_scale=jnp.stack(bn_scale), bn_shift=jnp.stack(bn_shift),
        out_w=out_w, out_b=out_b)


def fold_kernel_params(p):
    """Host-side constant folding of module params into kernel operands."""
    J, E, L = p['num_joints'], p['embedding_dim'], p['num_layers']
    A = E
    inv_sqrt_a = 1.0 / math.sqrt(A)
    # [t_q | t_k | t_v | s_q | s_k | s_v], q blocks pre-scaled by 1/sqrt(A)
    qkv_w = jnp.concatenate(
        [p['t_q'] * inv_sqrt_a, p['t_k'], p['t_v'],
         p['s_q'] * inv_sqrt_a, p['s_k'], p['s_v']], axis=-1)        # (L, C, 6C)
    pe_b = p['pe'] + p['emb_b']                                      # (T, C)
    s0, s1, s2 = p['bn_scale'][:, 0], p['bn_scale'][:, 1], p['bn_scale'][:, 2]
    sh0, sh1, sh2 = p['bn_shift'][:, 0], p['bn_shift'][:, 1], p['bn_shift'][:, 2]
    bn_scale = jnp.stack([s0, s1, s0 + s1, s2], axis=1)              # (L, 4, 1, C)
    bn_shift = jnp.stack([sh0 + sh1, p['fc_b'] * s2 + sh2], axis=1)  # (L, 2, 1, C)
    return dict(
        num_joints=J, embedding_dim=E, num_layers=L,
        emb_w=p['emb_w'], pe_b=pe_b, mask=p['mask'],
        qkv_w=qkv_w, fc_w=p['fc_w'],
        bn_scale=bn_scale, bn_shift=bn_shift,
        out_w=p['out_w'], out_b=p['out_b'])


# ----------------------------- pure-JAX reference ---------------------------

def st_transformer_reference(src, params):
    B, T, Din = src.shape
    J, E, L = params['num_joints'], params['embedding_dim'], params['num_layers']
    A = E
    C = J * E
    N = B * T
    inv = 1.0 / math.sqrt(A)
    x = src.reshape(N, Din) @ params['emb_w'] + params['emb_b']
    x = (x.reshape(B, T, C) + params['pe'][None]).reshape(N, C)
    mask = params['mask']
    for l in range(L):
        q = (x @ params['t_q'][l]).reshape(B, T, J, A)
        k = (x @ params['t_k'][l]).reshape(B, T, J, A)
        v = (x @ params['t_v'][l]).reshape(B, T, J, A)
        s = jnp.einsum('btja,buja->bjtu', q, k) * inv + mask[None, None]
        p = jax.nn.softmax(s, axis=-1)
        tattn = jnp.einsum('bjtu,buja->btja', p, v).reshape(N, C)

        qs = (x @ params['s_q'][l]).reshape(N, J, A)
        ks = (x @ params['s_k'][l]).reshape(N, J, A)
        vs = (x @ params['s_v'][l]).reshape(N, J, A)
        ss = jnp.einsum('nja,nka->njk', qs, ks) * inv
        ps = jax.nn.softmax(ss, axis=-1)
        sattn = jnp.einsum('njk,nka->nja', ps, vs).reshape(N, C)

        t_out = (tattn + x) * params['bn_scale'][l, 0] + params['bn_shift'][l, 0]
        s_out = (sattn + x) * params['bn_scale'][l, 1] + params['bn_shift'][l, 1]
        attn = t_out + s_out
        fc = attn @ params['fc_w'][l] + params['fc_b'][l]
        x = (fc + attn) * params['bn_scale'][l, 2] + params['bn_shift'][l, 2]
    out = x @ params['out_w'] + params['out_b'] + src.reshape(N, Din)
    return out.reshape(B, T, Din)


# ----------------------------- main ------------------------------------------

if __name__ == "__main__":
    B, T = 2, 8
    num_joints, joint_dim, embedding_dim = 4, 4, 16
    input_dim = num_joints * joint_dim            # = 16
    attention_layers = 2

    key = jax.random.PRNGKey(0)
    kx, kp = jax.random.split(key)
    src = jax.random.normal(kx, (B, T, input_dim), dtype=jnp.float32)
    params = init_params(kp, num_joints, joint_dim, T, embedding_dim,
                         attention_layers)
    kparams = fold_kernel_params(params)

    fwd = jax.jit(lambda s: st_transformer_forward(s, kparams))
    out = fwd(src)
    jax.block_until_ready(out)

    ref = st_transformer_reference(src, params)
    assert out.shape == (B, T, input_dim)
    assert bool(jnp.all(jnp.isfinite(out)))
    err = float(jnp.max(jnp.abs(out - ref)))
    assert err < 5e-2, f"mismatch vs pure-JAX reference: {err}"
    print("KERNEL_OK")
</pallas_src>

<mosaic_0001>
module attributes {stable_mosaic.version = 11 : i64} {
  func.func @_fused_st_transformer_kernel(%arg0: i32, %arg1: memref<2x8x16xf32, #tpu.memory_space<vmem>>, %arg2: memref<16x64xf32, #tpu.memory_space<vmem>>, %arg3: memref<8x64xf32, #tpu.memory_space<vmem>>, %arg4: memref<8x8xf32, #tpu.memory_space<vmem>>, %arg5: memref<2x64x384xf32, #tpu.memory_space<vmem>>, %arg6: memref<2x64x64xf32, #tpu.memory_space<vmem>>, %arg7: memref<2x4x1x64xf32, #tpu.memory_space<vmem>>, %arg8: memref<2x2x1x64xf32, #tpu.memory_space<vmem>>, %arg9: memref<64x16xf32, #tpu.memory_space<vmem>>, %arg10: memref<1x16xf32, #tpu.memory_space<vmem>>, %arg11: memref<16x16xf32, #tpu.memory_space<vmem>>) attributes {dimension_semantics = [#tpu.dimension_semantics<parallel>], iteration_bounds = array<i64: 1>, scalar_prefetch = 0 : i64, scratch_operands = 0 : i64, tpu.core_type = #tpu.core_type<tc>, window_params = [{transform_indices = @transform_0, window_bounds = array<i64: 2, 8, 16>}, {pipeline_mode = #tpu.pipeline_mode<synchronous>, transform_indices = @transform_1, window_bounds = array<i64: 16, 64>}, {pipeline_mode = #tpu.pipeline_mode<synchronous>, transform_indices = @transform_2, window_bounds = array<i64: 8, 64>}, {pipeline_mode = #tpu.pipeline_mode<synchronous>, transform_indices = @transform_3, window_bounds = array<i64: 8, 8>}, {pipeline_mode = #tpu.pipeline_mode<synchronous>, transform_indices = @transform_4, window_bounds = array<i64: 2, 64, 384>}, {pipeline_mode = #tpu.pipeline_mode<synchronous>, transform_indices = @transform_5, window_bounds = array<i64: 2, 64, 64>}, {pipeline_mode = #tpu.pipeline_mode<synchronous>, transform_indices = @transform_6, window_bounds = array<i64: 2, 4, 1, 64>}, {pipeline_mode = #tpu.pipeline_mode<synchronous>, transform_indices = @transform_7, window_bounds = array<i64: 2, 2, 1, 64>}, {pipeline_mode = #tpu.pipeline_mode<synchronous>, transform_indices = @transform_8, window_bounds = array<i64: 64, 16>}, {pipeline_mode = #tpu.pipeline_mode<synchronous>, transform_indices = @transform_9, window_bounds = array<i64: 1, 16>}, {transform_indices = @transform_10, window_bounds = array<i64: 16, 16>}]} {
    %c0 = arith.constant 0 : index
    %c0_0 = arith.constant 0 : index
    %c0_1 = arith.constant 0 : index
    %0 = vector.load %arg1[%c0, %c0_0, %c0_1] : memref<2x8x16xf32, #tpu.memory_space<vmem>>, vector<2x8x16xf32>
    %1 = vector.shape_cast %0 : vector<2x8x16xf32> to vector<16x16xf32>
    %c0_2 = arith.constant 0 : index
    %c0_3 = arith.constant 0 : index
    %2 = vector.load %arg2[%c0_2, %c0_3] : memref<16x64xf32, #tpu.memory_space<vmem>>, vector<16x64xf32>
    %cst = arith.constant dense<0.000000e+00> : vector<16x64xf32>
    %3 = tpu.matmul %1, %2, %cst {dimension_numbers = #tpu.dot_dimension_numbers<[1], [0], [0], [1], [0, 0, 1, 1], [], []>} : vector<16x16xf32>, vector<16x64xf32>, vector<16x64xf32> -> vector<16x64xf32>
    %4 = vector.shape_cast %3 : vector<16x64xf32> to vector<2x8x64xf32>
    %c0_4 = arith.constant 0 : index
    %c0_5 = arith.constant 0 : index
    %5 = vector.load %arg3[%c0_4, %c0_5] : memref<8x64xf32, #tpu.memory_space<vmem>>, vector<8x64xf32>
    %6 = vector.shape_cast %5 : vector<8x64xf32> to vector<1x8x64xf32>
    %7 = vector.broadcast %6 : vector<1x8x64xf32> to vector<2x8x64xf32>
    %8 = arith.addf %4, %7 : vector<2x8x64xf32>
    %9 = vector.shape_cast %8 : vector<2x8x64xf32> to vector<16x64xf32>
    %c0_6 = arith.constant 0 : index
    %c0_7 = arith.constant 0 : index
    %10 = vector.load %arg4[%c0_6, %c0_7] : memref<8x8xf32, #tpu.memory_space<vmem>>, vector<8x8xf32>
    %11 = vector.shape_cast %10 : vector<8x8xf32> to vector<1x8x8xf32>
    %12 = vector.shape_cast %11 : vector<1x8x8xf32> to vector<1x8x8xf32>
    %13 = vector.broadcast %12 : vector<1x8x8xf32> to vector<8x8x8xf32>
    %c0_8 = arith.constant 0 : index
    %c0_9 = arith.constant 0 : index
    %c0_10 = arith.constant 0 : index
    %14 = vector.load %arg5[%c0_8, %c0_9, %c0_10] : memref<2x64x384xf32, #tpu.memory_space<vmem>>, vector<1x64x384xf32>
    %15 = vector.shape_cast %14 : vector<1x64x384xf32> to vector<64x384xf32>
    %cst_11 = arith.constant dense<0.000000e+00> : vector<16x384xf32>
    %16 = tpu.matmul %9, %15, %cst_11 {dimension_numbers = #tpu.dot_dimension_numbers<[1], [0], [0], [1], [0, 0, 1, 1], [], []>} : vector<16x64xf32>, vector<64x384xf32>, vector<16x384xf32> -> vector<16x384xf32>
    %17 = vector.extract_strided_slice %16 {offsets = [0, 0], sizes = [16, 16], strides = [1, 1]} : vector<16x384xf32> to vector<16x16xf32>
    %18 = vector.extract_strided_slice %16 {offsets = [0, 16], sizes = [16, 16], strides = [1, 1]} : vector<16x384xf32> to vector<16x16xf32>
    %19 = vector.extract_strided_slice %16 {offsets = [0, 32], sizes = [16, 16], strides = [1, 1]} : vector<16x384xf32> to vector<16x16xf32>
    %20 = vector.extract_strided_slice %16 {offsets = [0, 48], sizes = [16, 16], strides = [1, 1]} : vector<16x384xf32> to vector<16x16xf32>
    %21 = tpu.concatenate %17, %18, %19, %20 in 0 : vector<16x16xf32>, vector<16x16xf32>, vector<16x16xf32>, vector<16x16xf32> -> vector<64x16xf32>
    %22 = vector.shape_cast %21 : vector<64x16xf32> to vector<8x8x16xf32>
    %23 = vector.extract_strided_slice %16 {offsets = [0, 64], sizes = [16, 16], strides = [1, 1]} : vector<16x384xf32> to vector<16x16xf32>
    %24 = vector.extract_strided_slice %16 {offsets = [0, 80], sizes = [16, 16], strides = [1, 1]} : vector<16x384xf32> to vector<16x16xf32>
    %25 = vector.extract_strided_slice %16 {offsets = [0, 96], sizes = [16, 16], strides = [1, 1]} : vector<16x384xf32> to vector<16x16xf32>
    %26 = vector.extract_strided_slice %16 {offsets = [0, 112], sizes = [16, 16], strides = [1, 1]} : vector<16x384xf32> to vector<16x16xf32>
    %27 = tpu.concatenate %23, %24, %25, %26 in 0 : vector<16x16xf32>, vector<16x16xf32>, vector<16x16xf32>, vector<16x16xf32> -> vector<64x16xf32>
    %28 = vector.shape_cast %27 : vector<64x16xf32> to vector<8x8x16xf32>
    %29 = vector.extract_strided_slice %16 {offsets = [0, 128], sizes = [16, 16], strides = [1, 1]} : vector<16x384xf32> to vector<16x16xf32>
    %30 = vector.extract_strided_slice %16 {offsets = [0, 144], sizes = [16, 16], strides = [1, 1]} : vector<16x384xf32> to vector<16x16xf32>
    %31 = vector.extract_strided_slice %16 {offsets = [0, 160], sizes = [16, 16], strides = [1, 1]} : vector<16x384xf32> to vector<16x16xf32>
    %32 = vector.extract_strided_slice %16 {offsets = [0, 176], sizes = [16, 16], strides = [1, 1]} : vector<16x384xf32> to vector<16x16xf32>
    %33 = tpu.concatenate %29, %30, %31, %32 in 0 : vector<16x16xf32>, vector<16x16xf32>, vector<16x16xf32>, vector<16x16xf32> -> vector<64x16xf32>
    %34 = vector.shape_cast %33 : vector<64x16xf32> to vector<8x8x16xf32>
    "tpu.trace_start"() <{level = 10 : i32, message = "gta,gua->gtu"}> : () -> ()
    %cst_12 = arith.constant dense<0.000000e+00> : vector<8x8x8xf32>
    %35 = tpu.matmul %22, %28, %cst_12 {dimension_numbers = #tpu.dot_dimension_numbers<[2], [2], [1], [1], [0, 0, 0, 1, 1, 1], [0], [0]>} : vector<8x8x16xf32>, vector<8x8x16xf32>, vector<8x8x8xf32> -> vector<8x8x8xf32>
    "tpu.trace_stop"() : () -> ()
    %36 = arith.addf %35, %13 : vector<8x8x8xf32>
    %cst_13 = arith.constant dense<0xFF800000> : vector<8x8xf32>
    %37 = vector.multi_reduction <maximumf>, %36, %cst_13 [2] : vector<8x8x8xf32> to vector<8x8xf32>
    %38 = vector.shape_cast %37 : vector<8x8xf32> to vector<8x8x1xf32>
    %39 = vector.broadcast %38 : vector<8x8x1xf32> to vector<8x8x8xf32>
    %40 = arith.subf %36, %39 : vector<8x8x8xf32>
    %41 = math.exp %40 : vector<8x8x8xf32>
    %cst_14 = arith.constant dense<0.000000e+00> : vector<8x8xf32>
    %42 = vector.multi_reduction <add>, %41, %cst_14 [2] : vector<8x8x8xf32> to vector<8x8xf32>
    %43 = vector.shape_cast %42 : vector<8x8xf32> to vector<8x8x1xf32>
    "tpu.trace_start"() <{level = 10 : i32, message = "gtu,gua->gta"}> : () -> ()
    %cst_15 = arith.constant dense<0.000000e+00> : vector<8x8x16xf32>
    %44 = tpu.matmul %41, %34, %cst_15 {dimension_numbers = #tpu.dot_dimension_numbers<[2], [1], [1], [2], [0, 0, 0, 1, 1, 2], [0], [0]>} : vector<8x8x8xf32>, vector<8x8x16xf32>, vector<8x8x16xf32> -> vector<8x8x16xf32>
    "tpu.trace_stop"() : () -> ()
    %45 = tpu.reciprocal %43 {approx = true} : vector<8x8x1xf32> -> vector<8x8x1xf32>
    %46 = vector.broadcast %45 : vector<8x8x1xf32> to vector<8x8x16xf32>
    %47 = arith.mulf %44, %46 : vector<8x8x16xf32>
    %48 = vector.shape_cast %47 : vector<8x8x16xf32> to vector<4x16x16xf32>
    %49 = vector.extract_strided_slice %48 {offsets = [0, 0, 0], sizes = [1, 16, 16], strides = [1, 1, 1]} : vector<4x16x16xf32> to vector<1x16x16xf32>
    %50 = vector.shape_cast %49 : vector<1x16x16xf32> to vector<16x16xf32>
    %51 = vector.extract_strided_slice %48 {offsets = [1, 0, 0], sizes = [1, 16, 16], strides = [1, 1, 1]} : vector<4x16x16xf32> to vector<1x16x16xf32>
    %52 = vector.shape_cast %51 : vector<1x16x16xf32> to vector<16x16xf32>
    %53 = vector.extract_strided_slice %48 {offsets = [2, 0, 0], sizes = [1, 16, 16], strides = [1, 1, 1]} : vector<4x16x16xf32> to vector<1x16x16xf32>
    %54 = vector.shape_cast %53 : vector<1x16x16xf32> to vector<16x16xf32>
    %55 = vector.extract_strided_slice %48 {offsets = [3, 0, 0], sizes = [1, 16, 16], strides = [1, 1, 1]} : vector<4x16x16xf32> to vector<1x16x16xf32>
    %56 = vector.shape_cast %55 : vector<1x16x16xf32> to vector<16x16xf32>
    %57 = tpu.concatenate %50, %52, %54, %56 in 1 : vector<16x16xf32>, vector<16x16xf32>, vector<16x16xf32>, vector<16x16xf32> -> vector<16x64xf32>
    %58 = vector.extract_strided_slice %16 {offsets = [0, 192], sizes = [16, 16], strides = [1, 1]} : vector<16x384xf32> to vector<16x16xf32>
    %59 = vector.extract_strided_slice %16 {offsets = [0, 208], sizes = [16, 16], strides = [1, 1]} : vector<16x384xf32> to vector<16x16xf32>
    %60 = vector.extract_strided_slice %16 {offsets = [0, 224], sizes = [16, 16], strides = [1, 1]} : vector<16x384xf32> to vector<16x16xf32>
    %61 = vector.extract_strided_slice %16 {offsets = [0, 240], sizes = [16, 16], strides = [1, 1]} : vector<16x384xf32> to vector<16x16xf32>
    %62 = vector.shape_cast %58 : vector<16x16xf32> to vector<16x1x16xf32>
    %63 = vector.shape_cast %59 : vector<16x16xf32> to vector<16x1x16xf32>
    %64 = vector.shape_cast %60 : vector<16x16xf32> to vector<16x1x16xf32>
    %65 = vector.shape_cast %61 : vector<16x16xf32> to vector<16x1x16xf32>
    %66 = tpu.concatenate %62, %63, %64, %65 in 1 : vector<16x1x16xf32>, vector<16x1x16xf32>, vector<16x1x16xf32>, vector<16x1x16xf32> -> vector<16x4x16xf32>
    %67 = vector.extract_strided_slice %16 {offsets = [0, 256], sizes = [16, 16], strides = [1, 1]} : vector<16x384xf32> to vector<16x16xf32>
    %68 = vector.extract_strided_slice %16 {offsets = [0, 272], sizes = [16, 16], strides = [1, 1]} : vector<16x384xf32> to vector<16x16xf32>
    %69 = vector.extract_strided_slice %16 {offsets = [0, 288], sizes = [16, 16], strides = [1, 1]} : vector<16x384xf32> to vector<16x16xf32>
    %70 = vector.extract_strided_slice %16 {offsets = [0, 304], sizes = [16, 16], strides = [1, 1]} : vector<16x384xf32> to vector<16x16xf32>
    %71 = vector.shape_cast %67 : vector<16x16xf32> to vector<16x1x16xf32>
    %72 = vector.shape_cast %68 : vector<16x16xf32> to vector<16x1x16xf32>
    %73 = vector.shape_cast %69 : vector<16x16xf32> to vector<16x1x16xf32>
    %74 = vector.shape_cast %70 : vector<16x16xf32> to vector<16x1x16xf32>
    %75 = tpu.concatenate %71, %72, %73, %74 in 1 : vector<16x1x16xf32>, vector<16x1x16xf32>, vector<16x1x16xf32>, vector<16x1x16xf32> -> vector<16x4x16xf32>
    %76 = vector.extract_strided_slice %16 {offsets = [0, 320], sizes = [16, 16], strides = [1, 1]} : vector<16x384xf32> to vector<16x16xf32>
    %77 = vector.extract_strided_slice %16 {offsets = [0, 336], sizes = [16, 16], strides = [1, 1]} : vector<16x384xf32> to vector<16x16xf32>
    %78 = vector.extract_strided_slice %16 {offsets = [0, 352], sizes = [16, 16], strides = [1, 1]} : vector<16x384xf32> to vector<16x16xf32>
    %79 = vector.extract_strided_slice %16 {offsets = [0, 368], sizes = [16, 16], strides = [1, 1]} : vector<16x384xf32> to vector<16x16xf32>
    %80 = vector.shape_cast %76 : vector<16x16xf32> to vector<16x1x16xf32>
    %81 = vector.shape_cast %77 : vector<16x16xf32> to vector<16x1x16xf32>
    %82 = vector.shape_cast %78 : vector<16x16xf32> to vector<16x1x16xf32>
    %83 = vector.shape_cast %79 : vector<16x16xf32> to vector<16x1x16xf32>
    %84 = tpu.concatenate %80, %81, %82, %83 in 1 : vector<16x1x16xf32>, vector<16x1x16xf32>, vector<16x1x16xf32>, vector<16x1x16xf32> -> vector<16x4x16xf32>
    "tpu.trace_start"() <{level = 10 : i32, message = "nja,nka->njk"}> : () -> ()
    %cst_16 = arith.constant dense<0.000000e+00> : vector<16x4x4xf32>
    %85 = tpu.matmul %66, %75, %cst_16 {dimension_numbers = #tpu.dot_dimension_numbers<[2], [2], [1], [1], [0, 0, 0, 1, 1, 1], [0], [0]>} : vector<16x4x16xf32>, vector<16x4x16xf32>, vector<16x4x4xf32> -> vector<16x4x4xf32>
    "tpu.trace_stop"() : () -> ()
    %cst_17 = arith.constant dense<0xFF800000> : vector<16x4xf32>
    %86 = vector.multi_reduction <maximumf>, %85, %cst_17 [2] : vector<16x4x4xf32> to vector<16x4xf32>
    %87 = vector.shape_cast %86 : vector<16x4xf32> to vector<16x4x1xf32>
    %88 = vector.broadcast %87 : vector<16x4x1xf32> to vector<16x4x4xf32>
    %89 = arith.subf %85, %88 : vector<16x4x4xf32>
    %90 = math.exp %89 : vector<16x4x4xf32>
    %cst_18 = arith.constant dense<0.000000e+00> : vector<16x4xf32>
    %91 = vector.multi_reduction <add>, %90, %cst_18 [2] : vector<16x4x4xf32> to vector<16x4xf32>
    %92 = vector.shape_cast %91 : vector<16x4xf32> to vector<16x4x1xf32>
    "tpu.trace_start"() <{level = 10 : i32, message = "njk,nka->nja"}> : () -> ()
    %cst_19 = arith.constant dense<0.000000e+00> : vector<16x4x16xf32>
    %93 = tpu.matmul %90, %84, %cst_19 {dimension_numbers = #tpu.dot_dimension_numbers<[2], [1], [1], [2], [0, 0, 0, 1, 1, 2], [0], [0]>} : vector<16x4x4xf32>, vector<16x4x16xf32>, vector<16x4x16xf32> -> vector<16x4x16xf32>
    "tpu.trace_stop"() : () -> ()
    %94 = tpu.reciprocal %92 {approx = true} : vector<16x4x1xf32> -> vector<16x4x1xf32>
    %95 = vector.broadcast %94 : vector<16x4x1xf32> to vector<16x4x16xf32>
    %96 = arith.mulf %93, %95 : vector<16x4x16xf32>
    %97 = vector.extract_strided_slice %96 {offsets = [0, 0, 0], sizes = [16, 1, 16], strides = [1, 1, 1]} : vector<16x4x16xf32> to vector<16x1x16xf32>
    %98 = vector.shape_cast %97 : vector<16x1x16xf32> to vector<16x16xf32>
    %99 = vector.extract_strided_slice %96 {offsets = [0, 1, 0], sizes = [16, 1, 16], strides = [1, 1, 1]} : vector<16x4x16xf32> to vector<16x1x16xf32>
    %100 = vector.shape_cast %99 : vector<16x1x16xf32> to vector<16x16xf32>
    %101 = vector.extract_strided_slice %96 {offsets = [0, 2, 0], sizes = [16, 1, 16], strides = [1, 1, 1]} : vector<16x4x16xf32> to vector<16x1x16xf32>
    %102 = vector.shape_cast %101 : vector<16x1x16xf32> to vector<16x16xf32>
    %103 = vector.extract_strided_slice %96 {offsets = [0, 3, 0], sizes = [16, 1, 16], strides = [1, 1, 1]} : vector<16x4x16xf32> to vector<16x1x16xf32>
    %104 = vector.shape_cast %103 : vector<16x1x16xf32> to vector<16x16xf32>
    %105 = tpu.concatenate %98, %100, %102, %104 in 1 : vector<16x16xf32>, vector<16x16xf32>, vector<16x16xf32>, vector<16x16xf32> -> vector<16x64xf32>
    %c0_20 = arith.constant 0 : index
    %c0_21 = arith.constant 0 : index
    %c0_22 = arith.constant 0 : index
    %c0_23 = arith.constant 0 : index
    %106 = vector.load %arg7[%c0_20, %c0_21, %c0_22, %c0_23] : memref<2x4x1x64xf32, #tpu.memory_space<vmem>>, vector<1x1x1x64xf32>
    %107 = vector.shape_cast %106 : vector<1x1x1x64xf32> to vector<1x64xf32>
    %108 = vector.broadcast %107 : vector<1x64xf32> to vector<16x64xf32>
    %109 = arith.mulf %57, %108 : vector<16x64xf32>
    %c0_24 = arith.constant 0 : index
    %c1 = arith.constant 1 : index
    %c0_25 = arith.constant 0 : index
    %c0_26 = arith.constant 0 : index
    %110 = vector.load %arg7[%c0_24, %c1, %c0_25, %c0_26] : memref<2x4x1x64xf32, #tpu.memory_space<vmem>>, vector<1x1x1x64xf32>
    %111 = vector.shape_cast %110 : vector<1x1x1x64xf32> to vector<1x64xf32>
    %112 = vector.broadcast %111 : vector<1x64xf32> to vector<16x64xf32>
    %113 = arith.mulf %105, %112 : vector<16x64xf32>
    %114 = arith.addf %109, %113 : vector<16x64xf32>
    %c0_27 = arith.constant 0 : index
    %c2 = arith.constant 2 : index
    %c0_28 = arith.constant 0 : index
    %c0_29 = arith.constant 0 : index
    %115 = vector.load %arg7[%c0_27, %c2, %c0_28, %c0_29] : memref<2x4x1x64xf32, #tpu.memory_space<vmem>>, vector<1x1x1x64xf32>
    %116 = vector.shape_cast %115 : vector<1x1x1x64xf32> to vector<1x64xf32>
    %117 = vector.broadcast %116 : vector<1x64xf32> to vector<16x64xf32>
    %118 = arith.mulf %9, %117 : vector<16x64xf32>
    %119 = arith.addf %114, %118 : vector<16x64xf32>
    %c0_30 = arith.constant 0 : index
    %c0_31 = arith.constant 0 : index
    %c0_32 = arith.constant 0 : index
    %c0_33 = arith.constant 0 : index
    %120 = vector.load %arg8[%c0_30, %c0_31, %c0_32, %c0_33] : memref<2x2x1x64xf32, #tpu.memory_space<vmem>>, vector<1x1x1x64xf32>
    %121 = vector.shape_cast %120 : vector<1x1x1x64xf32> to vector<1x64xf32>
    %122 = vector.broadcast %121 : vector<1x64xf32> to vector<16x64xf32>
    %123 = arith.addf %119, %122 : vector<16x64xf32>
    %c0_34 = arith.constant 0 : index
    %c0_35 = arith.constant 0 : index
    %c0_36 = arith.constant 0 : index
    %124 = vector.load %arg6[%c0_34, %c0_35, %c0_36] : memref<2x64x64xf32, #tpu.memory_space<vmem>>, vector<1x64x64xf32>
    %125 = vector.shape_cast %124 : vector<1x64x64xf32> to vector<64x64xf32>
    %cst_37 = arith.constant dense<0.000000e+00> : vector<16x64xf32>
    %126 = tpu.matmul %123, %125, %cst_37 {dimension_numbers = #tpu.dot_dimension_numbers<[1], [0], [0], [1], [0, 0, 1, 1], [], []>} : vector<16x64xf32>, vector<64x64xf32>, vector<16x64xf32> -> vector<16x64xf32>
    %127 = arith.addf %126, %123 : vector<16x64xf32>
    %c0_38 = arith.constant 0 : index
    %c3 = arith.constant 3 : index
    %c0_39 = arith.constant 0 : index
    %c0_40 = arith.constant 0 : index
    %128 = vector.load %arg7[%c0_38, %c3, %c0_39, %c0_40] : memref<2x4x1x64xf32, #tpu.memory_space<vmem>>, vector<1x1x1x64xf32>
    %129 = vector.shape_cast %128 : vector<1x1x1x64xf32> to vector<1x64xf32>
    %130 = vector.broadcast %129 : vector<1x64xf32> to vector<16x64xf32>
    %131 = arith.mulf %127, %130 : vector<16x64xf32>
    %c0_41 = arith.constant 0 : index
    %c1_42 = arith.constant 1 : index
    %c0_43 = arith.constant 0 : index
    %c0_44 = arith.constant 0 : index
    %132 = vector.load %arg8[%c0_41, %c1_42, %c0_43, %c0_44] : memref<2x2x1x64xf32, #tpu.memory_space<vmem>>, vector<1x1x1x64xf32>
    %133 = vector.shape_cast %132 : vector<1x1x1x64xf32> to vector<1x64xf32>
    %134 = vector.broadcast %133 : vector<1x64xf32> to vector<16x64xf32>
    %135 = arith.addf %131, %134 : vector<16x64xf32>
    %c1_45 = arith.constant 1 : index
    %c0_46 = arith.constant 0 : index
    %c0_47 = arith.constant 0 : index
    %136 = vector.load %arg5[%c1_45, %c0_46, %c0_47] : memref<2x64x384xf32, #tpu.memory_space<vmem>>, vector<1x64x384xf32>
    %137 = vector.shape_cast %136 : vector<1x64x384xf32> to vector<64x384xf32>
    %cst_48 = arith.constant dense<0.000000e+00> : vector<16x384xf32>
    %138 = tpu.matmul %135, %137, %cst_48 {dimension_numbers = #tpu.dot_dimension_numbers<[1], [0], [0], [1], [0, 0, 1, 1], [], []>} : vector<16x64xf32>, vector<64x384xf32>, vector<16x384xf32> -> vector<16x384xf32>
    %139 = vector.extract_strided_slice %138 {offsets = [0, 0], sizes = [16, 16], strides = [1, 1]} : vector<16x384xf32> to vector<16x16xf32>
    %140 = vector.extract_strided_slice %138 {offsets = [0, 16], sizes = [16, 16], strides = [1, 1]} : vector<16x384xf32> to vector<16x16xf32>
    %141 = vector.extract_strided_slice %138 {offsets = [0, 32], sizes = [16, 16], strides = [1, 1]} : vector<16x384xf32> to vector<16x16xf32>
    %142 = vector.extract_strided_slice %138 {offsets = [0, 48], sizes = [16, 16], strides = [1, 1]} : vector<16x384xf32> to vector<16x16xf32>
    %143 = tpu.concatenate %139, %140, %141, %142 in 0 : vector<16x16xf32>, vector<16x16xf32>, vector<16x16xf32>, vector<16x16xf32> -> vector<64x16xf32>
    %144 = vector.shape_cast %143 : vector<64x16xf32> to vector<8x8x16xf32>
    %145 = vector.extract_strided_slice %138 {offsets = [0, 64], sizes = [16, 16], strides = [1, 1]} : vector<16x384xf32> to vector<16x16xf32>
    %146 = vector.extract_strided_slice %138 {offsets = [0, 80], sizes = [16, 16], strides = [1, 1]} : vector<16x384xf32> to vector<16x16xf32>
    %147 = vector.extract_strided_slice %138 {offsets = [0, 96], sizes = [16, 16], strides = [1, 1]} : vector<16x384xf32> to vector<16x16xf32>
    %148 = vector.extract_strided_slice %138 {offsets = [0, 112], sizes = [16, 16], strides = [1, 1]} : vector<16x384xf32> to vector<16x16xf32>
    %149 = tpu.concatenate %145, %146, %147, %148 in 0 : vector<16x16xf32>, vector<16x16xf32>, vector<16x16xf32>, vector<16x16xf32> -> vector<64x16xf32>
    %150 = vector.shape_cast %149 : vector<64x16xf32> to vector<8x8x16xf32>
    %151 = vector.extract_strided_slice %138 {offsets = [0, 128], sizes = [16, 16], strides = [1, 1]} : vector<16x384xf32> to vector<16x16xf32>
    %152 = vector.extract_strided_slice %138 {offsets = [0, 144], sizes = [16, 16], strides = [1, 1]} : vector<16x384xf32> to vector<16x16xf32>
    %153 = vector.extract_strided_slice %138 {offsets = [0, 160], sizes = [16, 16], strides = [1, 1]} : vector<16x384xf32> to vector<16x16xf32>
    %154 = vector.extract_strided_slice %138 {offsets = [0, 176], sizes = [16, 16], strides = [1, 1]} : vector<16x384xf32> to vector<16x16xf32>
    %155 = tpu.concatenate %151, %152, %153, %154 in 0 : vector<16x16xf32>, vector<16x16xf32>, vector<16x16xf32>, vector<16x16xf32> -> vector<64x16xf32>
    %156 = vector.shape_cast %155 : vector<64x16xf32> to vector<8x8x16xf32>
    "tpu.trace_start"() <{level = 10 : i32, message = "gta,gua->gtu"}> : () -> ()
    %cst_49 = arith.constant dense<0.000000e+00> : vector<8x8x8xf32>
    %157 = tpu.matmul %144, %150, %cst_49 {dimension_numbers = #tpu.dot_dimension_numbers<[2], [2], [1], [1], [0, 0, 0, 1, 1, 1], [0], [0]>} : vector<8x8x16xf32>, vector<8x8x16xf32>, vector<8x8x8xf32> -> vector<8x8x8xf32>
    "tpu.trace_stop"() : () -> ()
    %158 = arith.addf %157, %13 : vector<8x8x8xf32>
    %cst_50 = arith.constant dense<0xFF800000> : vector<8x8xf32>
    %159 = vector.multi_reduction <maximumf>, %158, %cst_50 [2] : vector<8x8x8xf32> to vector<8x8xf32>
    %160 = vector.shape_cast %159 : vector<8x8xf32> to vector<8x8x1xf32>
    %161 = vector.broadcast %160 : vector<8x8x1xf32> to vector<8x8x8xf32>
    %162 = arith.subf %158, %161 : vector<8x8x8xf32>
    %163 = math.exp %162 : vector<8x8x8xf32>
    %cst_51 = arith.constant dense<0.000000e+00> : vector<8x8xf32>
    %164 = vector.multi_reduction <add>, %163, %cst_51 [2] : vector<8x8x8xf32> to vector<8x8xf32>
    %165 = vector.shape_cast %164 : vector<8x8xf32> to vector<8x8x1xf32>
    "tpu.trace_start"() <{level = 10 : i32, message = "gtu,gua->gta"}> : () -> ()
    %cst_52 = arith.constant dense<0.000000e+00> : vector<8x8x16xf32>
    %166 = tpu.matmul %163, %156, %cst_52 {dimension_numbers = #tpu.dot_dimension_numbers<[2], [1], [1], [2], [0, 0, 0, 1, 1, 2], [0], [0]>} : vector<8x8x8xf32>, vector<8x8x16xf32>, vector<8x8x16xf32> -> vector<8x8x16xf32>
    "tpu.trace_stop"() : () -> ()
    %167 = tpu.reciprocal %165 {approx = true} : vector<8x8x1xf32> -> vector<8x8x1xf32>
    %168 = vector.broadcast %167 : vector<8x8x1xf32> to vector<8x8x16xf32>
    %169 = arith.mulf %166, %168 : vector<8x8x16xf32>
    %170 = vector.shape_cast %169 : vector<8x8x16xf32> to vector<4x16x16xf32>
    %171 = vector.extract_strided_slice %170 {offsets = [0, 0, 0], sizes = [1, 16, 16], strides = [1, 1, 1]} : vector<4x16x16xf32> to vector<1x16x16xf32>
    %172 = vector.shape_cast %171 : vector<1x16x16xf32> to vector<16x16xf32>
    %173 = vector.extract_strided_slice %170 {offsets = [1, 0, 0], sizes = [1, 16, 16], strides = [1, 1, 1]} : vector<4x16x16xf32> to vector<1x16x16xf32>
    %174 = vector.shape_cast %173 : vector<1x16x16xf32> to vector<16x16xf32>
    %175 = vector.extract_strided_slice %170 {offsets = [2, 0, 0], sizes = [1, 16, 16], strides = [1, 1, 1]} : vector<4x16x16xf32> to vector<1x16x16xf32>
    %176 = vector.shape_cast %175 : vector<1x16x16xf32> to vector<16x16xf32>
    %177 = vector.extract_strided_slice %170 {offsets = [3, 0, 0], sizes = [1, 16, 16], strides = [1, 1, 1]} : vector<4x16x16xf32> to vector<1x16x16xf32>
    %178 = vector.shape_cast %177 : vector<1x16x16xf32> to vector<16x16xf32>
    %179 = tpu.concatenate %172, %174, %176, %178 in 1 : vector<16x16xf32>, vector<16x16xf32>, vector<16x16xf32>, vector<16x16xf32> -> vector<16x64xf32>
    %180 = vector.extract_strided_slice %138 {offsets = [0, 192], sizes = [16, 16], strides = [1, 1]} : vector<16x384xf32> to vector<16x16xf32>
    %181 = vector.extract_strided_slice %138 {offsets = [0, 208], sizes = [16, 16], strides = [1, 1]} : vector<16x384xf32> to vector<16x16xf32>
    %182 = vector.extract_strided_slice %138 {offsets = [0, 224], sizes = [16, 16], strides = [1, 1]} : vector<16x384xf32> to vector<16x16xf32>
    %183 = vector.extract_strided_slice %138 {offsets = [0, 240], sizes = [16, 16], strides = [1, 1]} : vector<16x384xf32> to vector<16x16xf32>
    %184 = vector.shape_cast %180 : vector<16x16xf32> to vector<16x1x16xf32>
    %185 = vector.shape_cast %181 : vector<16x16xf32> to vector<16x1x16xf32>
    %186 = vector.shape_cast %182 : vector<16x16xf32> to vector<16x1x16xf32>
    %187 = vector.shape_cast %183 : vector<16x16xf32> to vector<16x1x16xf32>
    %188 = tpu.concatenate %184, %185, %186, %187 in 1 : vector<16x1x16xf32>, vector<16x1x16xf32>, vector<16x1x16xf32>, vector<16x1x16xf32> -> vector<16x4x16xf32>
    %189 = vector.extract_strided_slice %138 {offsets = [0, 256], sizes = [16, 16], strides = [1, 1]} : vector<16x384xf32> to vector<16x16xf32>
    %190 = vector.extract_strided_slice %138 {offsets = [0, 272], sizes = [16, 16], strides = [1, 1]} : vector<16x384xf32> to vector<16x16xf32>
    %191 = vector.extract_strided_slice %138 {offsets = [0, 288], sizes = [16, 16], strides = [1, 1]} : vector<16x384xf32> to vector<16x16xf32>
    %192 = vector.extract_strided_slice %138 {offsets = [0, 304], sizes = [16, 16], strides = [1, 1]} : vector<16x384xf32> to vector<16x16xf32>
    %193 = vector.shape_cast %189 : vector<16x16xf32> to vector<16x1x16xf32>
    %194 = vector.shape_cast %190 : vector<16x16xf32> to vector<16x1x16xf32>
    %195 = vector.shape_cast %191 : vector<16x16xf32> to vector<16x1x16xf32>
    %196 = vector.shape_cast %192 : vector<16x16xf32> to vector<16x1x16xf32>
    %197 = tpu.concatenate %193, %194, %195, %196 in 1 : vector<16x1x16xf32>, vector<16x1x16xf32>, vector<16x1x16xf32>, vector<16x1x16xf32> -> vector<16x4x16xf32>
    %198 = vector.extract_strided_slice %138 {offsets = [0, 320], sizes = [16, 16], strides = [1, 1]} : vector<16x384xf32> to vector<16x16xf32>
    %199 = vector.extract_strided_slice %138 {offsets = [0, 336], sizes = [16, 16], strides = [1, 1]} : vector<16x384xf32> to vector<16x16xf32>
    %200 = vector.extract_strided_slice %138 {offsets = [0, 352], sizes = [16, 16], strides = [1, 1]} : vector<16x384xf32> to vector<16x16xf32>
    %201 = vector.extract_strided_slice %138 {offsets = [0, 368], sizes = [16, 16], strides = [1, 1]} : vector<16x384xf32> to vector<16x16xf32>
    %202 = vector.shape_cast %198 : vector<16x16xf32> to vector<16x1x16xf32>
    %203 = vector.shape_cast %199 : vector<16x16xf32> to vector<16x1x16xf32>
    %204 = vector.shape_cast %200 : vector<16x16xf32> to vector<16x1x16xf32>
    %205 = vector.shape_cast %201 : vector<16x16xf32> to vector<16x1x16xf32>
    %206 = tpu.concatenate %202, %203, %204, %205 in 1 : vector<16x1x16xf32>, vector<16x1x16xf32>, vector<16x1x16xf32>, vector<16x1x16xf32> -> vector<16x4x16xf32>
    "tpu.trace_start"() <{level = 10 : i32, message = "nja,nka->njk"}> : () -> ()
    %cst_53 = arith.constant dense<0.000000e+00> : vector<16x4x4xf32>
    %207 = tpu.matmul %188, %197, %cst_53 {dimension_numbers = #tpu.dot_dimension_numbers<[2], [2], [1], [1], [0, 0, 0, 1, 1, 1], [0], [0]>} : vector<16x4x16xf32>, vector<16x4x16xf32>, vector<16x4x4xf32> -> vector<16x4x4xf32>
    "tpu.trace_stop"() : () -> ()
    %cst_54 = arith.constant dense<0xFF800000> : vector<16x4xf32>
    %208 = vector.multi_reduction <maximumf>, %207, %cst_54 [2] : vector<16x4x4xf32> to vector<16x4xf32>
    %209 = vector.shape_cast %208 : vector<16x4xf32> to vector<16x4x1xf32>
    %210 = vector.broadcast %209 : vector<16x4x1xf32> to vector<16x4x4xf32>
    %211 = arith.subf %207, %210 : vector<16x4x4xf32>
    %212 = math.exp %211 : vector<16x4x4xf32>
    %cst_55 = arith.constant dense<0.000000e+00> : vector<16x4xf32>
    %213 = vector.multi_reduction <add>, %212, %cst_55 [2] : vector<16x4x4xf32> to vector<16x4xf32>
    %214 = vector.shape_cast %213 : vector<16x4xf32> to vector<16x4x1xf32>
    "tpu.trace_start"() <{level = 10 : i32, message = "njk,nka->nja"}> : () -> ()
    %cst_56 = arith.constant dense<0.000000e+00> : vector<16x4x16xf32>
    %215 = tpu.matmul %212, %206, %cst_56 {dimension_numbers = #tpu.dot_dimension_numbers<[2], [1], [1], [2], [0, 0, 0, 1, 1, 2], [0], [0]>} : vector<16x4x4xf32>, vector<16x4x16xf32>, vector<16x4x16xf32> -> vector<16x4x16xf32>
    "tpu.trace_stop"() : () -> ()
    %216 = tpu.reciprocal %214 {approx = true} : vector<16x4x1xf32> -> vector<16x4x1xf32>
    %217 = vector.broadcast %216 : vector<16x4x1xf32> to vector<16x4x16xf32>
    %218 = arith.mulf %215, %217 : vector<16x4x16xf32>
    %219 = vector.extract_strided_slice %218 {offsets = [0, 0, 0], sizes = [16, 1, 16], strides = [1, 1, 1]} : vector<16x4x16xf32> to vector<16x1x16xf32>
    %220 = vector.shape_cast %219 : vector<16x1x16xf32> to vector<16x16xf32>
    %221 = vector.extract_strided_slice %218 {offsets = [0, 1, 0], sizes = [16, 1, 16], strides = [1, 1, 1]} : vector<16x4x16xf32> to vector<16x1x16xf32>
    %222 = vector.shape_cast %221 : vector<16x1x16xf32> to vector<16x16xf32>
    %223 = vector.extract_strided_slice %218 {offsets = [0, 2, 0], sizes = [16, 1, 16], strides = [1, 1, 1]} : vector<16x4x16xf32> to vector<16x1x16xf32>
    %224 = vector.shape_cast %223 : vector<16x1x16xf32> to vector<16x16xf32>
    %225 = vector.extract_strided_slice %218 {offsets = [0, 3, 0], sizes = [16, 1, 16], strides = [1, 1, 1]} : vector<16x4x16xf32> to vector<16x1x16xf32>
    %226 = vector.shape_cast %225 : vector<16x1x16xf32> to vector<16x16xf32>
    %227 = tpu.concatenate %220, %222, %224, %226 in 1 : vector<16x16xf32>, vector<16x16xf32>, vector<16x16xf32>, vector<16x16xf32> -> vector<16x64xf32>
    %c1_57 = arith.constant 1 : index
    %c0_58 = arith.constant 0 : index
    %c0_59 = arith.constant 0 : index
    %c0_60 = arith.constant 0 : index
    %228 = vector.load %arg7[%c1_57, %c0_58, %c0_59, %c0_60] : memref<2x4x1x64xf32, #tpu.memory_space<vmem>>, vector<1x1x1x64xf32>
    %229 = vector.shape_cast %228 : vector<1x1x1x64xf32> to vector<1x64xf32>
    %230 = vector.broadcast %229 : vector<1x64xf32> to vector<16x64xf32>
    %231 = arith.mulf %179, %230 : vector<16x64xf32>
    %c1_61 = arith.constant 1 : index
    %c1_62 = arith.constant 1 : index
    %c0_63 = arith.constant 0 : index
    %c0_64 = arith.constant 0 : index
    %232 = vector.load %arg7[%c1_61, %c1_62, %c0_63, %c0_64] : memref<2x4x1x64xf32, #tpu.memory_space<vmem>>, vector<1x1x1x64xf32>
    %233 = vector.shape_cast %232 : vector<1x1x1x64xf32> to vector<1x64xf32>
    %234 = vector.broadcast %233 : vector<1x64xf32> to vector<16x64xf32>
    %235 = arith.mulf %227, %234 : vector<16x64xf32>
    %236 = arith.addf %231, %235 : vector<16x64xf32>
    %c1_65 = arith.constant 1 : index
    %c2_66 = arith.constant 2 : index
    %c0_67 = arith.constant 0 : index
    %c0_68 = arith.constant 0 : index
    %237 = vector.load %arg7[%c1_65, %c2_66, %c0_67, %c0_68] : memref<2x4x1x64xf32, #tpu.memory_space<vmem>>, vector<1x1x1x64xf32>
    %238 = vector.shape_cast %237 : vector<1x1x1x64xf32> to vector<1x64xf32>
    %239 = vector.broadcast %238 : vector<1x64xf32> to vector<16x64xf32>
    %240 = arith.mulf %135, %239 : vector<16x64xf32>
    %241 = arith.addf %236, %240 : vector<16x64xf32>
    %c1_69 = arith.constant 1 : index
    %c0_70 = arith.constant 0 : index
    %c0_71 = arith.constant 0 : index
    %c0_72 = arith.constant 0 : index
    %242 = vector.load %arg8[%c1_69, %c0_70, %c0_71, %c0_72] : memref<2x2x1x64xf32, #tpu.memory_space<vmem>>, vector<1x1x1x64xf32>
    %243 = vector.shape_cast %242 : vector<1x1x1x64xf32> to vector<1x64xf32>
    %244 = vector.broadcast %243 : vector<1x64xf32> to vector<16x64xf32>
    %245 = arith.addf %241, %244 : vector<16x64xf32>
    %c1_73 = arith.constant 1 : index
    %c0_74 = arith.constant 0 : index
    %c0_75 = arith.constant 0 : index
    %246 = vector.load %arg6[%c1_73, %c0_74, %c0_75] : memref<2x64x64xf32, #tpu.memory_space<vmem>>, vector<1x64x64xf32>
    %247 = vector.shape_cast %246 : vector<1x64x64xf32> to vector<64x64xf32>
    %cst_76 = arith.constant dense<0.000000e+00> : vector<16x64xf32>
    %248 = tpu.matmul %245, %247, %cst_76 {dimension_numbers = #tpu.dot_dimension_numbers<[1], [0], [0], [1], [0, 0, 1, 1], [], []>} : vector<16x64xf32>, vector<64x64xf32>, vector<16x64xf32> -> vector<16x64xf32>
    %249 = arith.addf %248, %245 : vector<16x64xf32>
    %c1_77 = arith.constant 1 : index
    %c3_78 = arith.constant 3 : index
    %c0_79 = arith.constant 0 : index
    %c0_80 = arith.constant 0 : index
    %250 = vector.load %arg7[%c1_77, %c3_78, %c0_79, %c0_80] : memref<2x4x1x64xf32, #tpu.memory_space<vmem>>, vector<1x1x1x64xf32>
    %251 = vector.shape_cast %250 : vector<1x1x1x64xf32> to vector<1x64xf32>
    %252 = vector.broadcast %251 : vector<1x64xf32> to vector<16x64xf32>
    %253 = arith.mulf %249, %252 : vector<16x64xf32>
    %c1_81 = arith.constant 1 : index
    %c1_82 = arith.constant 1 : index
    %c0_83 = arith.constant 0 : index
    %c0_84 = arith.constant 0 : index
    %254 = vector.load %arg8[%c1_81, %c1_82, %c0_83, %c0_84] : memref<2x2x1x64xf32, #tpu.memory_space<vmem>>, vector<1x1x1x64xf32>
    %255 = vector.shape_cast %254 : vector<1x1x1x64xf32> to vector<1x64xf32>
    %256 = vector.broadcast %255 : vector<1x64xf32> to vector<16x64xf32>
    %257 = arith.addf %253, %256 : vector<16x64xf32>
    %c0_85 = arith.constant 0 : index
    %c0_86 = arith.constant 0 : index
    %258 = vector.load %arg9[%c0_85, %c0_86] : memref<64x16xf32, #tpu.memory_space<vmem>>, vector<64x16xf32>
    %cst_87 = arith.constant dense<0.000000e+00> : vector<16x16xf32>
    %259 = tpu.matmul %257, %258, %cst_87 {dimension_numbers = #tpu.dot_dimension_numbers<[1], [0], [0], [1], [0, 0, 1, 1], [], []>} : vector<16x64xf32>, vector<64x16xf32>, vector<16x16xf32> -> vector<16x16xf32>
    %c0_88 = arith.constant 0 : index
    %c0_89 = arith.constant 0 : index
    %260 = vector.load %arg10[%c0_88, %c0_89] : memref<1x16xf32, #tpu.memory_space<vmem>>, vector<1x16xf32>
    %261 = vector.broadcast %260 : vector<1x16xf32> to vector<16x16xf32>
    %262 = arith.addf %259, %261 : vector<16x16xf32>
    %263 = arith.addf %262, %1 : vector<16x16xf32>
    %c0_90 = arith.constant 0 : index
    %c0_91 = arith.constant 0 : index
    %264 = vector.load %arg11[%c0_90, %c0_91] : memref<16x16xf32, #tpu.memory_space<vmem>>, vector<16x16xf32>
    tpu.vector_store %arg11[%c0_90, %c0_91], %263 {strides = array<i32>} : memref<16x16xf32, #tpu.memory_space<vmem>>, vector<16x16xf32>,
    return
  }
  func.func @transform_0(%arg0: i32) -> (i32, i32, i32) {
    %c0_i32 = arith.constant 0 : i32
    %c0_i32_0 = arith.constant 0 : i32
    %c0_i32_1 = arith.constant 0 : i32
    return %arg0, %c0_i32, %c0_i32_0 : i32, i32, i32
  }
  func.func @transform_1(%arg0: i32) -> (i32, i32) {
    %c0_i32 = arith.constant 0 : i32
    %c0_i32_0 = arith.constant 0 : i32
    %c0_i32_1 = arith.constant 0 : i32
    return %c0_i32, %c0_i32_0 : i32, i32
  }
  func.func @transform_2(%arg0: i32) -> (i32, i32) {
    %c0_i32 = arith.constant 0 : i32
    %c0_i32_0 = arith.constant 0 : i32
    %c0_i32_1 = arith.constant 0 : i32
    return %c0_i32, %c0_i32_0 : i32, i32
  }
  func.func @transform_3(%arg0: i32) -> (i32, i32) {
    %c0_i32 = arith.constant 0 : i32
    %c0_i32_0 = arith.constant 0 : i32
    %c0_i32_1 = arith.constant 0 : i32
    return %c0_i32, %c0_i32_0 : i32, i32
  }
  func.func @transform_4(%arg0: i32) -> (i32, i32, i32) {
    %c0_i32 = arith.constant 0 : i32
    %c0_i32_0 = arith.constant 0 : i32
    %c0_i32_1 = arith.constant 0 : i32
    %c0_i32_2 = arith.constant 0 : i32
    return %c0_i32, %c0_i32_0, %c0_i32_1 : i32, i32, i32
  }
  func.func @transform_5(%arg0: i32) -> (i32, i32, i32) {
    %c0_i32 = arith.constant 0 : i32
    %c0_i32_0 = arith.constant 0 : i32
    %c0_i32_1 = arith.constant 0 : i32
    %c0_i32_2 = arith.constant 0 : i32
    return %c0_i32, %c0_i32_0, %c0_i32_1 : i32, i32, i32
  }
  func.func @transform_6(%arg0: i32) -> (i32, i32, i32, i32) {
    %c0_i32 = arith.constant 0 : i32
    %c0_i32_0 = arith.constant 0 : i32
    %c0_i32_1 = arith.constant 0 : i32
    %c0_i32_2 = arith.constant 0 : i32
    %c0_i32_3 = arith.constant 0 : i32
    return %c0_i32, %c0_i32_0, %c0_i32_1, %c0_i32_2 : i32, i32, i32, i32
  }
  func.func @transform_7(%arg0: i32) -> (i32, i32, i32, i32) {
    %c0_i32 = arith.constant 0 : i32
    %c0_i32_0 = arith.constant 0 : i32
    %c0_i32_1 = arith.constant 0 : i32
    %c0_i32_2 = arith.constant 0 : i32
    %c0_i32_3 = arith.constant 0 : i32
    return %c0_i32, %c0_i32_0, %c0_i32_1, %c0_i32_2 : i32, i32, i32, i32
  }
  func.func @transform_8(%arg0: i32) -> (i32, i32) {
    %c0_i32 = arith.constant 0 : i32
    %c0_i32_0 = arith.constant 0 : i32
    %c0_i32_1 = arith.constant 0 : i32
    return %c0_i32, %c0_i32_0 : i32, i32
  }
  func.func @transform_9(%arg0: i32) -> (i32, i32) {
    %c0_i32 = arith.constant 0 : i32
    %c0_i32_0 = arith.constant 0 : i32
    %c0_i32_1 = arith.constant 0 : i32
    return %c0_i32, %c0_i32_0 : i32, i32
  }
  func.func @transform_10(%arg0: i32) -> (i32, i32) {
    %c0_i32 = arith.constant 0 : i32
    %c0_i32_0 = arith.constant 0 : i32
    return %arg0, %c0_i32 : i32, i32
  }
}

</mosaic_0001>

<bundles_post_ra>
// kernel: _lambda_.1
= control target key start
LH: loop header
LB: loop body
LE: loop exit
PB: predicated region body
PF: predicated region fallthrough
CT: control target
= control target key end

     0   :  { %15 = vsyncpa [#allocation3], 0  ;;  %s15283_s0 = inlined_call_operand.hbm [shape: f32[2,8,16], index: 0, kind: input, shape index: {}]   ;;  %s15284_s1 = inlined_call_operand.hbm [shape: f32[16,64], index: 1, kind: input, shape index: {}]   ;;  %s15285_s2 = inlined_call_operand.hbm [shape: f32[8,64], index: 2, kind: input, shape index: {}]   ;;  %s15286_s3 = inlined_call_operand.hbm [shape: f32[8,8], index: 3, kind: input, shape index: {}]   ;;  %s15287_s4 = inlined_call_operand.hbm [shape: f32[2,64,384], index: 4, kind: input, shape index: {}]   ;;  %s15288_s5 = inlined_call_operand.hbm [shape: f32[2,64,64], index: 5, kind: input, shape index: {}]   ;;  %s15289_s6 = inlined_call_operand.vmem [shape: f32[2,4,1,64], index: 6, kind: input, shape index: {}]   ;;  %s15290_s7 = inlined_call_operand.vmem [shape: f32[2,2,1,64], index: 7, kind: input, shape index: {}]   ;;  %s15291_s8 = inlined_call_operand.hbm [shape: f32[64,16], index: 8, kind: input, shape index: {}]   ;;  %s15292_s9 = inlined_call_operand.vmem [shape: f32[1,16], index: 9, kind: input, shape index: {}]   ;;  %s15293_s10 = inlined_call_operand.hbm [shape: f32[16,16], index: 10, kind: output, shape index: {}]  }
   0x1   :  { %16 = vsyncpa [#allocation6], 0 }
   0x2   :  { %17 = vsyncpa [#allocation9], 0 }
   0x3   :  { %18 = vsyncpa [#allocation12], 0 }
   0x4   :  { %19 = vsyncpa [#allocation4], 0  ;;  %s12246_s13 = smov [#allocation5]   ;;  %s12247_s15 = smov [#allocation8]  }
   0x5   :  { %s37_s14 = sshll.u32 %s12246_s13, 4  ;;  %s60_s16 = sshll.u32 %s12247_s15, 4  ;;  %s38_s14 = int_to_ptr.vmem [resolvable:$true] %s37_s14  ;;  %s61_s16 = int_to_ptr.vmem [resolvable:$true] %s60_s16 }
   0x6   :  { %s12084_s17 = scalar_lea.vmem %s38_s14, 256  ;;  %p12089_p1 = scmp.lt.s32.totalorder %s38_s14, %s38_s14 }
   0x7   :  { %p12085_p0 = scmp.ne.s32.totalorder %s38_s14, %s12084_s17  ;;  %p12090_p2 = scmp.lt.s32.totalorder %s12084_s17, %s12084_s17 }
   0x9   :  { %p12091_p3 = por %p12090_p2, %p12089_p1 }
   0xb   :  { %p12092_p4 = pnand %p12091_p3, %p12085_p0 }
   0xd   :  { %12095 = shalt.err (!%p12092_p4)
}
   0xe   :  { %s12248_s18 = smov 128   ;;  %s12249_s19 = smov 8  }
   0xf   :  { %43 = dma.hbm_to_vmem [thread:$0]  %s15284_s1, 256, %s38_s14, [#allocation6], %s12248_s18, %s12248_s18, %s12249_s19  }
  0x10   :  { %s12104_s22 = scalar_lea.vmem %s61_s16, 128  ;;  %p12109_p6 = scmp.lt.s32.totalorder %s61_s16, %s61_s16 }
  0x11   :  { %p12105_p5 = scmp.ne.s32.totalorder %s61_s16, %s12104_s22  ;;  %p12110_p7 = scmp.lt.s32.totalorder %s12104_s22, %s12104_s22 }
  0x13   :  { %p12111_p8 = por %p12110_p7, %p12109_p6 }
  0x15   :  { %p12112_p9 = pnand %p12111_p8, %p12105_p5 }
  0x17   :  { %12115 = shalt.err (!%p12112_p9)
}
  0x18   :  { %63 = dma.hbm_to_vmem [thread:$0]  %s15286_s3, 128, %s61_s16, [#allocation9]  }
  0x19   :  { %s12250_s25 = smov [#allocation11]   ;;  %s12251_s27 = smov [#allocation2]  }
  0x1a   :  { %s81_s26 = sshll.u32 %s12250_s25, 4  ;;  %s25_s28 = sshll.u32 %s12251_s27, 4  ;;  %s82_s26 = int_to_ptr.vmem [resolvable:$true] %s81_s26  ;;  %s26_s28 = int_to_ptr.vmem [resolvable:$true] %s25_s28 }
  0x1b   :  { %s12124_s29 = scalar_lea.vmem %s82_s26, 2048  ;;  %p12129_p11 = scmp.lt.s32.totalorder %s82_s26, %s82_s26 }
  0x1c   :  { %p12125_p10 = scmp.ne.s32.totalorder %s82_s26, %s12124_s29  ;;  %p12130_p12 = scmp.lt.s32.totalorder %s12124_s29, %s12124_s29 }
  0x1e   :  { %p12131_p13 = por %p12130_p12, %p12129_p11 }
  0x20   :  { %p12132_p0 = pnand %p12131_p13, %p12125_p10 }
  0x22   :  { %12135 = shalt.err (!%p12132_p0)
}
  0x23   :  { %87 = dma.hbm_to_vmem [thread:$0]  %s15288_s5, 2048, %s82_s26, [#allocation12], %s12248_s18, %s12248_s18, %s12249_s19  }
  0x24   :  { %s12144_s3 = scalar_lea.vmem %s26_s28, 256  ;;  %p12149_p2 = scmp.lt.s32.totalorder %s26_s28, %s26_s28 }
  0x25   :  { %p12145_p1 = scmp.ne.s32.totalorder %s26_s28, %s12144_s3  ;;  %p12150_p3 = scmp.lt.s32.totalorder %s12144_s3, %s12144_s3 }
  0x27   :  { %p12151_p4 = por %p12150_p3, %p12149_p2 }
  0x29   :  { %p12152_p5 = pnand %p12151_p4, %p12145_p1 }
  0x2b   :  { %12155 = shalt.err (!%p12152_p5)
}
  0x2c   :  { %31 = dma.hbm_to_vmem [thread:$0]  %s15283_s0, 256, %s26_s28, [#allocation3], %s12248_s18, %s12248_s18, %s12249_s19  }
  0x2d   :  { %s12252_s13 = smov [#allocation7]   ;;  %s12253_s15 = smov [#allocation10]  }
  0x2e   :  { %s50_s14 = sshll.u32 %s12252_s13, 4  ;;  %s69_s16 = sshll.u32 %s12253_s15, 4  ;;  %s51_s14 = int_to_ptr.vmem [resolvable:$true] %s50_s14  ;;  %s70_s16 = int_to_ptr.vmem [resolvable:$true] %s69_s16 }
  0x2f   :  { %s12164_s5 = scalar_lea.vmem %s51_s14, 128  ;;  %p12169_p7 = scmp.lt.s32.totalorder %s51_s14, %s51_s14 }
  0x30   :  { %p12165_p6 = scmp.ne.s32.totalorder %s51_s14, %s12164_s5  ;;  %p12170_p8 = scmp.lt.s32.totalorder %s12164_s5, %s12164_s5 }
  0x32   :  { %p12171_p9 = por %p12170_p8, %p12169_p7 }
  0x34   :  { %p12172_p10 = pnand %p12171_p9, %p12165_p6 }
  0x36   :  { %12175 = shalt.err (!%p12172_p10)
}
  0x37   :  { %53 = dma.hbm_to_vmem [thread:$0]  %s15285_s2, 128, %s51_s14, [#allocation6]  }
  0x38   :  { %s12184_s21 = scalar_lea.vmem %s70_s16, 6144  ;;  %p12189_p12 = scmp.lt.s32.totalorder %s70_s16, %s70_s16 }
  0x39   :  { %p12185_p11 = scmp.ne.s32.totalorder %s70_s16, %s12184_s21  ;;  %p12190_p13 = scmp.lt.s32.totalorder %s12184_s21, %s12184_s21 }
  0x3b   :  { %p12191_p0 = por %p12190_p13, %p12189_p12 }
  0x3d   :  { %p12192_p1 = pnand %p12191_p0, %p12185_p11 }
  0x3f   :  { %12195 = shalt.err (!%p12192_p1)
}
  0x40   :  { %s12254_s0 = smov 384   ;;  %s12255_s22 = smov 24  }
  0x41   :  { %75 = dma.hbm_to_vmem [thread:$0]  %s15287_s4, 6144, %s70_s16, [#allocation9], %s12254_s0, %s12254_s0, %s12255_s22  }
  0x42   :  { %s12256_s25 = smov [#allocation13]  }
  0x43   :  { %s97_s26 = sshll.u32 %s12256_s25, 4  ;;  %s98_s26 = int_to_ptr.vmem [resolvable:$true] %s97_s26 }
  0x44   :  { %s12204_s27 = scalar_lea.vmem %s98_s26, 1024  ;;  %p12209_p3 = scmp.lt.s32.totalorder %s98_s26, %s98_s26 }
  0x45   :  { %p12205_p2 = scmp.ne.s32.totalorder %s98_s26, %s12204_s27  ;;  %p12210_p4 = scmp.lt.s32.totalorder %s12204_s27, %s12204_s27 }
  0x47   :  { %p12211_p5 = por %p12210_p4, %p12209_p3 }
  0x49   :  { %p12212_p6 = pnand %p12211_p5, %p12205_p2 }
  0x4b   :  { %12215 = shalt.err (!%p12212_p6)
}
  0x4c   :  { %103 = dma.hbm_to_vmem [thread:$0]  %s15291_s8, 1024, %s98_s26, [#allocation12], %s12248_s18, %s12248_s18, %s12249_s19  }
  0x4d   :  { %12236 = dma.done.wait [#allocation3], 256  }
  0x4e   :  { %12237 = vsyncadd [#allocation3], 4294967040 }
  0x4f   :  { %12238 = dma.done.wait [#allocation6], 384  }
  0x50   :  { %12239 = vsyncadd [#allocation6], 4294966912 }
  0x51   :  { %12240 = dma.done.wait [#allocation9], 6272  }
  0x52   :  { %12241 = vsyncadd [#allocation9], 4294961024 }
  0x53   :  { %12242 = dma.done.wait [#allocation12], 3072  }
  0x54   :  { %12243 = vsyncadd [#allocation12], 4294964224  ;;  %vm131_vm0 = vcmask 130048   ;;  %v130_v0 = vld [vmem:[#allocation5 + $0x8] sm:$0xff]  ;;  %v129_v1 = vld [vmem:[#allocation5] sm:$0xff]  ;;  %v15294_v28 = vmov 0.0   ;;  %v1751_v39 = vlaneseq }
  0x55   :  { %v127_v2 = vld [vmem:[#allocation2] sm:$0xff]  ;;  %11277 = vmatprep.subr.mxu0 %v130_v0  ;;  %v238_v4 = vld [vmem:[#allocation10 + $0xa8] sm:$0xff]  ;;  %v128_v5 = vld [vmem:[#allocation2 + $0x8] sm:$0xff]  ;;  %312 = vmatprep.mubr.f32.mxu1 %v15294_v28  ;;  %vm241_vm1 = vcmask 523264   ;;  %s12258_s4 = smov 96   ;;  %s12259_s8 = smov 112  }
  0x56   :  { %11281 = vmatprep.mubr.msk.f32.mxu0 %vm131_vm0, %v127_v2  ;;  %v239_v3 = vld [vmem:[#allocation10 + $0xb0] sm:$0xff]  ;;  %11278 = vmatpush3.msra.mxu0 %v130_v0  ;;  %v240_v6 = vld [vmem:[#allocation10 + $0xb8] sm:$0xff]  ;;  %v237_v9 = vld [vmem:[#allocation10 + $0xa0] sm:$0xff]  ;;  %vm12260_vm2 = vmmov 0   ;;  %s12261_s29 = smov 80   ;;  %s12262_s1 = smov 64  }
  0x57   :  { %264 = vmatprep.subr.mxu1 %v239_v3  ;;  %v236_v7 = vld [vmem:[#allocation10 + $0x98] sm:$0xff]  ;;  %11279 = vmatprep.subr.mxu0 %v129_v1  ;;  %v235_v8 = vld [vmem:[#allocation10 + $0x90] sm:$0xff]  ;;  %v233_v10 = vld [vmem:[#allocation10 + $0x80] sm:$0xff]  ;;  %v12263_v37 = vmov 1966171168   ;;  %v1752_v41 = vshrl.u32 %v1751_v39, 7 }
  0x58   :  { %265 = vmatpush1.msra.mxu1 %v238_v4  ;;  %11280 = vmatpush3.msra.mxu0 %v129_v1  ;;  %v232_v11 = vld [vmem:[#allocation10 + $0x78] sm:$0xff]  ;;  %v234_v12 = vld [vmem:[#allocation10 + $0x88] sm:$0xff]  ;;  %v229_v14 = vld [vmem:[#allocation10 + $0x60] sm:$0xff]  ;;  %v1749_v38 = vunpack.c.l.s4 %v12263_v37  ;;  %vm2069_vm3 = vcmask 1040384   ;;  %vm2086_vm4 = vcmask 1041408   ;;  %vm2103_vm5 = vcmask 1042432  }
  0x59   :  { %266 = vmatprep.subr.mxu1 %v236_v7  ;;  %11282 = vmatmul.mubr.msk.f32.vlgmr.msra.gmra.mxu0 %vm131_vm0, %v128_v5  ;;  %v230_v13 = vld [vmem:[#allocation10 + $0x68] sm:$0xff]  ;;  %v231_v15 = vld [vmem:[#allocation10 + $0x70] sm:$0xff]  ;;  %v228_v18 = vld [vmem:[#allocation10 + $0x58] sm:$0xff]  ;;  %v12413_v52 = vsub.s32 0, %v1752_v41  ;;  %vm1042_vm6 = vcmask 64512   ;;  %vm3891_vm7 = vcmask 1043456  }
  0x5a   :  { %11284 = vmatprep.subr.mxu0 %v240_v6  ;;  %267 = vmatpush1.msra.mxu1 %v235_v8  ;;  %v227_v16 = vld [vmem:[#allocation10 + $0x50] sm:$0xff]  ;;  %v226_v17 = vld [vmem:[#allocation10 + $0x48] sm:$0xff]  ;;  %v224_v19 = vld [vmem:[#allocation10 + $0x38] sm:$0xff]  ;;  %v1750_v40 = vunpack.c.0.s8 %v1749_v38  ;;  %vm3740_vm8 = vcmask 27648   ;;  %vm15311_vm9 = vcmask 31744   ;;  %s12264_s30 = smov 16  }
  0x5b   :  { %11285 = vmatpush3.msra.mxu0 %v240_v6  ;;  %268 = vmatprep.subr.mxu1 %v233_v10  ;;  %v223_v20 = vld [vmem:[#allocation10 + $0x30] sm:$0xff]  ;;  %v225_v21 = vld [vmem:[#allocation10 + $0x40] sm:$0xff]  ;;  %v220_v23 = vld [vmem:[#allocation10 + $0x18] sm:$0xff]  ;;  %s12265_s3 = smov 32   ;;  %vm5168_vm10 = vcmask 1041409   ;;  %vm5171_vm11 = vcmask 1042434  }
  0x5c   :  { %11286 = vmatprep.subr.mxu0 %v237_v9  ;;  %269 = vmatpush1.msra.mxu1 %v232_v11  ;;  %v221_v22 = vld [vmem:[#allocation10 + $0x20] sm:$0xff]  ;;  %v222_v24 = vld [vmem:[#allocation10 + $0x28] sm:$0xff]  ;;  %v219_v27 = vld [vmem:[#allocation10 + $0x10] sm:$0xff]  ;;  %v12388_v42 = vsub.s32 %v1750_v40, %v1752_v41  ;;  %vm5174_vm12 = vcmask 1043459   ;;  %s12266_s11 = smov 48   ;;  %vm5177_vm13 = vcmask 1044484  }
  0x5d   :  { %11287 = vmatpush3.msra.mxu0 %v237_v9  ;;  %270 = vmatprep.subr.mxu1 %v230_v13  ;;  %v218_v25 = vld [vmem:[#allocation10 + $0x8] sm:$0xff]  ;;  %v217_v26 = vld [vmem:[#allocation10] sm:$0xff]  ;;  %v213_v30 = vld [vmem:[#allocation7] sm:$0xff]  ;;  %vm5180_vm14 = vcmask 1045509   ;;  %vm15313_vm15 = vcmask 1046534  }
  0x5e   :  { %11288 = vmatprep.subr.mxu0 %v234_v12  ;;  %271 = vmatpush1.msra.mxu1 %v229_v14  ;;  %15330 = vst [vmem:[#allocation22_spill] sm:$0xff] %v12388_v42 }
  0x5f   :  { %11289 = vmatpush3.msra.mxu0 %v234_v12  ;;  %272 = vmatprep.subr.mxu1 %v227_v16 }
  0x60   :  { %11290 = vmatprep.subr.mxu0 %v231_v15  ;;  %273 = vmatpush1.msra.mxu1 %v226_v17 }
  0x61   :  { %11291 = vmatpush3.msra.mxu0 %v231_v15  ;;  %274 = vmatprep.subr.mxu1 %v224_v19 }
  0x62   :  { %11292 = vmatprep.subr.mxu0 %v228_v18  ;;  %275 = vmatpush1.msra.mxu1 %v223_v20 }
  0x63   :  { %11293 = vmatpush3.msra.mxu0 %v228_v18  ;;  %276 = vmatprep.subr.mxu1 %v221_v22 }
  0x64   :  { %11294 = vmatprep.subr.mxu0 %v225_v21  ;;  %277 = vmatpush1.msra.mxu1 %v220_v23 }
  0x65   :  { %11295 = vmatpush3.msra.mxu0 %v225_v21  ;;  %278 = vmatprep.subr.mxu1 %v218_v25 }
  0x66   :  { %11296 = vmatprep.subr.mxu0 %v222_v24  ;;  %279 = vmatpush1.msra.mxu1 %v217_v26 }
  0x67   :  { %11297 = vmatpush3.msra.mxu0 %v222_v24  ;;  %11308 = vmatprep.subr.mxu1 %v15294_v28 }
  0x68   :  { %11298 = vmatprep.subr.mxu0 %v219_v27 }
  0x69   :  { %11299 = vmatpush3.msra.mxu0 %v219_v27 }
  0x6a   :  { %11303 = vmatprep.subr.mxu0 %v15294_v28 }
 0x119   :  { %v11283_v29 = vpop.f32.mrf.mxu0 }
 0x11a   :  { %v12363_v33 = vadd.f32 %v11283_v29, %v213_v30 }
 0x11b   :  { %v204_v31 = vpop.f32.mrf.mxu0 }
 0x11c   :  { %v12361_v32 = vadd.f32 %v213_v30, %v204_v31  ;;  %15329 = vst [vmem:[#allocation21_spill] sm:$0xff] %v12363_v33 }
 0x11e   :  { %15328 = vst [vmem:[#allocation20_spill] sm:$0xff] %v12361_v32  ;;  %10818 = vmatmul.mubr.msk.f32.vlgmr.msra.gmra.mxu1 %vm241_vm1, %v12361_v32  ;;  %11300 = vmatprep.mubr.msk.f32.mxu0 %vm241_vm1, %v12361_v32 }
 0x11f   :  { %11301 = vmatmul.mubr.msk.f32.vlgmr.msra.gmra.mxu0 %vm241_vm1, %v12363_v33  ;;  %318 = vmatprep.mubr.f32.mxu1 %v15294_v28 }
 0x120   :  { %11305 = vmatprep.mubr.msk.f32.mxu0 %vm12260_vm2, %v15294_v28 }
 0x122   :  { %10819 = vmatmul.mubr.msk.f32.gmra.mxu1 %vm241_vm1, %v12363_v33 }
 0x123   :  { %11310 = vmatprep.mubr.msk.f32.mxu1 %vm12260_vm2, %v15294_v28 }
 0x1de   :  { %v314_v34 = vpop.f32.mrf.mxu1 }
 0x1df   :  { %406 = vrot.lane.b32.xlu1 %v314_v34, %s12258_s4  ;;  %402 = vrot.lane.b32.xlu0 %v314_v34, %s12259_s8 }
 0x1e0   :  { %v12376_v35 = vpop.f32.mrf.mxu1 }
 0x1e1   :  { %v1754_v45 = vrot.slane %v12376_v35, %v12388_v42  ;;  %v1747_v59 = vcombine.high %v12376_v35, %v12376_v35 }
 0x1e2   :  { %v320_v36 = vpop.f32.mrf.mxu1 }
 0x1e3   :  { %408 = vrot.lane.b32.xlu1 %v320_v36, %s12258_s4  ;;  %404 = vrot.lane.b32.xlu0 %v320_v36, %s12259_s8  ;;  %v1762_v48 = vcombine.high %v1754_v45, %v1754_v45  ;;  %v12411_v51 = vrot.slane %v1754_v45, %v12388_v42  ;;  %v1761_v63 = vrot.slane %v1747_v59, %v12388_v42 }
 0x1e4   :  { %v12488_v7 = vpop.f32.mrf.mxu1 }
 0x1e5   :  { %v12420_v53 = vrot.slane %v1762_v48, %v12388_v42  ;;  %v1864_v56 = vrot.slane %v12411_v51, %v12413_v52  ;;  %v12443_v58 = vcombine.high %v12411_v51, %v12411_v51  ;;  %v1763_v0 = vcombine.high %v1761_v63, %v1761_v63 }
 0x1e6   :  { %v12463_v1 = vrot.slane %v1761_v63, %v12388_v42  ;;  %v1803_v10 = vrot.slane %v12488_v7, %v12388_v42  ;;  %v1796_v17 = vcombine.high %v12488_v7, %v12488_v7 }
 0x1e7   :  { %412 = vrot.lane.b32.xlu1 %v320_v36, %s12261_s29  ;;  %410 = vrot.lane.b32.xlu0 %v314_v34, %s12261_s29  ;;  %v1868_v57 = vrot.slane %v12420_v53, %v12413_v52  ;;  %v12451_v60 = vcombine.high %v12420_v53, %v12420_v53  ;;  %v1872_v61 = vrot.slane %v12443_v58, %v12413_v52 }
 0x1e8   :  { %v12468_v2 = vrot.slane %v1763_v0, %v12388_v42  ;;  %v1880_v3 = vrot.slane %v12463_v1, %v12413_v52  ;;  %v12480_v5 = vcombine.high %v12463_v1, %v12463_v1  ;;  %v12501_v11 = vrot.slane %v1803_v10, %v12388_v42 }
 0x1e9   :  { %v1876_v62 = vrot.slane %v12451_v60, %v12413_v52  ;;  %v1811_v12 = vcombine.high %v1803_v10, %v1803_v10  ;;  %v1810_v20 = vrot.slane %v1796_v17, %v12388_v42 }
 0x1ea   :  { %v1884_v4 = vrot.slane %v12468_v2, %v12413_v52  ;;  %v12486_v6 = vcombine.high %v12468_v2, %v12468_v2  ;;  %v1888_v8 = vrot.slane %v12480_v5, %v12413_v52  ;;  %v1896_v13 = vrot.slane %v12501_v11, %v12413_v52 }
 0x1eb   :  { %510 = vrot.lane.b32.xlu1 %v320_v36, %s12262_s1  ;;  %434 = vrot.lane.b32.xlu0 %v314_v34, %s12262_s1  ;;  %v12508_v14 = vrot.slane %v1811_v12, %v12388_v42  ;;  %v12518_v16 = vcombine.high %v12501_v11, %v12501_v11  ;;  %v12538_v22 = vrot.slane %v1810_v20, %v12388_v42 }
 0x1ec   :  { %v1892_v9 = vrot.slane %v12486_v6, %v12413_v52  ;;  %v1812_v23 = vcombine.high %v1810_v20, %v1810_v20 }
 0x1ed   :  { %v1900_v15 = vrot.slane %v12508_v14, %v12413_v52  ;;  %v1904_v18 = vrot.slane %v12518_v16, %v12413_v52  ;;  %v12528_v19 = vcombine.high %v12508_v14, %v12508_v14  ;;  %v1912_v24 = vrot.slane %v12538_v22, %v12413_v52 }
 0x1ee   :  { %v12545_v25 = vrot.slane %v1812_v23, %v12388_v42  ;;  %v12555_v27 = vcombine.high %v12538_v22, %v12538_v22 }
 0x1ef   :  { %v1908_v21 = vrot.slane %v12528_v19, %v12413_v52 }
 0x1f0   :  { %v1916_v26 = vrot.slane %v12545_v25, %v12413_v52  ;;  %v1920_v29 = vrot.slane %v12555_v27, %v12413_v52  ;;  %v12563_v30 = vcombine.high %v12545_v25, %v12545_v25 }
 0x1f2   :  { %v1924_v31 = vrot.slane %v12563_v30, %v12413_v52 }
 0x251   :  { %v12390_v43 = vpop.permute.xlu1 %406  ;;  %v12392_v44 = vpop.permute.xlu0 %402 }
 0x252   :  { %586 = vrot.lane.b32.xlu0 %v12392_v44, %s12262_s1 }
 0x255   :  { %v12398_v46 = vpop.permute.xlu1 %408  ;;  %v12400_v47 = vpop.permute.xlu0 %404 }
 0x256   :  { %738 = vrot.lane.b32.xlu0 %v12390_v43, %s12262_s1  ;;  %662 = vrot.lane.b32.xlu1 %v12400_v47, %s12262_s1 }
 0x259   :  { %v12406_v49 = vpop.permute.xlu1 %412  ;;  %v12408_v50 = vpop.permute.xlu0 %410 }
 0x25a   :  { %814 = vrot.lane.b32.xlu1 %v12398_v46, %s12262_s1  ;;  %890 = vrot.lane.b32.xlu0 %v12408_v50, %s12262_s1 }
 0x25d   :  { %v511_v54 = vpop.permute.xlu1 %510  ;;  %v435_v55 = vpop.permute.xlu0 %434 }
 0x25e   :  { %11309 = vmatpush3.xpose.msk.msra.mxu1 %vm131_vm0, %v511_v54  ;;  %966 = vrot.lane.b32.xlu1 %v12406_v49, %s12262_s1 }
 0x25f   :  { %1925 = vrot.lane.b32.xlu0 %v1864_v56, %s12259_s8  ;;  %11304 = vmatpush3.xpose.msk.msra.mxu0 %vm131_vm0, %v435_v55 }
 0x260   :  { %11313 = vmatprep.subr.mxu0 %v15294_v28  ;;  %11318 = vmatprep.subr.mxu1 %v15294_v28 }
 0x261   :  { %11311 = vmatmul.mubr.msk.f32.vlgmr.msra.gmra.mxu1 %vm131_vm0, %v320_v36 }
 0x262   :  { %11306 = vmatmul.mubr.msk.f32.vlgmr.msra.gmra.mxu0 %vm131_vm0, %v314_v34  ;;  %1927 = vrot.lane.b32.xlu1 %v1868_v57, %s12259_s8  ;;  %v12569_v34 = vpop.f32.mrf.mxu0 }
 0x263   :  { %1973 = vrot.lane.b32.xlu0 %v1864_v56, %s12258_s4  ;;  %11315 = vmatprep.mubr.msk.f32.mxu0 %vm12260_vm2, %v15294_v28  ;;  %v2178_v17 = vrot.slane %v12569_v34, %v12388_v42 }
 0x264   :  { %11320 = vmatprep.mubr.msk.f32.mxu1 %vm12260_vm2, %v15294_v28  ;;  %v391_v36 = vpop.f32.mrf.mxu0 }
 0x265   :  { %v2129_v37 = vrot.slane %v391_v36, %v12388_v42 }
 0x266   :  { %1975 = vrot.lane.b32.xlu1 %v1868_v57, %s12258_s4 }
 0x267   :  { %2021 = vrot.lane.b32.xlu0 %v1864_v56, %s12261_s29  ;;  %v2137_v38 = vcombine.high %v2129_v37, %v2129_v37  ;;  %v12580_v39 = vrot.slane %v2129_v37, %v12388_v42 }
 0x269   :  { %v12587_v41 = vrot.slane %v2137_v38, %v12388_v42  ;;  %v2239_v45 = vrot.slane %v12580_v39, %v12413_v52  ;;  %v12633_v59 = vcombine.high %v12580_v39, %v12580_v39 }
 0x26a   :  { %2023 = vrot.lane.b32.xlu1 %v1868_v57, %s12261_s29 }
 0x26b   :  { %1929 = vrot.lane.b32.xlu0 %v1872_v61, %s12259_s8  ;;  %v2243_v55 = vrot.slane %v12587_v41, %v12413_v52 }
 0x26e   :  { %1931 = vrot.lane.b32.xlu1 %v1876_v62, %s12259_s8 }
 0x26f   :  { %1977 = vrot.lane.b32.xlu0 %v1872_v61, %s12258_s4 }
 0x272   :  { %1979 = vrot.lane.b32.xlu1 %v1876_v62, %s12258_s4 }
 0x273   :  { %2025 = vrot.lane.b32.xlu0 %v1872_v61, %s12261_s29 }
 0x276   :  { %2027 = vrot.lane.b32.xlu1 %v1876_v62, %s12261_s29  ;;  %v2247_v62 = vrot.slane %v12633_v59, %v12413_v52 }
 0x277   :  { %1933 = vrot.lane.b32.xlu0 %v1880_v3, %s12259_s8 }
 0x27a   :  { %1935 = vrot.lane.b32.xlu1 %v1884_v4, %s12259_s8 }
 0x27b   :  { %1981 = vrot.lane.b32.xlu0 %v1880_v3, %s12258_s4 }
 0x27e   :  { %1983 = vrot.lane.b32.xlu1 %v1884_v4, %s12258_s4 }
 0x27f   :  { %2029 = vrot.lane.b32.xlu0 %v1880_v3, %s12261_s29 }
 0x282   :  { %2031 = vrot.lane.b32.xlu1 %v1884_v4, %s12261_s29 }
 0x283   :  { %1937 = vrot.lane.b32.xlu0 %v1888_v8, %s12259_s8 }
 0x286   :  { %1939 = vrot.lane.b32.xlu1 %v1892_v9, %s12259_s8 }
 0x287   :  { %1985 = vrot.lane.b32.xlu0 %v1888_v8, %s12258_s4 }
 0x28a   :  { %1987 = vrot.lane.b32.xlu1 %v1892_v9, %s12258_s4 }
 0x28b   :  { %2033 = vrot.lane.b32.xlu0 %v1888_v8, %s12261_s29 }
 0x28e   :  { %1941 = vrot.lane.b32.xlu1 %v1896_v13, %s12259_s8 }
 0x28f   :  { %2035 = vrot.lane.b32.xlu0 %v1892_v9, %s12261_s29 }
 0x292   :  { %1989 = vrot.lane.b32.xlu1 %v1896_v13, %s12258_s4 }
 0x293   :  { %1943 = vrot.lane.b32.xlu0 %v1900_v15, %s12259_s8 }
 0x296   :  { %1991 = vrot.lane.b32.xlu1 %v1900_v15, %s12258_s4 }
 0x297   :  { %2037 = vrot.lane.b32.xlu0 %v1896_v13, %s12261_s29 }
 0x29a   :  { %1945 = vrot.lane.b32.xlu1 %v1904_v18, %s12259_s8 }
 0x29b   :  { %2039 = vrot.lane.b32.xlu0 %v1900_v15, %s12261_s29 }
 0x29e   :  { %1993 = vrot.lane.b32.xlu1 %v1904_v18, %s12258_s4 }
 0x29f   :  { %1947 = vrot.lane.b32.xlu0 %v1908_v21, %s12259_s8 }
 0x2a2   :  { %1995 = vrot.lane.b32.xlu1 %v1908_v21, %s12258_s4 }
 0x2a3   :  { %2041 = vrot.lane.b32.xlu0 %v1904_v18, %s12261_s29 }
 0x2a6   :  { %1949 = vrot.lane.b32.xlu1 %v1912_v24, %s12259_s8 }
 0x2a7   :  { %2043 = vrot.lane.b32.xlu0 %v1908_v21, %s12261_s29 }
 0x2aa   :  { %1997 = vrot.lane.b32.xlu1 %v1912_v24, %s12258_s4 }
 0x2ab   :  { %1951 = vrot.lane.b32.xlu0 %v1916_v26, %s12259_s8 }
 0x2ae   :  { %1999 = vrot.lane.b32.xlu1 %v1916_v26, %s12258_s4 }
 0x2af   :  { %2045 = vrot.lane.b32.xlu0 %v1912_v24, %s12261_s29  ;;  %v2186_v24 = vcombine.high %v2178_v17, %v2178_v17 }
 0x2b2   :  { %1953 = vrot.lane.b32.xlu1 %v1920_v29, %s12259_s8 }
 0x2b3   :  { %2047 = vrot.lane.b32.xlu0 %v1916_v26, %s12261_s29 }
 0x2b6   :  { %2001 = vrot.lane.b32.xlu1 %v1920_v29, %s12258_s4 }
 0x2b7   :  { %1955 = vrot.lane.b32.xlu0 %v1924_v31, %s12259_s8 }
 0x2ba   :  { %2003 = vrot.lane.b32.xlu1 %v1924_v31, %s12258_s4 }
 0x2bb   :  { %2049 = vrot.lane.b32.xlu0 %v1920_v29, %s12261_s29 }
 0x2be   :  { %2051 = vrot.lane.b32.xlu1 %v1924_v31, %s12261_s29 }
 0x2bf   :  { %416 = vrot.lane.b32.xlu0 %v12376_v35, %s12259_s8 }
 0x2c2   :  { %418 = vrot.lane.b32.xlu1 %v12488_v7, %s12259_s8 }
 0x2c3   :  { %422 = vrot.lane.b32.xlu0 %v12376_v35, %s12258_s4 }
 0x2c4   :  { %v587_v40 = vpop.permute.xlu0 %586 }
 0x2c5   :  { %11314 = vmatpush3.xpose.msk.msra.mxu0 %vm131_vm0, %v587_v40 }
 0x2c6   :  { %424 = vrot.lane.b32.xlu1 %v12488_v7, %s12258_s4  ;;  %11323 = vmatprep.subr.mxu0 %v15294_v28 }
 0x2c7   :  { %2300 = vrot.lane.b32.xlu0 %v2239_v45, %s12259_s8 }
 0x2c8   :  { %v663_v48 = vpop.permute.xlu1 %662  ;;  %11316 = vmatmul.mubr.msk.f32.vlgmr.msra.gmra.mxu0 %vm131_vm0, %v12392_v44  ;;  %v739_v54 = vpop.permute.xlu0 %738 }
 0x2c9   :  { %11319 = vmatpush3.xpose.msk.msra.mxu1 %vm131_vm0, %v663_v48  ;;  %11324 = vmatpush3.xpose.msk.msra.mxu0 %vm131_vm0, %v739_v54 }
 0x2ca   :  { %428 = vrot.lane.b32.xlu1 %v12376_v35, %s12261_s29  ;;  %11325 = vmatprep.mubr.msk.f32.mxu0 %vm12260_vm2, %v15294_v28 }
 0x2cb   :  { %2302 = vrot.lane.b32.xlu0 %v2243_v55, %s12259_s8  ;;  %11328 = vmatprep.subr.mxu1 %v15294_v28 }
 0x2cc   :  { %11321 = vmatmul.mubr.msk.f32.vlgmr.msra.gmra.mxu1 %vm131_vm0, %v12400_v47  ;;  %v815_v44 = vpop.permute.xlu1 %814  ;;  %11326 = vmatmul.mubr.msk.f32.vlgmr.msra.gmra.mxu0 %vm131_vm0, %v12390_v43  ;;  %v891_v56 = vpop.permute.xlu0 %890  ;;  %v2122_v47 = vcombine.high %v391_v36, %v391_v36  ;;  %v12712_v36 = vrot.slane %v2186_v24, %v12388_v42 }
 0x2cd   :  { %11333 = vmatprep.subr.mxu0 %v15294_v28  ;;  %11329 = vmatpush3.xpose.msk.msra.mxu1 %vm131_vm0, %v815_v44 }
 0x2ce   :  { %11334 = vmatpush3.xpose.msk.msra.mxu0 %vm131_vm0, %v891_v56  ;;  %2348 = vrot.lane.b32.xlu1 %v2239_v45, %s12258_s4  ;;  %15332 = vst [vmem:[#allocation24_spill] sm:$0xff] %v12712_v36  ;;  %v12730_v44 = vcombine.high %v12712_v36, %v12712_v36 }
 0x2cf   :  { %430 = vrot.lane.b32.xlu0 %v12488_v7, %s12261_s29  ;;  %11330 = vmatprep.mubr.msk.f32.mxu1 %vm12260_vm2, %v15294_v28 }
 0x2d0   :  { %11335 = vmatprep.mubr.msk.f32.mxu0 %vm12260_vm2, %v15294_v28  ;;  %11331 = vmatmul.mubr.msk.f32.vlgmr.msra.gmra.mxu1 %vm131_vm0, %v12398_v46  ;;  %v967_v43 = vpop.permute.xlu1 %966  ;;  %15334 = vst [vmem:[#allocation26_spill] sm:$0xff] %v12730_v44 }
 0x2d1   :  { %11338 = vmatprep.subr.mxu1 %v15294_v28  ;;  %11336 = vmatmul.mubr.msk.f32.vlgmr.msra.gmra.mxu0 %vm131_vm0, %v12408_v50  ;;  %v12627_v57 = vpop.permute.xlu0 %1925  ;;  %v2136_v50 = vrot.slane %v2122_v47, %v12388_v42 }
 0x2d2   :  { %11343 = vmatprep.subr.mxu0 %v15294_v28  ;;  %11339 = vmatpush3.xpose.msk.msra.mxu1 %vm131_vm0, %v967_v43 }
 0x2d3   :  { %11344 = vmatpush3.msra.mxu0 %v12376_v35  ;;  %2350 = vrot.lane.b32.xlu1 %v2243_v55, %s12258_s4  ;;  %v12650_v35 = vcombine.high %v12587_v41, %v12587_v41  ;;  %v2138_v63 = vcombine.high %v2136_v50, %v2136_v50  ;;  %v12687_v13 = vrot.slane %v2136_v50, %v12388_v42 }
 0x2d4   :  { %2396 = vrot.lane.b32.xlu0 %v2239_v45, %s12261_s29  ;;  %11340 = vmatprep.mubr.msk.f32.mxu1 %vm12260_vm2, %v15294_v28  ;;  %v12640_v46 = vpop.permute.xlu1 %1927  ;;  %v2275_v45 = vrot.slane %v12712_v36, %v12413_v52  ;;  %v12740_v50 = vrot.slane %v12730_v44, %v12413_v52 }
 0x2d5   :  { %11341 = vmatmul.mubr.msk.f32.vlgmr.msra.gmra.mxu1 %vm131_vm0, %v12406_v49  ;;  %11348 = vmatprep.subr.mxu1 %v15294_v28  ;;  %v12646_v61 = vpop.permute.xlu0 %1973  ;;  %v2251_v3 = vrot.slane %v12650_v35, %v12413_v52  ;;  %v2255_v21 = vrot.slane %v12687_v13, %v12413_v52  ;;  %v12722_v48 = vcombine.high %v12687_v13, %v12687_v13 }
 0x2d6   :  { %11349 = vmatpush3.msra.mxu1 %v12488_v7  ;;  %11350 = vmatprep.mubr.msk.f32.mxu1 %vm12260_vm2, %v15294_v28  ;;  %v12674_v7 = vrot.slane %v2138_v63, %v12388_v42 }
 0x2d7   :  { %2398 = vrot.lane.b32.xlu1 %v2243_v55, %s12261_s29  ;;  %11358 = vmatprep.subr.mxu1 %v15294_v28  ;;  %15333 = vst [vmem:[#allocation25_spill] sm:$0xff] %v12722_v48  ;;  %v2263_v56 = vrot.slane %v12722_v48, %v12413_v52 }
 0x2d8   :  { %2304 = vrot.lane.b32.xlu0 %v2247_v62, %s12259_s8  ;;  %v12660_v49 = vpop.permute.xlu1 %1975  ;;  %11345 = vmatprep.mubr.msk.f32.mxu0 %vm12260_vm2, %v15294_v28  ;;  %v2259_v12 = vrot.slane %v12674_v7, %v12413_v52  ;;  %v12697_v20 = vcombine.high %v12674_v7, %v12674_v7 }
 0x2d9   :  { %v12664_v0 = vpop.permute.xlu0 %2021  ;;  %11353 = vmatprep.subr.mxu0 %v15294_v28  ;;  %v12758_v28 = vrot.slane %v2178_v17, %v12388_v42 }
 0x2da   :  { %15331 = vst [vmem:[#allocation23_spill] sm:$0xff] %v12697_v20  ;;  %v2267_v29 = vrot.slane %v12697_v20, %v12413_v52 }
 0x2db   :  { %2306 = vrot.lane.b32.xlu1 %v2251_v3, %s12259_s8  ;;  %15335 = vst [vmem:[#allocation27_spill] sm:$0xff] %v12758_v28 }
 0x2dc   :  { %2352 = vrot.lane.b32.xlu0 %v2247_v62, %s12258_s4  ;;  %v12671_v4 = vpop.permute.xlu1 %2023 }
 0x2dd   :  { %v12676_v8 = vpop.permute.xlu0 %1929 }
 0x2df   :  { %2354 = vrot.lane.b32.xlu1 %v2251_v3, %s12258_s4 }
 0x2e0   :  { %2400 = vrot.lane.b32.xlu0 %v2247_v62, %s12261_s29  ;;  %v12680_v9 = vpop.permute.xlu1 %1931 }
 0x2e1   :  { %v12682_v10 = vpop.permute.xlu0 %1977 }
 0x2e3   :  { %2310 = vrot.lane.b32.xlu1 %v2259_v12, %s12259_s8 }
 0x2e4   :  { %2402 = vrot.lane.b32.xlu0 %v2251_v3, %s12261_s29  ;;  %v12691_v15 = vpop.permute.xlu1 %1979  ;;  %v2070_v3 = vsel %vm2069_vm3, %v12411_v51, %v12627_v57  ;;  %v2071_v51 = vsel %vm2069_vm3, %v12420_v53, %v12640_v46 }
 0x2e5   :  { %v2026_v18 = vpop.permute.xlu0 %2025 }
 0x2e7   :  { %2358 = vrot.lane.b32.xlu1 %v2259_v12, %s12258_s4 }
 0x2e8   :  { %2308 = vrot.lane.b32.xlu0 %v2255_v21, %s12259_s8  ;;  %v12703_v23 = vpop.permute.xlu1 %2027 }
 0x2e9   :  { %v1934_v26 = vpop.permute.xlu0 %1933 }
 0x2eb   :  { %2314 = vrot.lane.b32.xlu1 %v2267_v29, %s12259_s8 }
 0x2ec   :  { %2356 = vrot.lane.b32.xlu0 %v2255_v21, %s12258_s4  ;;  %v12709_v31 = vpop.permute.xlu1 %1935 }
 0x2ed   :  { %v1982_v37 = vpop.permute.xlu0 %1981 }
 0x2ef   :  { %2362 = vrot.lane.b32.xlu1 %v2267_v29, %s12258_s4 }
 0x2f0   :  { %2404 = vrot.lane.b32.xlu0 %v2255_v21, %s12261_s29  ;;  %v12716_v38 = vpop.permute.xlu1 %1983  ;;  %v2087_v21 = vsel %vm2086_vm4, %v2070_v3, %v12646_v61  ;;  %v2088_v61 = vsel %vm2086_vm4, %v2071_v51, %v12660_v49  ;;  %v2271_v3 = vrot.slane %v12758_v28, %v12413_v52 }
 0x2f1   :  { %v2030_v40 = vpop.permute.xlu0 %2029  ;;  %v2104_v33 = vsel %vm2103_vm5, %v2087_v21, %v12664_v0  ;;  %v2105_v17 = vsel %vm2103_vm5, %v2088_v61, %v12671_v4  ;;  %v2074_v4 = vsel %vm2069_vm3, %v12463_v1, %v1934_v26 }
 0x2f3   :  { %2318 = vrot.lane.b32.xlu1 %v2275_v45, %s12259_s8 }
 0x2f4   :  { %2406 = vrot.lane.b32.xlu0 %v2259_v12, %s12261_s29  ;;  %v2032_v54 = vpop.permute.xlu1 %2031 }
 0x2f5   :  { %v12726_v55 = vpop.permute.xlu0 %1937 }
 0x2f7   :  { %2366 = vrot.lane.b32.xlu1 %v2275_v45, %s12258_s4 }
 0x2f8   :  { %2312 = vrot.lane.b32.xlu0 %v2263_v56, %s12259_s8  ;;  %v12736_v43 = vpop.permute.xlu1 %1939 }
 0x2f9   :  { %v1986_v47 = vpop.permute.xlu0 %1985 }
 0x2fb   :  { %2322 = vrot.lane.b32.xlu1 %v12740_v50, %s12259_s8 }
 0x2fc   :  { %2360 = vrot.lane.b32.xlu0 %v2263_v56, %s12258_s4  ;;  %v12745_v62 = vpop.permute.xlu1 %1987 }
 0x2fd   :  { %v2034_v63 = vpop.permute.xlu0 %2033 }
 0x2ff   :  { %2370 = vrot.lane.b32.xlu1 %v12740_v50, %s12258_s4 }
 0x300   :  { %2408 = vrot.lane.b32.xlu0 %v2263_v56, %s12261_s29  ;;  %v1942_v12 = vpop.permute.xlu1 %1941 }
 0x301   :  { %v12755_v24 = vpop.permute.xlu0 %2035 }
 0x303   :  { %2493 = vrot.lane.b32.xlu1 %v2104_v33, %s12262_s1  ;;  %v2072_v33 = vsel %vm2069_vm3, %v12443_v58, %v12676_v8  ;;  %v2091_v58 = vsel %vm2086_vm4, %v2074_v4, %v1982_v37  ;;  %v12802_v37 = vcombine.high %v12758_v28, %v12758_v28 }
 0x304   :  { %2410 = vrot.lane.b32.xlu0 %v2267_v29, %s12261_s29  ;;  %v1990_v57 = vpop.permute.xlu1 %1989  ;;  %v2089_v46 = vsel %vm2086_vm4, %v2072_v33, %v12682_v10  ;;  %v2108_v21 = vsel %vm2103_vm5, %v2091_v58, %v2030_v40  ;;  %v2073_v10 = vsel %vm2069_vm3, %v12451_v60, %v12680_v9  ;;  %v2075_v60 = vsel %vm2069_vm3, %v12468_v2, %v12709_v31 }
 0x305   :  { %v1944_v56 = vpop.permute.xlu0 %1943  ;;  %v2106_v0 = vsel %vm2103_vm5, %v2089_v46, %v2026_v18  ;;  %v2090_v1 = vsel %vm2086_vm4, %v2073_v10, %v12691_v15  ;;  %15336 = vst [vmem:[#allocation28_spill] sm:$0xff] %v12802_v37  ;;  %v2092_v15 = vsel %vm2086_vm4, %v2075_v60, %v12716_v38  ;;  %v2076_v2 = vsel %vm2069_vm3, %v12480_v5, %v12726_v55  ;;  %v12882_v60 = vld [vmem:[#allocation8] sm:$0xff] }
 0x306   :  { %v2107_v40 = vsel %vm2103_vm5, %v2090_v1, %v12703_v23  ;;  %v2109_v61 = vsel %vm2103_vm5, %v2092_v15, %v2032_v54  ;;  %v2279_v23 = vrot.slane %v12802_v37, %v12413_v52  ;;  %v2078_v54 = vsel %vm2069_vm3, %v12501_v11, %v1942_v12 }
 0x307   :  { %2571 = vrot.lane.b32.xlu1 %v2105_v17, %s12262_s1  ;;  %v2095_v5 = vsel %vm2086_vm4, %v2078_v54, %v1990_v57 }
 0x308   :  { %2316 = vrot.lane.b32.xlu0 %v2271_v3, %s12259_s8  ;;  %v1992_v53 = vpop.permute.xlu1 %1991 }
 0x309   :  { %v2038_v49 = vpop.permute.xlu0 %2037 }
 0x30a   :  { %v2112_v33 = vsel %vm2103_vm5, %v2095_v5, %v2038_v49 }
 0x30b   :  { %2649 = vrot.lane.b32.xlu1 %v2106_v0, %s12262_s1 }
 0x30c   :  { %2364 = vrot.lane.b32.xlu0 %v2271_v3, %s12258_s4  ;;  %v12785_v29 = vpop.permute.xlu1 %1945 }
 0x30d   :  { %v2040_v8 = vpop.permute.xlu0 %2039 }
 0x30f   :  { %2805 = vrot.lane.b32.xlu1 %v2108_v21, %s12262_s1 }
 0x310   :  { %2412 = vrot.lane.b32.xlu0 %v2271_v3, %s12261_s29  ;;  %v12794_v18 = vpop.permute.xlu1 %1993 }
 0x311   :  { %v12798_v26 = vpop.permute.xlu0 %1947 }
 0x313   :  { %2727 = vrot.lane.b32.xlu1 %v2107_v40, %s12262_s1 }
 0x314   :  { %2414 = vrot.lane.b32.xlu0 %v2275_v45, %s12261_s29  ;;  %v12811_v9 = vpop.permute.xlu1 %1995  ;;  %v2093_v45 = vsel %vm2086_vm4, %v2076_v2, %v1986_v47  ;;  %v2077_v47 = vsel %vm2069_vm3, %v12486_v6, %v12736_v43  ;;  %v2079_v6 = vsel %vm2069_vm3, %v12508_v14, %v1944_v56 }
 0x315   :  { %v12815_v51 = vpop.permute.xlu0 %2041  ;;  %v2110_v17 = vsel %vm2103_vm5, %v2093_v45, %v2034_v63  ;;  %v2094_v11 = vsel %vm2086_vm4, %v2077_v47, %v12745_v62  ;;  %v2096_v62 = vsel %vm2086_vm4, %v2079_v6, %v1992_v53 }
 0x316   :  { %v2111_v46 = vsel %vm2103_vm5, %v2094_v11, %v12755_v24  ;;  %v2113_v21 = vsel %vm2103_vm5, %v2096_v62, %v2040_v8 }
 0x317   :  { %2883 = vrot.lane.b32.xlu1 %v2109_v61, %s12262_s1 }
 0x318   :  { %2320 = vrot.lane.b32.xlu0 %v2279_v23, %s12259_s8  ;;  %v12825_v31 = vpop.permute.xlu1 %1949 }
 0x319   :  { %v12828_v38 = vpop.permute.xlu0 %2043 }
 0x31b   :  { %2961 = vrot.lane.b32.xlu1 %v2110_v17, %s12262_s1 }
 0x31c   :  { %2368 = vrot.lane.b32.xlu0 %v2279_v23, %s12258_s4  ;;  %v12835_v3 = vpop.permute.xlu1 %1997 }
 0x31d   :  { %v12838_v55 = vpop.permute.xlu0 %1951 }
 0x31f   :  { %3117 = vrot.lane.b32.xlu1 %v2112_v33, %s12262_s1 }
 0x320   :  { %2416 = vrot.lane.b32.xlu0 %v2279_v23, %s12261_s29  ;;  %v12846_v63 = vpop.permute.xlu1 %1999 }
 0x321   :  { %v12850_v12 = vpop.permute.xlu0 %2045  ;;  %v582_v57 = vpop.f32.mrf.mxu1 }
 0x322   :  { %v506_v49 = vpop.f32.mrf.mxu0  ;;  %v12887_v15 = vadd.f32 %v582_v57, %v12882_v60 }
 0x323   :  { %3039 = vrot.lane.b32.xlu1 %v2111_v46, %s12262_s1  ;;  %v11312_v0 = vpop.f32.mrf.mxu1  ;;  %v12896_v45 = vadd.f32 %v506_v49, %v12882_v60 }
 0x324   :  { %2418 = vrot.lane.b32.xlu0 %v12740_v50, %s12261_s29  ;;  %v11307_v43 = vpop.f32.mrf.mxu0  ;;  %v12859_v4 = vpop.permute.xlu1 %1953  ;;  %v1046_v23 = vsel %vm1042_vm6, %v12887_v15, -inf }
 0x325   :  { %v12862_v58 = vpop.permute.xlu0 %2047  ;;  %15341 = vst [vmem:[#allocation33_spill] sm:$0xff] %v12896_v45  ;;  %v1043_v5 = vsel %vm1042_vm6, %v12896_v45, -inf }
 0x327   :  { %3195 = vrot.lane.b32.xlu1 %v2113_v21, %s12262_s1 }
 0x328   :  { %v12866_v24 = vpop.permute.xlu1 %2001 }
 0x329   :  { %v12868_v10 = vpop.permute.xlu0 %1955 }
 0x32c   :  { %v12872_v14 = vpop.permute.xlu1 %2003 }
 0x32d   :  { %v12870_v1 = vpop.permute.xlu0 %2049 }
 0x330   :  { %v12876_v56 = vpop.permute.xlu1 %2051 }
 0x331   :  { %v12874_v50 = vpop.permute.xlu0 %416 }
 0x332   :  { %15337 = vst [vmem:[#allocation29_spill] sm:$0xff] %v12874_v50 }
 0x334   :  { %v12880_v53 = vpop.permute.xlu1 %418 }
 0x335   :  { %v12878_v40 = vpop.permute.xlu0 %422  ;;  %15339 = vst [vmem:[#allocation31_spill] sm:$0xff] %v12880_v53 }
 0x336   :  { %15338 = vst [vmem:[#allocation30_spill] sm:$0xff] %v12878_v40 }
 0x338   :  { %v12889_v61 = vpop.permute.xlu1 %424 }
 0x339   :  { %v12884_v8 = vpop.permute.xlu0 %2300  ;;  %15340 = vst [vmem:[#allocation32_spill] sm:$0xff] %v12889_v61 }
 0x33c   :  { %v12898_v17 = vpop.permute.xlu1 %428 }
 0x33d   :  { %v12893_v2 = vpop.permute.xlu0 %2302  ;;  %15342 = vst [vmem:[#allocation34_spill] sm:$0xff] %v12898_v17 }
 0x340   :  { %v12904_v33 = vpop.permute.xlu1 %2348 }
 0x341   :  { %v12900_v54 = vpop.permute.xlu0 %430 }
 0x342   :  { %15343 = vst [vmem:[#allocation35_spill] sm:$0xff] %v12900_v54 }
 0x343   :  { %1047 = vmax.xlane.f32.xlu0 %v1046_v23 }
 0x345   :  { %v12908_v11 = vpop.permute.xlu1 %2350 }
 0x346   :  { %v12906_v47 = vpop.permute.xlu0 %2396 }
 0x349   :  { %v12912_v46 = vpop.permute.xlu1 %2398 }
 0x34a   :  { %v12910_v57 = vpop.permute.xlu0 %2304 }
 0x34b   :  { %1044 = vmax.xlane.f32.xlu1 %v1043_v5 }
 0x34d   :  { %v12916_v0 = vpop.permute.xlu1 %2306 }
 0x34e   :  { %v12914_v49 = vpop.permute.xlu0 %2352 }
 0x351   :  { %v12920_v43 = vpop.permute.xlu1 %2354 }
 0x352   :  { %v12918_v6 = vpop.permute.xlu0 %2400 }
 0x355   :  { %v12924_v21 = vpop.permute.xlu1 %2310 }
 0x356   :  { %v12922_v62 = vpop.permute.xlu0 %2402 }
 0x359   :  { %v12928_v5 = vpop.permute.xlu1 %2358 }
 0x35a   :  { %v12926_v23 = vpop.permute.xlu0 %2308 }
 0x35d   :  { %v12932_v54 = vpop.permute.xlu1 %2314 }
 0x35e   :  { %v12930_v32 = vpop.permute.xlu0 %2356  ;;  %15344 = vst [vmem:[#allocation36_spill] sm:$0xff] %v12932_v54 }
 0x361   :  { %v12936_v17 = vpop.permute.xlu1 %2362 }
 0x362   :  { %v12934_v61 = vpop.permute.xlu0 %2404  ;;  %15346 = vst [vmem:[#allocation38_spill] sm:$0xff] %v12936_v17 }
 0x363   :  { %15345 = vst [vmem:[#allocation37_spill] sm:$0xff] %v12934_v61 }
 0x365   :  { %v12940_v50 = vpop.permute.xlu1 %2318 }
 0x366   :  { %v12938_v40 = vpop.permute.xlu0 %2406  ;;  %15347 = vst [vmem:[#allocation39_spill] sm:$0xff] %v12940_v50 }
 0x369   :  { %v12944_v37 = vpop.permute.xlu1 %2366 }
 0x36a   :  { %v12942_v53 = vpop.permute.xlu0 %2312  ;;  %15349 = vst [vmem:[#allocation41_spill] sm:$0xff] %v12944_v37 }
 0x36b   :  { %15348 = vst [vmem:[#allocation40_spill] sm:$0xff] %v12942_v53 }
 0x36d   :  { %v12959_v37 = vpop.permute.xlu1 %2322 }
 0x36e   :  { %v12949_v48 = vpop.permute.xlu0 %2360  ;;  %15354 = vst [vmem:[#allocation46_spill] sm:$0xff] %v12959_v37 }
 0x36f   :  { %15351 = vst [vmem:[#allocation43_spill] sm:$0xff] %v12949_v48 }
 0x372   :  { %v12968_v45 = vpop.permute.xlu0 %2408 }
 0x373   :  { %15356 = vst [vmem:[#allocation48_spill] sm:$0xff] %v12968_v45 }
 0x388   :  { %v658_v44 = vpop.f32.mrf.mxu0 }
 0x389   :  { %v12947_v28 = vadd.f32 %v658_v44, %v12882_v60 }
 0x38a   :  { %v11317_v36 = vpop.f32.mrf.mxu0 }
 0x38b   :  { %15350 = vst [vmem:[#allocation42_spill] sm:$0xff] %v12947_v28  ;;  %v1049_v20 = vsel %vm1042_vm6, %v12947_v28, -inf }
 0x38c   :  { %v810_v54 = vpop.f32.mrf.mxu0  ;;  %1050 = vmax.xlane.f32.xlu1 %v1049_v20  ;;  %v734_v17 = vpop.f32.mrf.mxu1 }
 0x38d   :  { %v12954_v61 = vadd.f32 %v810_v54, %v12882_v60  ;;  %v12957_v50 = vadd.f32 %v734_v17, %v12882_v60 }
 0x38e   :  { %v11322_v53 = vpop.f32.mrf.mxu1  ;;  %v11327_v44 = vpop.f32.mrf.mxu0 }
 0x38f   :  { %15352 = vst [vmem:[#allocation44_spill] sm:$0xff] %v12954_v61  ;;  %15353 = vst [vmem:[#allocation45_spill] sm:$0xff] %v12957_v50  ;;  %v1055_v36 = vsel %vm1042_vm6, %v12954_v61, -inf  ;;  %v1052_v48 = vsel %vm1042_vm6, %v12957_v50, -inf  ;;  %v2171_v50 = vcombine.high %v12569_v34, %v12569_v34 }
 0x390   :  { %1056 = vmax.xlane.f32.xlu1 %v1055_v36  ;;  %1053 = vmax.xlane.f32.xlu0 %v1052_v48  ;;  %v886_v20 = vpop.f32.mrf.mxu1  ;;  %v12977_v36 = vpop.permute.xlu1 %2370 }
 0x391   :  { %v962_v28 = vpop.f32.mrf.mxu0  ;;  %v12966_v54 = vadd.f32 %v886_v20, %v12882_v60  ;;  %15357 = vst [vmem:[#allocation49_spill] sm:$0xff] %v12977_v36 }
 0x392   :  { %v12971_v17 = vadd.f32 %v962_v28, %v12882_v60  ;;  %v11332_v53 = vpop.f32.mrf.mxu1 }
 0x393   :  { %15355 = vst [vmem:[#allocation47_spill] sm:$0xff] %v12966_v54  ;;  %v11337_v44 = vpop.f32.mrf.mxu0  ;;  %v1058_v61 = vsel %vm1042_vm6, %v12966_v54, -inf  ;;  %v2185_v53 = vrot.slane %v2171_v50, %v12388_v42 }
 0x394   :  { %v1061_v48 = vsel %vm1042_vm6, %v12971_v17, -inf  ;;  %1059 = vmax.xlane.f32.xlu0 %v1058_v61  ;;  %v12985_v44 = vpop.permute.xlu0 %2410  ;;  %v12989_v34 = vpop.permute.xlu1 %2493 }
 0x395   :  { %1062 = vmax.xlane.f32.xlu1 %v1061_v48  ;;  %v1038_v20 = vpop.f32.mrf.mxu1  ;;  %15358 = vst [vmem:[#allocation50_spill] sm:$0xff] %v12989_v34  ;;  %v2187_v36 = vcombine.high %v2185_v53, %v2185_v53 }
 0x396   :  { %v12982_v37 = vadd.f32 %v1038_v20, %v12882_v60 }
 0x397   :  { %v11342_v28 = vpop.f32.mrf.mxu1  ;;  %v12994_v61 = vrot.slane %v2187_v36, %v12388_v42  ;;  %v2080_v36 = vsel %vm2069_vm3, %v12518_v16, %v12785_v29 }
 0x398   :  { %v1064_v54 = vsel %vm1042_vm6, %v12982_v37, -inf  ;;  %v12991_v45 = vpop.permute.xlu0 %2316  ;;  %v12996_v48 = vpop.permute.xlu1 %2571 }
 0x399   :  { %1065 = vmax.xlane.f32.xlu0 %v1064_v54  ;;  %15359 = vst [vmem:[#allocation51_spill] sm:$0xff] %v12996_v48  ;;  %v2291_v50 = vrot.slane %v12994_v61, %v12413_v52  ;;  %v13006_v54 = vrot.slane %v2185_v53, %v12388_v42  ;;  %v2097_v48 = vsel %vm2086_vm4, %v2080_v36, %v12794_v18 }
 0x39a   :  { %v2081_v42 = vsel %vm2069_vm3, %v12528_v19, %v12798_v26  ;;  %v13033_v18 = vcombine.high %v12994_v61, %v12994_v61 }
 0x39b   :  { %v2287_v53 = vrot.slane %v13006_v54, %v12413_v52  ;;  %v2098_v16 = vsel %vm2086_vm4, %v2081_v42, %v12811_v9  ;;  %v13051_v9 = vcombine.high %v13006_v54, %v13006_v54 }
 0x39c   :  { %v12998_v60 = vpop.permute.xlu0 %2364  ;;  %v13002_v20 = vpop.permute.xlu1 %2649  ;;  %v2299_v19 = vrot.slane %v13033_v18, %v12413_v52 }
 0x39d   :  { %15360 = vst [vmem:[#allocation52_spill] sm:$0xff] %v13002_v20  ;;  %v2114_v20 = vsel %vm2103_vm5, %v2097_v48, %v12815_v51  ;;  %v2115_v51 = vsel %vm2103_vm5, %v2098_v16, %v12828_v38  ;;  %v2082_v38 = vsel %vm2069_vm3, %v12538_v22, %v12825_v31  ;;  %v2295_v16 = vrot.slane %v13051_v9, %v12413_v52 }
 0x39e   :  { %v2083_v22 = vsel %vm2069_vm3, %v12545_v25, %v12838_v55 }
 0x39f   :  { %v2100_v31 = vsel %vm2086_vm4, %v2083_v22, %v12846_v63  ;;  %v15367_v22 = vld [vmem:[#allocation25_spill] sm:$0xff] }
 0x3a0   :  { %v13008_v28 = vpop.permute.xlu0 %2412  ;;  %v13016_v34 = vpop.permute.xlu1 %2805 }
 0x3a4   :  { %v13029_v29 = vpop.permute.xlu0 %2414  ;;  %v13037_v48 = vpop.permute.xlu1 %2727 }
 0x3a6   :  { %2326 = vrot.lane.b32.xlu1 %v2291_v50, %s12259_s8 }
 0x3a8   :  { %v13043_v26 = vpop.permute.xlu0 %2320  ;;  %v13047_v42 = vpop.permute.xlu1 %2883 }
 0x3aa   :  { %2374 = vrot.lane.b32.xlu1 %v2291_v50, %s12258_s4 }
 0x3ac   :  { %v13060_v36 = vpop.permute.xlu0 %2368 }
 0x3ae   :  { %3273 = vrot.lane.b32.xlu1 %v2114_v20, %s12262_s1  ;;  %v2099_v20 = vsel %vm2086_vm4, %v2082_v38, %v12835_v3  ;;  %v2117_v3 = vsel %vm2103_vm5, %v2100_v31, %v12862_v58  ;;  %v2444_v58 = vsel %vm2069_vm3, %v12580_v39, %v12884_v8  ;;  %v2446_v39 = vsel %vm2069_vm3, %v12633_v59, %v12910_v57 }
 0x3af   :  { %2324 = vrot.lane.b32.xlu0 %v2287_v53, %s12259_s8  ;;  %v2462_v8 = vsel %vm2086_vm4, %v2446_v39, %v12914_v49  ;;  %v15371_v39 = vld [vmem:[#allocation24_spill] sm:$0xff] }
 0x3b2   :  { %3351 = vrot.lane.b32.xlu1 %v2115_v51, %s12262_s1  ;;  %v13066_v51 = vpop.permute.xlu1 %2961 }
 0x3b3   :  { %2372 = vrot.lane.b32.xlu0 %v2287_v53, %s12258_s4 }
 0x3b6   :  { %2330 = vrot.lane.b32.xlu1 %v2299_v19, %s12259_s8  ;;  %v13086_v55 = vpop.permute.xlu1 %3117 }
 0x3b7   :  { %2420 = vrot.lane.b32.xlu0 %v2287_v53, %s12261_s29  ;;  %v2116_v53 = vsel %vm2103_vm5, %v2099_v20, %v12850_v12  ;;  %v13077_v12 = vpop.permute.xlu0 %2416  ;;  %v13120_v20 = vsel %vm2103_vm5, %v2462_v8, %v12918_v6  ;;  %v15372_v8 = vld [vmem:[#allocation41_spill] sm:$0xff] }
 0x3ba   :  { %2378 = vrot.lane.b32.xlu1 %v2299_v19, %s12258_s4  ;;  %v13103_v38 = vpop.permute.xlu1 %3039 }
 0x3bb   :  { %2422 = vrot.lane.b32.xlu0 %v2291_v50, %s12261_s29  ;;  %v2085_v50 = vsel %vm2069_vm3, %v12563_v30, %v12868_v10  ;;  %v2460_v30 = vsel %vm2086_vm4, %v2444_v58, %v12904_v33  ;;  %v13097_v10 = vpop.permute.xlu0 %2418 }
 0x3bc   :  { %v2102_v25 = vsel %vm2086_vm4, %v2085_v50, %v12872_v14  ;;  %v13101_v14 = vsel %vm2103_vm5, %v2460_v30, %v12906_v47  ;;  %v15370_v30 = vld [vmem:[#allocation39_spill] sm:$0xff] }
 0x3bd   :  { %v2119_v63 = vsel %vm2103_vm5, %v2102_v25, %v12876_v56  ;;  %v2084_v56 = vsel %vm2069_vm3, %v12555_v27, %v12859_v4  ;;  %v2447_v27 = vsel %vm2069_vm3, %v12650_v35, %v12916_v0 }
 0x3be   :  { %3429 = vrot.lane.b32.xlu1 %v2116_v53, %s12262_s1  ;;  %v2101_v47 = vsel %vm2086_vm4, %v2084_v56, %v12866_v24  ;;  %v2445_v24 = vsel %vm2069_vm3, %v12587_v41, %v12893_v2  ;;  %v13136_v57 = vpop.permute.xlu1 %3195  ;;  %v2449_v41 = vsel %vm2069_vm3, %v12674_v7, %v12924_v21  ;;  %v2453_v56 = vsel %vm2069_vm3, %v15371_v39, %v15370_v30 }
 0x3bf   :  { %2328 = vrot.lane.b32.xlu0 %v2295_v16, %s12259_s8  ;;  %v2118_v59 = vsel %vm2103_vm5, %v2101_v47, %v12870_v1  ;;  %v2461_v1 = vsel %vm2086_vm4, %v2445_v24, %v12908_v11  ;;  %v2465_v2 = vsel %vm2086_vm4, %v2449_v41, %v12928_v5  ;;  %v2448_v11 = vsel %vm2069_vm3, %v12687_v13, %v12926_v23  ;;  %v15363_v5 = vld [vmem:[#allocation36_spill] sm:$0xff]  ;;  %v15374_v24 = vld [vmem:[#allocation46_spill] sm:$0xff]  ;;  %v15378_v41 = vld [vmem:[#allocation31_spill] sm:$0xff] }
 0x3c0   :  { %v13146_v35 = vsel %vm2103_vm5, %v2461_v1, %v12912_v46  ;;  %v2464_v46 = vsel %vm2086_vm4, %v2448_v11, %v12930_v32  ;;  %v13164_v6 = vsel %vm2103_vm5, %v2465_v2, %v12938_v40  ;;  %v15365_v32 = vld [vmem:[#allocation38_spill] sm:$0xff]  ;;  %v15377_v1 = vld [vmem:[#allocation28_spill] sm:$0xff]  ;;  %v15379_v2 = vmov 0.0  }
 0x3c2   :  { %3507 = vrot.lane.b32.xlu1 %v2117_v3, %s12262_s1  ;;  %v15368_v3 = vld [vmem:[#allocation43_spill] sm:$0xff] }
 0x3c3   :  { %2376 = vrot.lane.b32.xlu0 %v2295_v16, %s12258_s4 }
 0x3c6   :  { %3663 = vrot.lane.b32.xlu1 %v2119_v63, %s12262_s1  ;;  %v15369_v63 = vld [vmem:[#allocation48_spill] sm:$0xff] }
 0x3c7   :  { %2424 = vrot.lane.b32.xlu0 %v2295_v16, %s12261_s29  ;;  %v15366_v16 = vld [vmem:[#allocation40_spill] sm:$0xff] }
 0x3c8   :  { %v2450_v31 = vsel %vm2069_vm3, %v15367_v22, %v15366_v16 }
 0x3c9   :  { %v2466_v50 = vsel %vm2086_vm4, %v2450_v31, %v15368_v3  ;;  %v15384_v3 = vld [vmem:[#allocation47_spill] sm:$0xff] }
 0x3ca   :  { %3885 = vrot.lane.b32.xlu1 %v13101_v14, %s12262_s1  ;;  %v13191_v58 = vsel %vm2103_vm5, %v2466_v50, %v15369_v63 }
 0x3cb   :  { %2426 = vrot.lane.b32.xlu0 %v2299_v19, %s12261_s29  ;;  %v15364_v19 = vld [vmem:[#allocation23_spill] sm:$0xff] }
 0x3cc   :  { %v1048_v33 = vpop.xlane.xlu0 %1047  ;;  %v2451_v13 = vsel %vm2069_vm3, %v15364_v19, %v15363_v5  ;;  %v15382_v19 = vld [vmem:[#allocation44_spill] sm:$0xff] }
 0x3cd   :  { %v1068_v53 = vsub.f32 %v12887_v15, %v1048_v33  ;;  %v2463_v15 = vsel %vm2086_vm4, %v2447_v27, %v12920_v43  ;;  %v15361_v43 = vld [vmem:[#allocation33_spill] sm:$0xff]  ;;  %v2467_v40 = vsel %vm2086_vm4, %v2451_v13, %v15365_v32  ;;  %v2469_v33 = vsel %vm2086_vm4, %v2453_v56, %v15372_v8 }
 0x3ce   :  { %4041 = vrot.lane.b32.xlu1 %v13120_v20, %s12262_s1  ;;  %v13142_v49 = vsel %vm2103_vm5, %v2463_v15, %v12922_v62  ;;  %v15362_v62 = vld [vmem:[#allocation37_spill] sm:$0xff]  ;;  %v13187_v25 = vsel %vm2103_vm5, %v2467_v40, %v12985_v44  ;;  %v15373_v44 = vld [vmem:[#allocation27_spill] sm:$0xff]  ;;  %v15375_v15 = vld [vmem:[#allocation26_spill] sm:$0xff] }
 0x3cf   :  { %v1077_v4 = vmul.f32 1.442695, %v1068_v53  ;;  %3585 = vrot.lane.b32.xlu0 %v2118_v59, %s12262_s1  ;;  %v13169_v21 = vsel %vm2103_vm5, %v2464_v46, %v15362_v62  ;;  %v2452_v47 = vsel %vm2069_vm3, %v15373_v44, %v12991_v45  ;;  %v13209_v59 = vsel %vm2103_vm5, %v2469_v33, %v13029_v29 }
 0x3d0   :  { %v2468_v53 = vsel %vm2086_vm4, %v2452_v47, %v12998_v60  ;;  %v2455_v45 = vsel %vm2069_vm3, %v15375_v15, %v15374_v24  ;;  %v15376_v60 = vld [vmem:[#allocation49_spill] sm:$0xff]  ;;  %v15385_v15 = vld [vmem:[#allocation30_spill] sm:$0xff] }
 0x3d1   :  { %11881 = vpow2.f32 %v1077_v4  ;;  %v13215_v4 = vsel %vm2103_vm5, %v2468_v53, %v13008_v28  ;;  %v2471_v29 = vsel %vm2086_vm4, %v2455_v45, %v15376_v60  ;;  %v2454_v28 = vsel %vm2069_vm3, %v15377_v1, %v13043_v26  ;;  %v15386_v1 = vld [vmem:[#allocation34_spill] sm:$0xff] }
 0x3d2   :  { %4118 = vrot.lane.b32.xlu1 %v13142_v49, %s12262_s1  ;;  %v2470_v11 = vsel %vm2086_vm4, %v2454_v28, %v13060_v36  ;;  %v15380_v36 = vld [vmem:[#allocation29_spill] sm:$0xff] }
 0x3d3   :  { %3964 = vrot.lane.b32.xlu0 %v13146_v35, %s12262_s1  ;;  %v13243_v46 = vsel %vm2103_vm5, %v2470_v11, %v13077_v12 }
 0x3d4   :  { %v1045_v0 = vpop.xlane.xlu1 %1044 }
 0x3d5   :  { %v1067_v7 = vsub.f32 %v15361_v43, %v1045_v0  ;;  %v13238_v0 = vsel %vm2103_vm5, %v2471_v29, %v13097_v10  ;;  %v15381_v10 = vld [vmem:[#allocation42_spill] sm:$0xff] }
 0x3d6   :  { %4272 = vrot.lane.b32.xlu1 %v13164_v6, %s12262_s1 }
 0x3d7   :  { %v1075_v23 = vmul.f32 1.442695, %v1067_v7  ;;  %4195 = vrot.lane.b32.xlu0 %v13169_v21, %s12262_s1 }
 0x3d9   :  { %11883 = vpow2.f32 %v1075_v23  ;;  %v15383_v23 = vld [vmem:[#allocation45_spill] sm:$0xff] }
 0x3da   :  { %4426 = vrot.lane.b32.xlu1 %v13187_v25, %s12262_s1 }
 0x3db   :  { %4349 = vrot.lane.b32.xlu0 %v13191_v58, %s12262_s1 }
 0x3de   :  { %v13211_v27 = vpop.eup %11881  ;;  %4580 = vrot.lane.b32.xlu1 %v13209_v59, %s12262_s1 }
 0x3df   :  { %11351 = vmatmul.mubr.msk.f32.vlgmr.msra.gmra.mxu1 %vm1042_vm6, %v13211_v27  ;;  %4503 = vrot.lane.b32.xlu0 %v13215_v4, %s12262_s1 }
 0x3e0   :  { %11359 = vmatpush3.msra.mxu1 %v15378_v41  ;;  %11360 = vmatprep.mubr.msk.f32.mxu1 %vm12260_vm2, %v15379_v2  ;;  %v15387_v41 = vld [vmem:[#allocation32_spill] sm:$0xff] }
 0x3e1   :  { %11368 = vmatprep.subr.mxu1 %v15379_v2 }
 0x3e2   :  { %4734 = vrot.lane.b32.xlu1 %v13238_v0, %s12262_s1 }
 0x3e3   :  { %4657 = vrot.lane.b32.xlu0 %v13243_v46, %s12262_s1 }
 0x3e6   :  { %v13249_v26 = vpop.eup %11883 }
 0x3e7   :  { %11346 = vmatmul.mubr.msk.f32.vlgmr.msra.gmra.mxu0 %vm1042_vm6, %v13249_v26 }
 0x3e8   :  { %11354 = vmatpush3.msra.mxu0 %v15380_v36  ;;  %11355 = vmatprep.mubr.msk.f32.mxu0 %vm12260_vm2, %v15379_v2 }
 0x3e9   :  { %11363 = vmatprep.subr.mxu0 %v15379_v2 }
 0x415   :  { %v1051_v12 = vpop.xlane.xlu1 %1050 }
 0x416   :  { %v1069_v43 = vsub.f32 %v15381_v10, %v1051_v12 }
 0x418   :  { %v1079_v7 = vmul.f32 1.442695, %v1069_v43 }
 0x419   :  { %v1057_v62 = vpop.xlane.xlu1 %1056  ;;  %v1054_v5 = vpop.xlane.xlu0 %1053 }
 0x41a   :  { %11885 = vpow2.f32 %v1079_v7  ;;  %v1071_v13 = vsub.f32 %v15382_v19, %v1057_v62  ;;  %v1070_v32 = vsub.f32 %v15383_v23, %v1054_v5  ;;  %v15388_v62 = vld [vmem:[#allocation35_spill] sm:$0xff] }
 0x41c   :  { %v1083_v40 = vmul.f32 1.442695, %v1071_v13  ;;  %v1081_v16 = vmul.f32 1.442695, %v1070_v32  ;;  %v15390_v32 = vld [vmem:[#allocation51_spill] sm:$0xff] }
 0x41d   :  { %v1060_v22 = vpop.xlane.xlu0 %1059 }
 0x41e   :  { %11887 = vpow2.f32 %v1083_v40  ;;  %v1063_v31 = vpop.xlane.xlu1 %1062  ;;  %v1072_v50 = vsub.f32 %v15384_v3, %v1060_v22 }
 0x41f   :  { %11889 = vpow2.f32 %v1081_v16  ;;  %v1073_v63 = vsub.f32 %v12971_v17, %v1063_v31  ;;  %v15391_v16 = vld [vmem:[#allocation52_spill] sm:$0xff] }
 0x420   :  { %v1085_v30 = vmul.f32 1.442695, %v1072_v50 }
 0x421   :  { %v1087_v39 = vmul.f32 1.442695, %v1073_v63 }
 0x422   :  { %11891 = vpow2.f32 %v1085_v30  ;;  %v2327_v56 = vpop.permute.xlu1 %2326  ;;  %v1066_v8 = vpop.xlane.xlu0 %1065 }
 0x423   :  { %11893 = vpow2.f32 %v1087_v39  ;;  %v1074_v33 = vsub.f32 %v12982_v37, %v1066_v8  ;;  %v2457_v43 = vsel %vm2069_vm3, %v12994_v61, %v2327_v56 }
 0x425   :  { %v1089_v44 = vmul.f32 1.442695, %v1074_v33 }
 0x426   :  { %v2375_v47 = vpop.permute.xlu1 %2374  ;;  %v2325_v53 = vpop.permute.xlu0 %2324 }
 0x427   :  { %v13263_v24 = vpop.eup %11885  ;;  %11895 = vpow2.f32 %v1089_v44  ;;  %v2456_v29 = vsel %vm2069_vm3, %v13006_v54, %v2325_v53  ;;  %v2473_v7 = vsel %vm2086_vm4, %v2457_v43, %v2375_v47 }
 0x428   :  { %11356 = vmatmul.mubr.msk.f32.vlgmr.msra.gmra.mxu0 %vm1042_vm6, %v13263_v24 }
 0x429   :  { %11364 = vmatpush3.msra.mxu0 %v15385_v15  ;;  %11365 = vmatprep.mubr.msk.f32.mxu0 %vm12260_vm2, %v15379_v2 }
 0x42a   :  { %v13270_v17 = vpop.permute.xlu1 %3273  ;;  %v2373_v45 = vpop.permute.xlu0 %2372  ;;  %11373 = vmatprep.subr.mxu0 %v15379_v2 }
 0x42b   :  { %v13273_v37 = vpop.eup %11887  ;;  %v2472_v28 = vsel %vm2086_vm4, %v2456_v29, %v2373_v45 }
 0x42c   :  { %v13275_v60 = vpop.eup %11889  ;;  %11366 = vmatmul.mubr.msk.f32.vlgmr.msra.gmra.mxu0 %vm1042_vm6, %v13273_v37 }
 0x42d   :  { %11361 = vmatmul.mubr.msk.f32.vlgmr.msra.gmra.mxu1 %vm1042_vm6, %v13275_v60  ;;  %11374 = vmatpush3.msra.mxu0 %v15386_v1 }
 0x42e   :  { %11369 = vmatpush3.msra.mxu1 %v15387_v41  ;;  %v13286_v11 = vpop.permute.xlu1 %3351  ;;  %v2421_v36 = vpop.permute.xlu0 %2420  ;;  %11370 = vmatprep.mubr.msk.f32.mxu1 %vm12260_vm2, %v15379_v2 }
 0x42f   :  { %v13290_v12 = vpop.eup %11891  ;;  %v13293_v10 = vsel %vm2103_vm5, %v2472_v28, %v2421_v36  ;;  %11375 = vmatprep.mubr.msk.f32.mxu0 %vm12260_vm2, %v15379_v2  ;;  %11378 = vmatprep.subr.mxu1 %v15379_v2 }
 0x430   :  { %v13298_v54 = vpop.eup %11893  ;;  %11383 = vmatprep.subr.mxu0 %v15379_v2  ;;  %4811 = vrot.lane.b32.xlu0 %v13293_v10, %s12262_s1 }
 0x431   :  { %11371 = vmatmul.mubr.msk.f32.vlgmr.msra.gmra.mxu1 %vm1042_vm6, %v13290_v12  ;;  %11376 = vmatmul.mubr.msk.f32.vlgmr.msra.gmra.mxu0 %vm1042_vm6, %v13298_v54 }
 0x432   :  { %11379 = vmatpush3.msra.mxu1 %v15388_v62  ;;  %11384 = vmatpush3.xpose.msk.msra.mxu0 %vm131_vm0, %v13101_v14  ;;  %v2423_v5 = vpop.permute.xlu0 %2422  ;;  %v13322_v13 = vpop.permute.xlu1 %2330  ;;  %v15389_v14 = vld [vmem:[#allocation50_spill] sm:$0xff] }
 0x433   :  { %v13314_v19 = vsel %vm2103_vm5, %v2473_v7, %v2423_v5  ;;  %11380 = vmatprep.mubr.msk.f32.mxu1 %vm12260_vm2, %v15379_v2  ;;  %11385 = vmatprep.mubr.msk.f32.mxu0 %vm12260_vm2, %v15379_v2 }
 0x434   :  { %v13320_v61 = vpop.eup %11895  ;;  %11388 = vmatprep.subr.mxu1 %v15379_v2  ;;  %11393 = vmatprep.subr.mxu0 %v15379_v2 }
 0x435   :  { %4888 = vrot.lane.b32.xlu1 %v13314_v19, %s12262_s1  ;;  %11381 = vmatmul.mubr.msk.f32.vlgmr.msra.gmra.mxu1 %vm1042_vm6, %v13320_v61 }
 0x436   :  { %11386 = vmatmul.mubr.msk.f32.vlgmr.msra.gmra.mxu0 %vm131_vm0, %v15389_v14  ;;  %11389 = vmatpush3.xpose.msk.msra.mxu1 %vm131_vm0, %v13146_v35  ;;  %v2329_v23 = vpop.permute.xlu0 %2328  ;;  %v2379_v40 = vpop.permute.xlu1 %2378 }
 0x437   :  { %11394 = vmatpush3.xpose.msk.msra.mxu0 %vm131_vm0, %v13120_v20  ;;  %11390 = vmatprep.mubr.msk.f32.mxu1 %vm12260_vm2, %v15379_v2 }
 0x438   :  { %11395 = vmatprep.mubr.msk.f32.mxu0 %vm12260_vm2, %v15379_v2  ;;  %11398 = vmatprep.subr.mxu1 %v15379_v2 }
 0x439   :  { %11403 = vmatprep.subr.mxu0 %v15379_v2  ;;  %11391 = vmatmul.mubr.msk.f32.vlgmr.msra.gmra.mxu1 %vm131_vm0, %v15390_v32 }
 0x43a   :  { %11396 = vmatmul.mubr.msk.f32.vlgmr.msra.gmra.mxu0 %vm131_vm0, %v15391_v16  ;;  %11399 = vmatpush3.xpose.msk.msra.mxu1 %vm131_vm0, %v13142_v49  ;;  %v2377_v20 = vpop.permute.xlu0 %2376  ;;  %v3430_v49 = vpop.permute.xlu1 %3429 }
 0x43b   :  { %11404 = vmatpush3.xpose.msk.msra.mxu0 %vm131_vm0, %v13169_v21  ;;  %11400 = vmatprep.mubr.msk.f32.mxu1 %vm12260_vm2, %v15379_v2 }
 0x43c   :  { %11405 = vmatprep.mubr.msk.f32.mxu0 %vm12260_vm2, %v15379_v2  ;;  %11408 = vmatprep.subr.mxu1 %v15379_v2 }
 0x43d   :  { %11413 = vmatprep.subr.mxu0 %v15379_v2  ;;  %11401 = vmatmul.mubr.msk.f32.vlgmr.msra.gmra.mxu1 %vm131_vm0, %v13037_v48 }
 0x43e   :  { %11406 = vmatmul.mubr.msk.f32.vlgmr.msra.gmra.mxu0 %vm131_vm0, %v13016_v34  ;;  %11409 = vmatpush3.xpose.msk.msra.mxu1 %vm131_vm0, %v13164_v6  ;;  %v2425_v34 = vpop.permute.xlu0 %2424  ;;  %v3508_v48 = vpop.permute.xlu1 %3507 }
 0x43f   :  { %11414 = vmatpush3.xpose.msk.msra.mxu0 %vm131_vm0, %v13191_v58  ;;  %11410 = vmatprep.mubr.msk.f32.mxu1 %vm12260_vm2, %v15379_v2 }
 0x440   :  { %11415 = vmatprep.mubr.msk.f32.mxu0 %vm12260_vm2, %v15379_v2  ;;  %11418 = vmatprep.subr.mxu1 %v15379_v2 }
 0x441   :  { %11423 = vmatprep.subr.mxu0 %v15379_v2  ;;  %11411 = vmatmul.mubr.msk.f32.vlgmr.msra.gmra.mxu1 %vm131_vm0, %v13047_v42 }
 0x442   :  { %11416 = vmatmul.mubr.msk.f32.vlgmr.msra.gmra.mxu0 %vm131_vm0, %v13066_v51  ;;  %11419 = vmatpush3.xpose.msk.msra.mxu1 %vm131_vm0, %v13187_v25  ;;  %v2427_v42 = vpop.permute.xlu0 %2426  ;;  %v2458_v51 = vsel %vm2069_vm3, %v13051_v9, %v2329_v23  ;;  %v2459_v9 = vsel %vm2069_vm3, %v13033_v18, %v13322_v13 }
 0x443   :  { %11424 = vmatpush3.xpose.msk.msra.mxu0 %vm131_vm0, %v13215_v4  ;;  %11420 = vmatprep.mubr.msk.f32.mxu1 %vm12260_vm2, %v15379_v2  ;;  %v2475_v6 = vsel %vm2086_vm4, %v2459_v9, %v2379_v40 }
 0x444   :  { %11425 = vmatprep.mubr.msk.f32.mxu0 %vm12260_vm2, %v15379_v2  ;;  %11428 = vmatprep.subr.mxu1 %v15379_v2  ;;  %v13435_v21 = vsel %vm2103_vm5, %v2475_v6, %v2427_v42 }
 0x445   :  { %11433 = vmatprep.subr.mxu0 %v15379_v2  ;;  %11421 = vmatmul.mubr.msk.f32.vlgmr.msra.gmra.mxu1 %vm131_vm0, %v13103_v38  ;;  %v2474_v38 = vsel %vm2086_vm4, %v2458_v51, %v2377_v20 }
 0x446   :  { %11426 = vmatmul.mubr.msk.f32.vlgmr.msra.gmra.mxu0 %vm131_vm0, %v13086_v55  ;;  %11429 = vmatpush3.xpose.msk.msra.mxu1 %vm131_vm0, %v13209_v59  ;;  %v3664_v55 = vpop.permute.xlu1 %3663  ;;  %v3586_v35 = vpop.permute.xlu0 %3585 }
 0x447   :  { %11434 = vmatpush3.xpose.msk.msra.mxu0 %vm131_vm0, %v13243_v46  ;;  %11430 = vmatprep.mubr.msk.f32.mxu1 %vm12260_vm2, %v15379_v2 }
 0x448   :  { %11435 = vmatprep.mubr.msk.f32.mxu0 %vm12260_vm2, %v15379_v2  ;;  %11438 = vmatprep.subr.mxu1 %v15379_v2 }
 0x449   :  { %11443 = vmatprep.subr.mxu0 %v15379_v2  ;;  %11431 = vmatmul.mubr.msk.f32.vlgmr.msra.gmra.mxu1 %vm131_vm0, %v13136_v57  ;;  %v13418_v57 = vsel %vm2103_vm5, %v2474_v38, %v2425_v34 }
 0x44a   :  { %11436 = vmatmul.mubr.msk.f32.vlgmr.msra.gmra.mxu0 %vm131_vm0, %v13270_v17  ;;  %11439 = vmatpush3.xpose.msk.msra.mxu1 %vm131_vm0, %v13238_v0  ;;  %v3886_v18 = vpop.permute.xlu1 %3885  ;;  %v3965_v25 = vpop.permute.xlu0 %3964 }
 0x44b   :  { %11444 = vmatpush3.xpose.msk.msra.mxu0 %vm131_vm0, %v13293_v10  ;;  %11440 = vmatprep.mubr.msk.f32.mxu1 %vm12260_vm2, %v15379_v2 }
 0x44c   :  { %11445 = vmatprep.mubr.msk.f32.mxu0 %vm12260_vm2, %v15379_v2  ;;  %11448 = vmatprep.subr.mxu1 %v15379_v2 }
 0x44d   :  { %11453 = vmatprep.subr.mxu0 %v15379_v2  ;;  %11441 = vmatmul.mubr.msk.f32.vlgmr.msra.gmra.mxu1 %vm131_vm0, %v13286_v11 }
 0x44e   :  { %11446 = vmatmul.mubr.msk.f32.vlgmr.msra.gmra.mxu0 %vm131_vm0, %v3430_v49  ;;  %11449 = vmatpush3.xpose.msk.msra.mxu1 %vm131_vm0, %v13314_v19 }
 0x44f   :  { %11454 = vmatpush3.xpose.msk.msra.mxu0 %vm131_vm0, %v13418_v57  ;;  %11450 = vmatprep.mubr.msk.f32.mxu1 %vm12260_vm2, %v15379_v2 }
 0x450   :  { %11455 = vmatprep.mubr.msk.f32.mxu0 %vm12260_vm2, %v15379_v2  ;;  %11458 = vmatprep.subr.mxu1 %v15379_v2 }
 0x451   :  { %11463 = vmatprep.subr.mxu0 %v15379_v2  ;;  %11451 = vmatmul.mubr.msk.f32.vlgmr.msra.gmra.mxu1 %vm131_vm0, %v3508_v48 }
 0x452   :  { %11456 = vmatmul.mubr.msk.f32.vlgmr.msra.gmra.mxu0 %vm131_vm0, %v3586_v35  ;;  %11459 = vmatpush3.xpose.msk.msra.mxu1 %vm131_vm0, %v13435_v21 }
 0x453   :  { %11464 = vmatpush3.msk.msra.mxu0 %vm3891_vm7, %v3886_v18  ;;  %11460 = vmatprep.mubr.msk.f32.mxu1 %vm12260_vm2, %v15379_v2 }
 0x454   :  { %11468 = vmatprep.subr.mxu1 %v15379_v2  ;;  %11465 = vmatprep.mubr.msk.f32.mxu0 %vm12260_vm2, %v15379_v2 }
 0x455   :  { %11461 = vmatmul.mubr.msk.f32.vlgmr.msra.gmra.mxu1 %vm131_vm0, %v3664_v55  ;;  %11473 = vmatprep.subr.mxu0 %v15379_v2 }
 0x456   :  { %11469 = vmatpush3.msk.msra.mxu1 %vm3891_vm7, %v3965_v25  ;;  %11470 = vmatprep.mubr.msk.f32.mxu1 %vm12260_vm2, %v15379_v2 }
 0x457   :  { %11478 = vmatprep.subr.mxu1 %v15379_v2 }
 0x49f   :  { %v13454_v58 = vpop.f32.mrf.mxu1 }
 0x4a1   :  { %v11352_v59 = vpop.f32.mrf.mxu1 }
 0x4a7   :  { %v13456_v4 = vpop.f32.mrf.mxu0 }
 0x4a9   :  { %v11347_v0 = vpop.f32.mrf.mxu0 }
 0x4e8   :  { %v13458_v46 = vpop.f32.mrf.mxu0 }
 0x4ea   :  { %v11357_v22 = vpop.f32.mrf.mxu0 }
 0x4ec   :  { %v13460_v31 = vpop.f32.mrf.mxu0 }
 0x4ed   :  { %v13462_v3 = vpop.f32.mrf.mxu1 }
 0x4ee   :  { %v11367_v50 = vpop.f32.mrf.mxu0 }
 0x4ef   :  { %v11362_v63 = vpop.f32.mrf.mxu1 }
 0x4f1   :  { %v13464_v30 = vpop.f32.mrf.mxu1  ;;  %v13466_v39 = vpop.f32.mrf.mxu0 }
 0x4f3   :  { %v11372_v56 = vpop.f32.mrf.mxu1  ;;  %v11377_v8 = vpop.f32.mrf.mxu0 }
 0x4f5   :  { %v13468_v33 = vpop.f32.mrf.mxu1 }
 0x4f6   :  { %v13470_v44 = vpop.f32.mrf.mxu0 }
 0x4f7   :  { %v3741_v47 = vsel %vm3740_vm8, %v13470_v44, -inf  ;;  %v11382_v53 = vpop.f32.mrf.mxu1 }
 0x4f8   :  { %v11387_v15 = vpop.f32.mrf.mxu0  ;;  %3742 = vmax.xlane.f32.xlu0 %v3741_v47 }
 0x4f9   :  { %v13474_v17 = vpop.f32.mrf.mxu1 }
 0x4fa   :  { %v13476_v45 = vpop.f32.mrf.mxu0  ;;  %v3744_v29 = vsel %vm3740_vm8, %v13474_v17, -inf }
 0x4fb   :  { %v3747_v1 = vsel %vm3740_vm8, %v13476_v45, -inf  ;;  %3745 = vmax.xlane.f32.xlu1 %v3744_v29  ;;  %v11392_v28 = vpop.f32.mrf.mxu1 }
 0x4fc   :  { %v11397_v41 = vpop.f32.mrf.mxu0  ;;  %3748 = vmax.xlane.f32.xlu0 %v3747_v1  ;;  %v1097_v28 = vsel %vm1042_vm6, %v13263_v24, 0.0 }
 0x4fd   :  { %v13482_v11 = vpop.f32.mrf.mxu1  ;;  %v1100_v41 = vsel %vm1042_vm6, %v13275_v60, 0.0 }
 0x4fe   :  { %v13484_v36 = vpop.f32.mrf.mxu0  ;;  %v3750_v10 = vsel %vm3740_vm8, %v13482_v11, -inf }
 0x4ff   :  { %v3753_v43 = vsel %vm3740_vm8, %v13484_v36, -inf  ;;  %v11402_v7 = vpop.f32.mrf.mxu1 }
 0x500   :  { %v11407_v62 = vpop.f32.mrf.mxu0  ;;  %3754 = vmax.xlane.f32.xlu1 %v3753_v43  ;;  %3751 = vmax.xlane.f32.xlu0 %v3750_v10  ;;  %v4042_v10 = vpop.permute.xlu1 %4041 }
 0x501   :  { %v13490_v5 = vpop.f32.mrf.mxu1  ;;  %v13544_v7 = vpop.permute.xlu0 %4195 }
 0x502   :  { %v13492_v19 = vpop.f32.mrf.mxu0  ;;  %v3756_v13 = vsel %vm3740_vm8, %v13490_v5, -inf }
 0x503   :  { %v3759_v14 = vsel %vm3740_vm8, %v13492_v19, -inf  ;;  %v11412_v23 = vpop.f32.mrf.mxu1 }
 0x504   :  { %v11417_v32 = vpop.f32.mrf.mxu0  ;;  %3760 = vmax.xlane.f32.xlu1 %v3759_v14  ;;  %3757 = vmax.xlane.f32.xlu0 %v3756_v13  ;;  %v13542_v43 = vpop.permute.xlu1 %4118 }
 0x505   :  { %v13498_v40 = vpop.f32.mrf.mxu1  ;;  %v13548_v13 = vpop.permute.xlu0 %4349 }
 0x506   :  { %v13500_v16 = vpop.f32.mrf.mxu0  ;;  %v3762_v20 = vsel %vm3740_vm8, %v13498_v40, -inf }
 0x507   :  { %v3765_v49 = vsel %vm3740_vm8, %v13500_v16, -inf  ;;  %v11422_v34 = vpop.f32.mrf.mxu1 }
 0x508   :  { %v11427_v48 = vpop.f32.mrf.mxu0  ;;  %3766 = vmax.xlane.f32.xlu1 %v3765_v49  ;;  %3763 = vmax.xlane.f32.xlu0 %v3762_v20  ;;  %v13546_v62 = vpop.permute.xlu1 %4272 }
 0x509   :  { %v13506_v42 = vpop.f32.mrf.mxu1 }
 0x50a   :  { %v13508_v51 = vpop.f32.mrf.mxu0  ;;  %v3768_v55 = vsel %vm3740_vm8, %v13506_v42, -inf }
 0x50b   :  { %v3771_v38 = vsel %vm3740_vm8, %v13508_v51, -inf  ;;  %v11432_v9 = vpop.f32.mrf.mxu1 }
 0x50c   :  { %v11437_v35 = vpop.f32.mrf.mxu0  ;;  %3772 = vmax.xlane.f32.xlu1 %v3771_v38  ;;  %3769 = vmax.xlane.f32.xlu0 %v3768_v55 }
 0x50d   :  { %v13514_v6 = vpop.f32.mrf.mxu1 }
 0x50e   :  { %v13516_v18 = vpop.f32.mrf.mxu0  ;;  %v3774_v25 = vsel %vm3740_vm8, %v13514_v6, -inf }
 0x50f   :  { %v3777_v59 = vsel %vm3740_vm8, %v13516_v18, -inf  ;;  %v11442_v0 = vpop.f32.mrf.mxu1 }
 0x510   :  { %v11447_v22 = vpop.f32.mrf.mxu0  ;;  %3778 = vmax.xlane.f32.xlu1 %v3777_v59  ;;  %3775 = vmax.xlane.f32.xlu0 %v3774_v25 }
 0x511   :  { %v13522_v50 = vpop.f32.mrf.mxu1 }
 0x512   :  { %v13524_v63 = vpop.f32.mrf.mxu0  ;;  %v3780_v56 = vsel %vm3740_vm8, %v13522_v50, -inf }
 0x513   :  { %v3783_v8 = vsel %vm3740_vm8, %v13524_v63, -inf  ;;  %v11452_v47 = vpop.f32.mrf.mxu1 }
 0x514   :  { %v11457_v53 = vpop.f32.mrf.mxu0  ;;  %3784 = vmax.xlane.f32.xlu1 %v3783_v8  ;;  %3781 = vmax.xlane.f32.xlu0 %v3780_v56 }
 0x515   :  { %v13530_v15 = vpop.f32.mrf.mxu1 }
 0x516   :  { %v3786_v29 = vsel %vm3740_vm8, %v13530_v15, -inf }
 0x517   :  { %v11462_v1 = vpop.f32.mrf.mxu1 }
 0x518   :  { %3787 = vmax.xlane.f32.xlu0 %v3786_v29 }
 0x525   :  { %5042 = vrot.lane.b32.xlu1 %v13435_v21, %s12262_s1  ;;  %v13550_v21 = vpop.permute.xlu1 %4426 }
 0x529   :  { %v13554_v14 = vpop.permute.xlu1 %4580 }
 0x52d   :  { %v13558_v23 = vpop.permute.xlu1 %4734 }
 0x52e   :  { %4965 = vrot.lane.b32.xlu0 %v13418_v57, %s12262_s1  ;;  %v13552_v57 = vpop.permute.xlu0 %4503 }
 0x531   :  { %v13562_v32 = vpop.permute.xlu1 %4888 }
 0x532   :  { %v13556_v24 = vpop.permute.xlu0 %4657 }
 0x536   :  { %v13560_v60 = vpop.permute.xlu0 %4811 }
 0x549   :  { %1098 = vadd.xlane.f32.xlu1 %v1097_v28 }
 0x54d   :  { %1101 = vadd.xlane.f32.xlu0 %v1100_v41 }
 0x581   :  { %v3743_v20 = vpop.xlane.xlu0 %3742 }
 0x582   :  { %v3789_v49 = vsub.f32 %v13470_v44, %v3743_v20 }
 0x584   :  { %v3805_v34 = vmul.f32 1.442695, %v3789_v49  ;;  %v3746_v48 = vpop.xlane.xlu1 %3745 }
 0x585   :  { %v3749_v55 = vpop.xlane.xlu0 %3748  ;;  %v3790_v38 = vsub.f32 %v13474_v17, %v3746_v48 }
 0x586   :  { %11897 = vpow2.f32 %v3805_v34  ;;  %v3791_v9 = vsub.f32 %v13476_v45, %v3749_v55 }
 0x587   :  { %v3807_v35 = vmul.f32 1.442695, %v3790_v38 }
 0x588   :  { %v3809_v25 = vmul.f32 1.442695, %v3791_v9 }
 0x589   :  { %11899 = vpow2.f32 %v3807_v35  ;;  %v3755_v59 = vpop.xlane.xlu1 %3754  ;;  %v3752_v0 = vpop.xlane.xlu0 %3751 }
 0x58a   :  { %11901 = vpow2.f32 %v3809_v25  ;;  %v3793_v22 = vsub.f32 %v13484_v36, %v3755_v59  ;;  %v3792_v56 = vsub.f32 %v13482_v11, %v3752_v0 }
 0x58c   :  { %v3813_v8 = vmul.f32 1.442695, %v3793_v22  ;;  %v3811_v44 = vmul.f32 1.442695, %v3792_v56 }
 0x58d   :  { %v3761_v47 = vpop.xlane.xlu1 %3760  ;;  %v3758_v53 = vpop.xlane.xlu0 %3757 }
 0x58e   :  { %11903 = vpow2.f32 %v3813_v8  ;;  %v3795_v17 = vsub.f32 %v13492_v19, %v3761_v47  ;;  %v3794_v29 = vsub.f32 %v13490_v5, %v3758_v53 }
 0x58f   :  { %11905 = vpow2.f32 %v3811_v44 }
 0x590   :  { %v3817_v45 = vmul.f32 1.442695, %v3795_v17  ;;  %v3815_v1 = vmul.f32 1.442695, %v3794_v29 }
 0x591   :  { %v3767_v28 = vpop.xlane.xlu1 %3766  ;;  %v3764_v41 = vpop.xlane.xlu0 %3763 }
 0x592   :  { %11907 = vpow2.f32 %v3817_v45  ;;  %v3797_v36 = vsub.f32 %v13500_v16, %v3767_v28  ;;  %v3796_v11 = vsub.f32 %v13498_v40, %v3764_v41 }
 0x593   :  { %v11898_v20 = vpop.eup %11897  ;;  %11909 = vpow2.f32 %v3815_v1 }
 0x594   :  { %v3821_v49 = vmul.f32 1.442695, %v3797_v36  ;;  %v3819_v34 = vmul.f32 1.442695, %v3796_v11  ;;  %11466 = vmatmul.mubr.msk.f32.vlgmr.msra.gmra.mxu0 %vm15311_vm9, %v11898_v20  ;;  %v3837_v19 = vsel %vm3740_vm8, %v11898_v20, 0.0 }
 0x595   :  { %11474 = vmatpush3.msk.msra.mxu0 %vm3891_vm7, %v4042_v10  ;;  %v3773_v5 = vpop.xlane.xlu1 %3772  ;;  %v3770_v48 = vpop.xlane.xlu0 %3769  ;;  %3838 = vadd.xlane.f32.xlu0 %v3837_v19 }
 0x596   :  { %v11900_v55 = vpop.eup %11899  ;;  %11911 = vpow2.f32 %v3821_v49  ;;  %v3799_v38 = vsub.f32 %v13508_v51, %v3773_v5  ;;  %v3798_v16 = vsub.f32 %v13506_v42, %v3770_v48  ;;  %11475 = vmatprep.mubr.msk.f32.mxu0 %vm12260_vm2, %v15379_v2  ;;  %11483 = vmatprep.subr.mxu0 %v15379_v2 }
 0x597   :  { %v11902_v40 = vpop.eup %11901  ;;  %11913 = vpow2.f32 %v3819_v34  ;;  %11471 = vmatmul.mubr.msk.f32.vlgmr.msra.gmra.mxu1 %vm15311_vm9, %v11900_v55  ;;  %v3840_v10 = vsel %vm3740_vm8, %v11900_v55, 0.0 }
 0x598   :  { %v3825_v9 = vmul.f32 1.442695, %v3799_v38  ;;  %v3823_v35 = vmul.f32 1.442695, %v3798_v16  ;;  %11476 = vmatmul.mubr.msk.f32.vlgmr.msra.gmra.mxu0 %vm15311_vm9, %v11902_v40  ;;  %11479 = vmatpush3.msk.msra.mxu1 %vm3891_vm7, %v13542_v43  ;;  %v3843_v42 = vsel %vm3740_vm8, %v11902_v40, 0.0  ;;  %v1106_v40 = vsel %vm1042_vm6, %v13290_v12, 0.0 }
 0x599   :  { %11484 = vmatpush3.msk.msra.mxu0 %vm3891_vm7, %v13544_v7  ;;  %3841 = vadd.xlane.f32.xlu1 %v3840_v10  ;;  %v3779_v51 = vpop.xlane.xlu1 %3778  ;;  %v3776_v25 = vpop.xlane.xlu0 %3775  ;;  %v1103_v10 = vsel %vm1042_vm6, %v13273_v37, 0.0  ;;  %v1091_v12 = vsel %vm1042_vm6, %v13249_v26, 0.0 }
 0x59a   :  { %11915 = vpow2.f32 %v3825_v9  ;;  %v3801_v59 = vsub.f32 %v13516_v18, %v3779_v51  ;;  %v3800_v0 = vsub.f32 %v13514_v6, %v3776_v25  ;;  %3844 = vadd.xlane.f32.xlu0 %v3843_v42  ;;  %11480 = vmatprep.mubr.msk.f32.mxu1 %vm12260_vm2, %v15379_v2  ;;  %v1112_v9 = vsel %vm1042_vm6, %v13320_v61, 0.0 }
 0x59b   :  { %v11904_v22 = vpop.eup %11903  ;;  %11917 = vpow2.f32 %v3823_v35  ;;  %11485 = vmatprep.mubr.msk.f32.mxu0 %vm12260_vm2, %v15379_v2  ;;  %11488 = vmatprep.subr.mxu1 %v15379_v2  ;;  %v1109_v35 = vsel %vm1042_vm6, %v13298_v54, 0.0  ;;  %v1094_v42 = vsel %vm1042_vm6, %v13211_v27, 0.0 }
 0x59c   :  { %v11906_v43 = vpop.eup %11905  ;;  %v3829_v7 = vmul.f32 1.442695, %v3801_v59  ;;  %v3827_v56 = vmul.f32 1.442695, %v3800_v0  ;;  %11493 = vmatprep.subr.mxu0 %v15379_v2  ;;  %11486 = vmatmul.mubr.msk.f32.vlgmr.msra.gmra.mxu0 %vm15311_vm9, %v11904_v22  ;;  %v3849_v6 = vsel %vm3740_vm8, %v11904_v22, 0.0 }
 0x59d   :  { %11481 = vmatmul.mubr.msk.f32.vlgmr.msra.gmra.mxu1 %vm15311_vm9, %v11906_v43  ;;  %11494 = vmatpush3.msk.msra.mxu0 %vm3891_vm7, %v13548_v13  ;;  %v3785_v18 = vpop.xlane.xlu1 %3784  ;;  %v3846_v8 = vsel %vm3740_vm8, %v11906_v43, 0.0  ;;  %v3782_v44 = vpop.xlane.xlu0 %3781 }
 0x59e   :  { %11489 = vmatpush3.msk.msra.mxu1 %vm3891_vm7, %v13546_v62  ;;  %v3803_v47 = vsub.f32 %v13524_v63, %v3785_v18  ;;  %3847 = vadd.xlane.f32.xlu1 %v3846_v8  ;;  %v3802_v53 = vsub.f32 %v13522_v50, %v3782_v44  ;;  %11919 = vpow2.f32 %v3827_v56 }
 0x59f   :  { %v11908_v17 = vpop.eup %11907  ;;  %3850 = vadd.xlane.f32.xlu0 %v3849_v6  ;;  %11490 = vmatprep.mubr.msk.f32.mxu1 %vm12260_vm2, %v15379_v2  ;;  %11921 = vpow2.f32 %v3829_v7 }
 0x5a0   :  { %v11910_v29 = vpop.eup %11909  ;;  %v3833_v13 = vmul.f32 1.442695, %v3803_v47  ;;  %v3831_v45 = vmul.f32 1.442695, %v3802_v53  ;;  %11495 = vmatprep.mubr.msk.f32.mxu0 %vm12260_vm2, %v15379_v2  ;;  %11498 = vmatprep.subr.mxu1 %v15379_v2 }
 0x5a1   :  { %11503 = vmatprep.subr.mxu0 %v15379_v2  ;;  %11491 = vmatmul.mubr.msk.f32.vlgmr.msra.gmra.mxu1 %vm15311_vm9, %v11910_v29  ;;  %v3852_v50 = vsel %vm3740_vm8, %v11910_v29, 0.0  ;;  %v3788_v63 = vpop.xlane.xlu0 %3787  ;;  %v5043_v5 = vpop.permute.xlu1 %5042 }
 0x5a2   :  { %11496 = vmatmul.mubr.msk.f32.vlgmr.msra.gmra.mxu0 %vm15311_vm9, %v11908_v17  ;;  %11499 = vmatpush3.msk.msra.mxu1 %vm3891_vm7, %v13550_v21  ;;  %v3804_v62 = vsub.f32 %v13530_v15, %v3788_v63  ;;  %11923 = vpow2.f32 %v3833_v13  ;;  %v3855_v21 = vsel %vm3740_vm8, %v11908_v17, 0.0 }
 0x5a3   :  { %v11912_v1 = vpop.eup %11911  ;;  %11504 = vmatpush3.msk.msra.mxu0 %vm3891_vm7, %v13552_v57  ;;  %3853 = vadd.xlane.f32.xlu0 %v3852_v50  ;;  %11925 = vpow2.f32 %v3831_v45 }
 0x5a4   :  { %v11914_v28 = vpop.eup %11913  ;;  %v3835_v41 = vmul.f32 1.442695, %v3804_v62  ;;  %11500 = vmatprep.mubr.msk.f32.mxu1 %vm12260_vm2, %v15379_v2  ;;  %11505 = vmatprep.mubr.msk.f32.mxu0 %vm12260_vm2, %v15379_v2 }
 0x5a5   :  { %11508 = vmatprep.subr.mxu1 %v15379_v2  ;;  %11513 = vmatprep.subr.mxu0 %v15379_v2  ;;  %v3858_v34 = vsel %vm3740_vm8, %v11914_v28, 0.0 }
 0x5a6   :  { %11501 = vmatmul.mubr.msk.f32.vlgmr.msra.gmra.mxu1 %vm15311_vm9, %v11914_v28  ;;  %11506 = vmatmul.mubr.msk.f32.vlgmr.msra.gmra.mxu0 %vm15311_vm9, %v11912_v1  ;;  %11927 = vpow2.f32 %v3835_v41 }
 0x5a7   :  { %v11916_v15 = vpop.eup %11915  ;;  %11509 = vmatpush3.msk.msra.mxu1 %vm3891_vm7, %v13554_v14  ;;  %11514 = vmatpush3.msk.msra.mxu0 %vm3891_vm7, %v13556_v24  ;;  %v3861_v24 = vsel %vm3740_vm8, %v11912_v1, 0.0 }
 0x5a8   :  { %v11918_v57 = vpop.eup %11917  ;;  %3856 = vadd.xlane.f32.xlu0 %v3855_v21  ;;  %11510 = vmatprep.mubr.msk.f32.mxu1 %vm12260_vm2, %v15379_v2  ;;  %v3867_v36 = vsel %vm3740_vm8, %v11916_v15, 0.0 }
 0x5a9   :  { %11515 = vmatprep.mubr.msk.f32.mxu0 %vm12260_vm2, %v15379_v2  ;;  %11518 = vmatprep.subr.mxu1 %v15379_v2  ;;  %v3864_v48 = vsel %vm3740_vm8, %v11918_v57, 0.0 }
 0x5aa   :  { %11523 = vmatprep.subr.mxu0 %v15379_v2  ;;  %11511 = vmatmul.mubr.msk.f32.vlgmr.msra.gmra.mxu1 %vm15311_vm9, %v11918_v57 }
 0x5ab   :  { %11516 = vmatmul.mubr.msk.f32.vlgmr.msra.gmra.mxu0 %vm15311_vm9, %v11916_v15  ;;  %11519 = vmatpush3.msk.msra.mxu1 %vm3891_vm7, %v13558_v23  ;;  %v11920_v14 = vpop.eup %11919 }
 0x5ac   :  { %11524 = vmatpush3.msk.msra.mxu0 %vm3891_vm7, %v13560_v60  ;;  %3868 = vadd.xlane.f32.xlu1 %v3867_v36  ;;  %v11922_v11 = vpop.eup %11921  ;;  %v3870_v20 = vsel %vm3740_vm8, %v11920_v14, 0.0  ;;  %v4966_v60 = vpop.permute.xlu0 %4965 }
 0x5ad   :  { %3862 = vadd.xlane.f32.xlu0 %v3861_v24  ;;  %11520 = vmatprep.mubr.msk.f32.mxu1 %vm12260_vm2, %v15379_v2 }
 0x5ae   :  { %11525 = vmatprep.mubr.msk.f32.mxu0 %vm12260_vm2, %v15379_v2  ;;  %11528 = vmatprep.subr.mxu1 %v15379_v2 }
 0x5af   :  { %11533 = vmatprep.subr.mxu0 %v15379_v2  ;;  %11521 = vmatmul.mubr.msk.f32.vlgmr.msra.gmra.mxu1 %vm15311_vm9, %v11920_v14  ;;  %v11924_v23 = vpop.eup %11923 }
 0x5b0   :  { %11526 = vmatmul.mubr.msk.f32.vlgmr.msra.gmra.mxu0 %vm15311_vm9, %v11922_v11  ;;  %11529 = vmatpush3.msk.msra.mxu1 %vm3891_vm7, %v13562_v32  ;;  %v11926_v49 = vpop.eup %11925  ;;  %v3873_v32 = vsel %vm3740_vm8, %v11922_v11, 0.0  ;;  %v3879_v16 = vsel %vm3740_vm8, %v11924_v23, 0.0 }
 0x5b1   :  { %11534 = vmatpush3.msk.msra.mxu0 %vm3891_vm7, %v4966_v60  ;;  %3871 = vadd.xlane.f32.xlu1 %v3870_v20  ;;  %v3876_v38 = vsel %vm3740_vm8, %v11926_v49, 0.0 }
 0x5b2   :  { %3859 = vadd.xlane.f32.xlu0 %v3858_v34  ;;  %11530 = vmatprep.mubr.msk.f32.mxu1 %vm12260_vm2, %v15379_v2 }
 0x5b3   :  { %11535 = vmatprep.mubr.msk.f32.mxu0 %vm12260_vm2, %v15379_v2  ;;  %11538 = vmatprep.subr.mxu1 %v15379_v2  ;;  %v11928_v19 = vpop.eup %11927 }
 0x5b4   :  { %11531 = vmatmul.mubr.msk.f32.vlgmr.msra.gmra.mxu1 %vm15311_vm9, %v11926_v49  ;;  %11536 = vmatmul.mubr.msk.f32.vlgmr.msra.gmra.mxu0 %vm15311_vm9, %v11924_v23  ;;  %v3882_v55 = vsel %vm3740_vm8, %v11928_v19, 0.0 }
 0x5b5   :  { %11539 = vmatpush3.msk.msra.mxu1 %vm3891_vm7, %v5043_v5  ;;  %3874 = vadd.xlane.f32.xlu1 %v3873_v32 }
 0x5b6   :  { %3865 = vadd.xlane.f32.xlu0 %v3864_v48  ;;  %11540 = vmatprep.mubr.msk.f32.mxu1 %vm12260_vm2, %v15379_v2 }
 0x5b8   :  { %11541 = vmatmul.mubr.msk.f32.vlgmr.msra.gmra.mxu1 %vm15311_vm9, %v11928_v19  ;;  %vm15312_vm9 = vcmask 1047559  }
 0x5b9   :  { %3877 = vadd.xlane.f32.xlu1 %v3876_v38  ;;  %5558 = vmatprep.mubr.f32.mxu1 %v15379_v2 }
 0x5ba   :  { %3883 = vadd.xlane.f32.xlu0 %v3882_v55 }
 0x5bd   :  { %3880 = vadd.xlane.f32.xlu1 %v3879_v16 }
 0x5be   :  { %1107 = vadd.xlane.f32.xlu0 %v1106_v40 }
 0x5c1   :  { %1104 = vadd.xlane.f32.xlu1 %v1103_v10 }
 0x5c2   :  { %1113 = vadd.xlane.f32.xlu0 %v1112_v9 }
 0x5c5   :  { %1110 = vadd.xlane.f32.xlu1 %v1109_v35 }
 0x5c6   :  { %1095 = vadd.xlane.f32.xlu0 %v1094_v42 }
 0x5c9   :  { %1092 = vadd.xlane.f32.xlu1 %v1091_v12 }
 0x5d2   :  { %v1099_v51 = vpop.xlane.xlu1 %1098 }
 0x5d3   :  { %11929 = vrcp.f32 %v1099_v51 }
 0x5d6   :  { %v1102_v37 = vpop.xlane.xlu0 %1101 }
 0x5d7   :  { %11931 = vrcp.f32 %v1102_v37 }
 0x5e0   :  { %v11930_v25 = vpop.eup %11929 }
 0x5e1   :  { %v1709_v61 = vmul.f32 %v11930_v25, %v13458_v46 }
 0x5e3   :  { %1717 = vrot.lane.b32.xlu1 %v1709_v61, %s12264_s30 }
 0x5e4   :  { %v11932_v54 = vpop.eup %11931 }
 0x5e5   :  { %v1710_v59 = vmul.f32 %v11932_v54, %v13462_v3 }
 0x5e7   :  { %1719 = vrot.lane.b32.xlu1 %v1710_v59, %s12264_s30 }
 0x61e   :  { %v3839_v27 = vpop.xlane.xlu0 %3838 }
 0x61f   :  { %11933 = vrcp.f32 %v3839_v27 }
 0x622   :  { %v3842_v26 = vpop.xlane.xlu1 %3841 }
 0x623   :  { %v3845_v0 = vpop.xlane.xlu0 %3844 }
 0x627   :  { %v3848_v7 = vpop.xlane.xlu1 %3847 }
 0x628   :  { %v3851_v22 = vpop.xlane.xlu0 %3850 }
 0x62c   :  { %v3854_v43 = vpop.xlane.xlu0 %3853  ;;  %v11934_v50 = vpop.eup %11933 }
 0x631   :  { %v3857_v56 = vpop.xlane.xlu0 %3856 }
 0x635   :  { %v3869_v6 = vpop.xlane.xlu1 %3868 }
 0x636   :  { %v3863_v18 = vpop.xlane.xlu0 %3862 }
 0x63a   :  { %v13694_v8 = vpop.xlane.xlu1 %3871 }
 0x63b   :  { %v3860_v46 = vpop.xlane.xlu0 %3859 }
 0x63e   :  { %v13696_v44 = vpop.xlane.xlu1 %3874 }
 0x63f   :  { %v3866_v47 = vpop.xlane.xlu0 %3865 }
 0x642   :  { %v13698_v53 = vpop.xlane.xlu1 %3877 }
 0x643   :  { %v13700_v3 = vpop.xlane.xlu0 %3883 }
 0x646   :  { %v13702_v17 = vpop.xlane.xlu1 %3880 }
 0x647   :  { %v1108_v29 = vpop.xlane.xlu0 %1107 }
 0x648   :  { %11935 = vrcp.f32 %v1108_v29 }
 0x649   :  { %11937 = vrcp.f32 %v3842_v26 }
 0x64a   :  { %11939 = vrcp.f32 %v3845_v0  ;;  %v1105_v13 = vpop.xlane.xlu1 %1104 }
 0x64b   :  { %11941 = vrcp.f32 %v1105_v13 }
 0x64c   :  { %11943 = vrcp.f32 %v3848_v7 }
 0x64e   :  { %v1111_v45 = vpop.xlane.xlu1 %1110 }
 0x64f   :  { %11945 = vrcp.f32 %v1111_v45 }
 0x650   :  { %11947 = vrcp.f32 %v3851_v22 }
 0x651   :  { %11949 = vrcp.f32 %v3854_v43 }
 0x652   :  { %11951 = vrcp.f32 %v3857_v56 }
 0x653   :  { %11953 = vrcp.f32 %v3869_v6 }
 0x654   :  { %v3960_v63 = vpop.f32.mrf.mxu0  ;;  %11955 = vrcp.f32 %v3863_v18 }
 0x655   :  { %v11936_v62 = vpop.eup %11935  ;;  %v5135_v41 = vmul.f32 %v11934_v50, %v3960_v63  ;;  %11957 = vrcp.f32 %v3860_v46 }
 0x656   :  { %v11938_v1 = vpop.eup %11937  ;;  %v1712_v28 = vmul.f32 %v11936_v62, %v13464_v30  ;;  %v11467_v15 = vpop.f32.mrf.mxu0  ;;  %11959 = vrcp.f32 %v3866_v47 }
 0x657   :  { %v11940_v21 = vpop.eup %11939  ;;  %v4037_v57 = vpop.f32.mrf.mxu1  ;;  %v5204_v30 = vrot.slane %v5135_v41, 1  ;;  %v5238_v55 = vrot.slane %v5135_v41, 2  ;;  %v5272_v38 = vrot.slane %v5135_v41, 3  ;;  %11961 = vrcp.f32 %v13694_v8 }
 0x658   :  { %v11942_v36 = vpop.eup %11941  ;;  %1727 = vrot.lane.b32.xlu0 %v1712_v28, %s12265_s3  ;;  %v5136_v14 = vmul.f32 %v11938_v1, %v4037_v57  ;;  %v4114_v24 = vpop.f32.mrf.mxu0  ;;  %11963 = vrcp.f32 %v13696_v44 }
 0x659   :  { %v1711_v11 = vmul.f32 %v11942_v36, %v13460_v31  ;;  %v5137_v20 = vmul.f32 %v11940_v21, %v4114_v24  ;;  %v11472_v23 = vpop.f32.mrf.mxu1  ;;  %v11944_v5 = vpop.eup %11943  ;;  %11965 = vrcp.f32 %v13698_v53 }
 0x65a   :  { %v5167_v60 = vrot.slane %v5136_v14, 7  ;;  %v5239_v49 = vrot.slane %v5136_v14, 1  ;;  %v5273_v34 = vrot.slane %v5136_v14, 2  ;;  %v11477_v19 = vpop.f32.mrf.mxu0  ;;  %v5205_v31 = vsel %vm5168_vm10, %v5136_v14, %v5204_v30 }
 0x65b   :  { %1725 = vrot.lane.b32.xlu1 %v1711_v11, %s12265_s3  ;;  %v5170_v32 = vrot.slane %v5137_v20, 6  ;;  %v5206_v35 = vrot.slane %v5137_v20, 7  ;;  %v5275_v42 = vrot.slane %v5137_v20, 1  ;;  %11967 = vrcp.f32 %v13702_v17 }
 0x65c   :  { %v11946_v48 = vpop.eup %11945  ;;  %v5169_v16 = vsel %vm5168_vm10, %v5167_v60, %v5135_v41  ;;  %v4268_v40 = vpop.f32.mrf.mxu0  ;;  %v5240_v37 = vsel %vm5168_vm10, %v5239_v49, %v5238_v55  ;;  %v5274_v61 = vsel %vm5168_vm10, %v5273_v34, %v5272_v38  ;;  %11969 = vrcp.f32 %v13700_v3 }
 0x65d   :  { %v11948_v10 = vpop.eup %11947  ;;  %v5172_v9 = vsel %vm5171_vm11, %v5170_v32, %v5169_v16  ;;  %v1713_v12 = vmul.f32 %v11946_v48, %v13466_v39  ;;  %v4191_v51 = vpop.f32.mrf.mxu1  ;;  %v5207_v43 = vsel %vm5171_vm11, %v5206_v35, %v5205_v31  ;;  %v5241_v7 = vsel %vm5171_vm11, %v5137_v20, %v5240_v37 }
 0x65e   :  { %v5138_v25 = vmul.f32 %v11944_v5, %v4191_v51  ;;  %v13714_v54 = vmul.f32 %v11948_v10, %v4268_v40  ;;  %v11487_v59 = vpop.f32.mrf.mxu0  ;;  %v11950_v26 = vpop.eup %11949  ;;  %v5276_v56 = vsel %vm5171_vm11, %v5275_v42, %v5274_v61 }
 0x65f   :  { %1733 = vrot.lane.b32.xlu1 %v1713_v12, %s12266_s11  ;;  %v11482_v27 = vpop.f32.mrf.mxu1  ;;  %v11952_v18 = vpop.eup %11951 }
 0x660   :  { %v5173_v39 = vrot.slane %v5138_v25, 5  ;;  %v5208_v0 = vrot.slane %v5138_v25, 6  ;;  %v5242_v22 = vrot.slane %v5138_v25, 7  ;;  %v5176_v8 = vrot.slane %v13714_v54, 4  ;;  %v11954_v62 = vpop.eup %11953 }
 0x661   :  { %v4345_v6 = vpop.f32.mrf.mxu1  ;;  %v5210_v46 = vrot.slane %v13714_v54, 5  ;;  %v5244_v44 = vrot.slane %v13714_v54, 6  ;;  %v5277_v1 = vsel %vm5174_vm12, %v5138_v25, %v5276_v56  ;;  %v11956_v57 = vpop.eup %11955  ;;  %v5278_v36 = vrot.slane %v13714_v54, 7 }
 0x662   :  { %v5140_v47 = vmul.f32 %v11950_v26, %v4345_v6  ;;  %v4422_v29 = vpop.f32.mrf.mxu0  ;;  %v5243_v53 = vsel %vm5174_vm12, %v5242_v22, %v5241_v7  ;;  %v5209_v50 = vsel %vm5174_vm12, %v5208_v0, %v5207_v43  ;;  %v5175_v63 = vsel %vm5174_vm12, %v5173_v39, %v5172_v9  ;;  %v11958_v20 = vpop.eup %11957 }
 0x663   :  { %v5141_v13 = vmul.f32 %v11952_v18, %v4422_v29  ;;  %v11492_v45 = vpop.f32.mrf.mxu1  ;;  %v5245_v49 = vsel %vm5177_vm13, %v5244_v44, %v5243_v53  ;;  %v5211_v34 = vsel %vm5177_vm13, %v5210_v46, %v5209_v50  ;;  %v5178_v19 = vsel %vm5177_vm13, %v5176_v8, %v5175_v63  ;;  %v11960_v55 = vpop.eup %11959 }
 0x664   :  { %v5179_v28 = vrot.slane %v5140_v47, 3  ;;  %v5212_v41 = vrot.slane %v5140_v47, 4  ;;  %v5246_v15 = vrot.slane %v5140_v47, 5  ;;  %v11497_v21 = vpop.f32.mrf.mxu0  ;;  %v5280_v14 = vrot.slane %v5140_v47, 6  ;;  %v11962_v39 = vpop.eup %11961 }
 0x665   :  { %v5182_v24 = vrot.slane %v5141_v13, 2  ;;  %v5248_v11 = vrot.slane %v5141_v13, 4  ;;  %v5214_v23 = vrot.slane %v5141_v13, 3  ;;  %v5282_v38 = vrot.slane %v5141_v13, 5  ;;  %v11964_v43 = vpop.eup %11963 }
 0x666   :  { %v4499_v30 = vpop.f32.mrf.mxu1  ;;  %v4576_v60 = vpop.f32.mrf.mxu0  ;;  %v5247_v32 = vsel %vm5180_vm14, %v5246_v15, %v5245_v49  ;;  %v5213_v48 = vsel %vm5180_vm14, %v5212_v41, %v5211_v34  ;;  %v5181_v40 = vsel %vm5180_vm14, %v5179_v28, %v5178_v19  ;;  %v5279_v17 = vsel %vm5177_vm13, %v5278_v36, %v5277_v1 }
 0x667   :  { %v5142_v5 = vmul.f32 %v11958_v20, %v4499_v30  ;;  %v5143_v10 = vmul.f32 %v11956_v57, %v4576_v60  ;;  %v5249_v9 = vsel %vm15313_vm15, %v5248_v11, %v5247_v32  ;;  %v5215_v12 = vsel %vm15313_vm15, %v5214_v23, %v5213_v48  ;;  %v11966_v46 = vpop.eup %11965  ;;  %v1114_v1 = vpop.xlane.xlu0 %1113  ;;  %v5361_v20 = vld [vmem:[#allocation11 + $0x38] sm:$0xff]  ;;  %v5360_v23 = vld [vmem:[#allocation11 + $0x30] sm:$0xff] }
 0x668   :  { %v11502_v16 = vpop.f32.mrf.mxu1  ;;  %v11507_v31 = vpop.f32.mrf.mxu0  ;;  %v5281_v37 = vsel %vm5180_vm14, %v5280_v14, %v5279_v17  ;;  %v5184_v3 = vsel %vm15313_vm15, %v5182_v24, %v5181_v40  ;;  %11543 = vmatprep.subr.mxu0 %v5361_v20  ;;  %11971 = vrcp.f32 %v1114_v1 }
 0x669   :  { %v5250_v35 = vrot.slane %v5142_v5, 3  ;;  %v5216_v51 = vrot.slane %v5142_v5, 2  ;;  %v5284_v59 = vrot.slane %v5142_v5, 4  ;;  %v5185_v27 = vrot.slane %v5142_v5, 1  ;;  %11544 = vmatpush3.msra.mxu0 %v5361_v20  ;;  %v11968_v48 = vpop.eup %11967  ;;  %v5357_v20 = vld [vmem:[#allocation11 + $0x18] sm:$0xff] }
 0x66a   :  { %v4653_v42 = vpop.f32.mrf.mxu1  ;;  %v5286_v7 = vrot.slane %v5143_v10, 3  ;;  %v5283_v8 = vsel %vm15313_vm15, %v5282_v38, %v5281_v37  ;;  %v5218_v45 = vrot.slane %v5143_v10, 1  ;;  %v5252_v28 = vrot.slane %v5143_v10, 2  ;;  %11545 = vmatprep.subr.mxu0 %v5360_v23 }
 0x66b   :  { %v5144_v25 = vmul.f32 %v11960_v55, %v4653_v42  ;;  %v4730_v61 = vpop.f32.mrf.mxu0  ;;  %v5251_v54 = vsel %vm15312_vm9, %v5250_v35, %v5249_v9  ;;  %v5217_v22 = vsel %vm15312_vm9, %v5216_v51, %v5215_v12  ;;  %v13750_v13 = vsel %vm15312_vm9, %v5185_v27, %v5184_v3  ;;  %v11970_v9 = vpop.eup %11969  ;;  %11546 = vmatpush3.msra.mxu0 %v5360_v23  ;;  %v5356_v23 = vld [vmem:[#allocation11 + $0x10] sm:$0xff] }
 0x66c   :  { %v5145_v0 = vmul.f32 %v11954_v62, %v4730_v61  ;;  %5266 = vrot.lane.b32.xlu1 %v5251_v54, %s12265_s3  ;;  %v11512_v26 = vpop.f32.mrf.mxu1  ;;  %5232 = vrot.lane.b32.xlu0 %v5217_v22, %s12264_s30  ;;  %v5285_v62 = vsel %vm15312_vm9, %v5284_v59, %v5283_v8  ;;  %v5359_v22 = vld [vmem:[#allocation11 + $0x28] sm:$0xff] }
 0x66d   :  { %v5188_v56 = vrot.slane %v5144_v25, 7  ;;  %v5287_v6 = vrot.slane %v5144_v25, 2  ;;  %v11517_v18 = vpop.f32.mrf.mxu0  ;;  %v5253_v44 = vrot.slane %v5144_v25, 1  ;;  %v5219_v36 = vsel %vm5168_vm10, %v5144_v25, %v5218_v45  ;;  %v5358_v26 = vld [vmem:[#allocation11 + $0x20] sm:$0xff]  ;;  %11547 = vmatprep.subr.mxu0 %v5359_v22 }
 0x66e   :  { %v5190_v47 = vrot.slane %v5145_v0, 6  ;;  %v5289_v29 = vrot.slane %v5145_v0, 1  ;;  %v5220_v15 = vrot.slane %v5145_v0, 7  ;;  %11548 = vmatpush3.msra.mxu0 %v5359_v22 }
 0x66f   :  { %v5189_v53 = vsel %vm5168_vm10, %v5188_v56, %v5143_v10  ;;  %v4807_v50 = vpop.f32.mrf.mxu1  ;;  %v5288_v63 = vsel %vm5168_vm10, %v5287_v6, %v5286_v7  ;;  %v5254_v30 = vsel %vm5168_vm10, %v5253_v44, %v5252_v28  ;;  %11549 = vmatprep.subr.mxu0 %v5358_v26 }
 0x670   :  { %v5191_v41 = vsel %vm5171_vm11, %v5190_v47, %v5189_v53  ;;  %v5146_v21 = vmul.f32 %v11962_v39, %v4807_v50  ;;  %v4884_v57 = vpop.f32.mrf.mxu0  ;;  %5300 = vrot.lane.b32.xlu1 %v5285_v62, %s12266_s11  ;;  %v5290_v14 = vsel %vm5171_vm11, %v5289_v29, %v5288_v63  ;;  %v5221_v55 = vsel %vm5171_vm11, %v5220_v15, %v5219_v36 }
 0x671   :  { %v5147_v24 = vmul.f32 %v11964_v43, %v4884_v57  ;;  %v11522_v11 = vpop.f32.mrf.mxu1  ;;  %v5255_v35 = vsel %vm5171_vm11, %v5145_v0, %v5254_v30  ;;  %11550 = vmatpush3.msra.mxu0 %v5358_v26 }
 0x672   :  { %v5192_v60 = vrot.slane %v5146_v21, 5  ;;  %v5222_v49 = vrot.slane %v5146_v21, 6  ;;  %v5256_v34 = vrot.slane %v5146_v21, 7  ;;  %v11527_v19 = vpop.f32.mrf.mxu0  ;;  %v5291_v38 = vsel %vm5174_vm12, %v5146_v21, %v5290_v14  ;;  %11551 = vmatprep.subr.mxu0 %v5357_v20 }
 0x673   :  { %v5194_v5 = vrot.slane %v5147_v24, 4  ;;  %v5292_v32 = vrot.slane %v5147_v24, 7  ;;  %v5224_v16 = vrot.slane %v5147_v24, 5  ;;  %v5258_v51 = vrot.slane %v5147_v24, 6  ;;  %11552 = vmatpush3.msra.mxu0 %v5357_v20  ;;  %v5483_v19 = vld [vmem:[#allocation10 + $0x158] sm:$0xff]  ;;  %v5484_v20 = vld [vmem:[#allocation10 + $0x160] sm:$0xff] }
 0x674   :  { %v4961_v31 = vpop.f32.mrf.mxu1  ;;  %v5038_v40 = vpop.f32.mrf.mxu0  ;;  %v5193_v10 = vsel %vm5174_vm12, %v5192_v60, %v5191_v41  ;;  %v5223_v12 = vsel %vm5174_vm12, %v5222_v49, %v5221_v55  ;;  %v5257_v25 = vsel %vm5174_vm12, %v5256_v34, %v5255_v35  ;;  %v5355_v60 = vld [vmem:[#allocation11 + $0x8] sm:$0xff]  ;;  %v5486_v49 = vld [vmem:[#allocation10 + $0x170] sm:$0xff]  ;;  %11553 = vmatprep.subr.mxu0 %v5356_v23  ;;  %v5480_v55 = vld [vmem:[#allocation10 + $0x140] sm:$0xff] }
 0x675   :  { %v5148_v17 = vmul.f32 %v11966_v46, %v4961_v31  ;;  %v5149_v42 = vmul.f32 %v11968_v48, %v5038_v40  ;;  %v5195_v61 = vsel %vm5177_vm13, %v5194_v5, %v5193_v10  ;;  %v5293_v39 = vsel %vm5177_vm13, %v5292_v32, %v5291_v38  ;;  %v11972_v24 = vpop.eup %11971  ;;  %v5485_v34 = vld [vmem:[#allocation10 + $0x168] sm:$0xff]  ;;  %5510 = vmatprep.subr.mxu1 %v5486_v49  ;;  %v5354_v32 = vld [vmem:[#allocation11] sm:$0xff]  ;;  %v5482_v48 = vld [vmem:[#allocation10 + $0x150] sm:$0xff]  ;;  %v1096_v35 = vpop.xlane.xlu0 %1095 }
 0x676   :  { %v11532_v37 = vpop.f32.mrf.mxu1  ;;  %v11537_v3 = vpop.f32.mrf.mxu0  ;;  %v5225_v6 = vsel %vm5177_vm13, %v5224_v16, %v5223_v12  ;;  %v5259_v50 = vsel %vm5177_vm13, %v5258_v51, %v5257_v25  ;;  %v1714_v5 = vmul.f32 %v11972_v24, %v13468_v33  ;;  %11554 = vmatpush3.msra.mxu0 %v5356_v23  ;;  %5511 = vmatpush1.msra.mxu1 %v5485_v34  ;;  %v13789_v38 = vld [vmem:[#allocation10 + $0x178] sm:$0xff]  ;;  %v5477_v31 = vld [vmem:[#allocation10 + $0x128] sm:$0xff]  ;;  %v5474_v49 = vld [vmem:[#allocation10 + $0x110] sm:$0xff] }
 0x677   :  { %v5196_v54 = vrot.slane %v5148_v17, 3  ;;  %v5226_v59 = vrot.slane %v5148_v17, 4  ;;  %v5294_v27 = vrot.slane %v5148_v17, 6  ;;  %v5198_v0 = vrot.slane %v5149_v42, 2  ;;  %11555 = vmatprep.subr.mxu0 %v5355_v60  ;;  %5512 = vmatprep.subr.mxu1 %v5483_v19  ;;  %v5479_v16 = vld [vmem:[#allocation10 + $0x138] sm:$0xff]  ;;  %v1093_v33 = vpop.xlane.xlu1 %1092  ;;  %v5481_v23 = vld [vmem:[#allocation10 + $0x148] sm:$0xff] }
 0x678   :  { %v5228_v43 = vrot.slane %v5149_v42, 3  ;;  %v5296_v7 = vrot.slane %v5149_v42, 5  ;;  %v5115_v56 = vpop.f32.mrf.mxu1  ;;  %v5260_v18 = vrot.slane %v5148_v17, 5  ;;  %v5262_v62 = vrot.slane %v5149_v42, 4  ;;  %11556 = vmatpush3.msra.mxu0 %v5355_v60  ;;  %5513 = vmatpush1.msra.mxu1 %v5482_v48  ;;  %v5478_v60 = vld [vmem:[#allocation10 + $0x130] sm:$0xff]  ;;  %v5473_v34 = vld [vmem:[#allocation10 + $0x108] sm:$0xff] }
 0x679   :  { %v5150_v8 = vmul.f32 %v11970_v9, %v5115_v56  ;;  %v5295_v46 = vsel %vm5180_vm14, %v5294_v27, %v5293_v39  ;;  %v5227_v44 = vsel %vm5180_vm14, %v5226_v59, %v5225_v6  ;;  %v5197_v29 = vsel %vm5180_vm14, %v5196_v54, %v5195_v61  ;;  %11557 = vmatprep.subr.mxu0 %v5354_v32  ;;  %v10910_v59 = vld [vmem:[%s15289_s6] ss:$0 sm:$0xff]  ;;  %v5475_v19 = vld [vmem:[#allocation10 + $0x118] sm:$0xff]  ;;  %v5472_v48 = vld [vmem:[#allocation10 + $0x100] sm:$0xff] }
 0x67a   :  { %v11542_v47 = vpop.f32.mrf.mxu1  ;;  %v5199_v63 = vsel %vm15313_vm15, %v5198_v0, %v5197_v29  ;;  %v5297_v1 = vsel %vm15313_vm15, %v5296_v7, %v5295_v46  ;;  %v5229_v28 = vsel %vm15313_vm15, %v5228_v43, %v5227_v44  ;;  %v5261_v57 = vsel %vm5180_vm14, %v5260_v18, %v5259_v50  ;;  %11558 = vmatpush3.msra.mxu0 %v5354_v32  ;;  %v15392_v7 = vld [vmem:[#allocation20_spill] sm:$0xff] }
 0x67b   :  { %v5298_v45 = vrot.slane %v5150_v8, 4  ;;  %v5230_v53 = vrot.slane %v5150_v8, 2  ;;  %v5200_v41 = vrot.slane %v5150_v8, 1  ;;  %v5264_v36 = vrot.slane %v5150_v8, 3  ;;  %5514 = vmatprep.subr.mxu1 %v5480_v55  ;;  %11562 = vmatprep.subr.mxu0 %v13789_v38  ;;  %v1718_v40 = vpop.permute.xlu1 %1717  ;;  %v10915_v18 = vld [vmem:[%s15290_s7] ss:$0 sm:$0xff] }
 0x67c   :  { %v5263_v11 = vsel %vm15313_vm15, %v5262_v62, %v5261_v57  ;;  %5515 = vmatpush1.msra.mxu1 %v5479_v16  ;;  %11973 = vrcp.f32 %v1093_v33  ;;  %vm1741_vm15 = vcmask 261120   ;;  %v5470_v32 = vld [vmem:[#allocation10 + $0xf0] sm:$0xff]  ;;  %v5468_v55 = vld [vmem:[#allocation10 + $0xe0] sm:$0xff]  ;;  %v5469_v16 = vld [vmem:[#allocation10 + $0xe8] sm:$0xff] }
 0x67d   :  { %v5299_v15 = vsel %vm15312_vm9, %v5298_v45, %v5297_v1  ;;  %v5231_v21 = vsel %vm15312_vm9, %v5230_v53, %v5229_v28  ;;  %v13782_v14 = vsel %vm15312_vm9, %v5200_v41, %v5199_v63  ;;  %v5265_v30 = vsel %vm15312_vm9, %v5264_v36, %v5263_v11  ;;  %5516 = vmatprep.subr.mxu1 %v5477_v31  ;;  %v15393_v36 = vld [vmem:[#allocation21_spill] sm:$0xff]  ;;  %v5465_v31 = vld [vmem:[#allocation10 + $0xc8] sm:$0xff]  ;;  %v5464_v33 = vld [vmem:[#allocation10 + $0xc0] sm:$0xff] }
 0x67e   :  { %5302 = vrot.lane.b32.xlu1 %v5299_v15, %s12266_s11  ;;  %5234 = vrot.lane.b32.xlu0 %v5231_v21, %s12264_s30  ;;  %vm1744_vm9 = vcmask 392192   ;;  %11975 = vrcp.f32 %v1096_v35  ;;  %v10919_v35 = vld [vmem:[%s15289_s6 + $0x3] ss:$0 sm:$0xff] }
 0x67f   :  { %v1720_v10 = vpop.permute.xlu1 %1719 }
 0x682   :  { %5268 = vrot.lane.b32.xlu0 %v5265_v30, %s12265_s3  ;;  %v5476_v30 = vld [vmem:[#allocation10 + $0x120] sm:$0xff] }
 0x683   :  { %5517 = vmatpush1.msra.mxu1 %v5476_v30 }
 0x684   :  { %5518 = vmatprep.subr.mxu1 %v5474_v49 }
 0x685   :  { %5519 = vmatpush1.msra.mxu1 %v5473_v34 }
 0x686   :  { %1735 = vrot.lane.b32.xlu0 %v1714_v5, %s12266_s11  ;;  %v5471_v5 = vld [vmem:[#allocation10 + $0xf8] sm:$0xff] }
 0x687   :  { %5520 = vmatprep.subr.mxu1 %v5471_v5 }
 0x688   :  { %5521 = vmatpush1.msra.mxu1 %v5470_v32 }
 0x689   :  { %v11974_v17 = vpop.eup %11973  ;;  %5522 = vmatprep.subr.mxu1 %v5468_v55 }
 0x68a   :  { %v1707_v12 = vmul.f32 %v11974_v17, %v13456_v4  ;;  %v10912_v4 = vld [vmem:[%s15289_s6 + $0x1] ss:$0 sm:$0xff] }
 0x68b   :  { %v11976_v44 = vpop.eup %11975 }
 0x68c   :  { %v1739_v3 = vsel %vm131_vm0, %v1707_v12, %v1718_v40  ;;  %v1708_v29 = vmul.f32 %v11976_v44, %v13454_v58  ;;  %v5466_v40 = vld [vmem:[#allocation10 + $0xd0] sm:$0xff] }
 0x68e   :  { %v1740_v62 = vsel %vm131_vm0, %v1708_v29, %v1720_v10 }
 0x6ca   :  { %v1728_v51 = vpop.permute.xlu0 %1727 }
 0x6cb   :  { %v1743_v28 = vsel %vm1741_vm15, %v1740_v62, %v1728_v51  ;;  %v10921_v51 = vld [vmem:[%s15290_s7 + $0x1] ss:$0 sm:$0xff] }
 0x6cd   :  { %v1726_v9 = vpop.permute.xlu1 %1725 }
 0x6ce   :  { %v1742_v61 = vsel %vm1741_vm15, %v1739_v3, %v1726_v9 }
 0x6d1   :  { %v1734_v42 = vpop.permute.xlu1 %1733 }
 0x6d2   :  { %v1745_v27 = vsel %vm1744_vm9, %v1742_v61, %v1734_v42 }
 0x6d3   :  { %v5319_v0 = vmul.f32 %v10910_v59, %v1745_v27 }
 0x6de   :  { %v5267_v37 = vpop.permute.xlu1 %5266  ;;  %v5233_v25 = vpop.permute.xlu0 %5232 }
 0x6df   :  { %v5306_v54 = vsel %vm131_vm0, %v13750_v13, %v5233_v25  ;;  %v10914_v13 = vld [vmem:[%s15289_s6 + $0x2] ss:$0 sm:$0xff] }
 0x6e0   :  { %v5308_v22 = vsel %vm1741_vm15, %v5306_v54, %v5267_v37  ;;  %v5341_v56 = vmul.f32 %v10914_v13, %v15392_v7  ;;  %v5342_v58 = vmul.f32 %v10914_v13, %v15393_v36 }
 0x6e2   :  { %v5301_v39 = vpop.permute.xlu1 %5300 }
 0x6e3   :  { %v5310_v26 = vsel %vm1744_vm9, %v5308_v22, %v5301_v39 }
 0x6e4   :  { %v5329_v43 = vmul.f32 %v10912_v4, %v5310_v26 }
 0x6e6   :  { %v5331_v6 = vadd.f32 %v5329_v43, %v5319_v0 }
 0x6e8   :  { %v5343_v8 = vadd.f32 %v5341_v56, %v5331_v6 }
 0x6ea   :  { %v13813_v46 = vadd.f32 %v10915_v18, %v5343_v8 }
 0x6ec   :  { %11559 = vmatprep.mubr.msk.f32.mxu0 %vm241_vm1, %v13813_v46 }
 0x6f0   :  { %v5235_v47 = vpop.permute.xlu0 %5234  ;;  %v5303_v63 = vpop.permute.xlu1 %5302 }
 0x6f1   :  { %v5307_v45 = vsel %vm131_vm0, %v13782_v14, %v5235_v47 }
 0x6f4   :  { %v5269_v53 = vpop.permute.xlu0 %5268 }
 0x6f5   :  { %v5309_v50 = vsel %vm1741_vm15, %v5307_v45, %v5269_v53 }
 0x6f6   :  { %v5311_v1 = vsel %vm1744_vm9, %v5309_v50, %v5303_v63 }
 0x6f7   :  { %v5330_v21 = vmul.f32 %v10912_v4, %v5311_v1  ;;  %v15396_v4 = vld [vmem:[#allocation22_spill] sm:$0xff] }
 0x6f8   :  { %v1736_v41 = vpop.permute.xlu0 %1735 }
 0x6f9   :  { %v1746_v15 = vsel %vm1744_vm9, %v1743_v28, %v1736_v41 }
 0x6fa   :  { %v5320_v57 = vmul.f32 %v10910_v59, %v1746_v15 }
 0x6fc   :  { %v5332_v24 = vadd.f32 %v5330_v21, %v5320_v57 }
 0x6fe   :  { %v5344_v11 = vadd.f32 %v5342_v58, %v5332_v24 }
 0x700   :  { %v5353_v14 = vadd.f32 %v10915_v18, %v5344_v11 }
 0x702   :  { %11560 = vmatmul.mubr.msk.f32.vlgmr.msra.gmra.mxu0 %vm241_vm1, %v5353_v14 }
 0x703   :  { %11563 = vmatpush3.msra.mxu0 %v13789_v38  ;;  %v5467_v38 = vld [vmem:[#allocation10 + $0xd8] sm:$0xff] }
 0x704   :  { %11564 = vmatprep.subr.mxu0 %v5484_v20  ;;  %5523 = vmatpush1.msra.mxu1 %v5467_v38 }
 0x705   :  { %11565 = vmatpush3.msra.mxu0 %v5484_v20  ;;  %5524 = vmatprep.subr.mxu1 %v5465_v31 }
 0x706   :  { %11566 = vmatprep.subr.mxu0 %v5481_v23  ;;  %5525 = vmatpush1.msra.mxu1 %v5464_v33 }
 0x707   :  { %11567 = vmatpush3.msra.mxu0 %v5481_v23  ;;  %11581 = vmatprep.subr.mxu1 %v15379_v2 }
 0x708   :  { %11568 = vmatprep.subr.mxu0 %v5478_v60 }
 0x709   :  { %11569 = vmatpush3.msra.mxu0 %v5478_v60 }
 0x70a   :  { %11570 = vmatprep.subr.mxu0 %v5475_v19 }
 0x70b   :  { %11571 = vmatpush3.msra.mxu0 %v5475_v19 }
 0x70c   :  { %11572 = vmatprep.subr.mxu0 %v5472_v48 }
 0x70d   :  { %11573 = vmatpush3.msra.mxu0 %v5472_v48 }
 0x70e   :  { %11574 = vmatprep.subr.mxu0 %v5469_v16 }
 0x70f   :  { %11575 = vmatpush3.msra.mxu0 %v5469_v16 }
 0x710   :  { %11576 = vmatprep.subr.mxu0 %v5466_v40 }
 0x711   :  { %11577 = vmatpush3.msra.mxu0 %v5466_v40 }
 0x712   :  { %11596 = vmatprep.subr.mxu0 %v15379_v2 }
 0x7c2   :  { %v11561_v10 = vpop.f32.mrf.mxu0 }
 0x7c3   :  { %v5440_v9 = vadd.f32 %v11561_v10, %v5353_v14 }
 0x7c4   :  { %v5434_v17 = vpop.f32.mrf.mxu0 }
 0x7c5   :  { %v5435_v42 = vadd.f32 %v5434_v17, %v13813_v46  ;;  %v5452_v12 = vmul.f32 %v10919_v35, %v5440_v9 }
 0x7c7   :  { %v5451_v37 = vmul.f32 %v10919_v35, %v5435_v42  ;;  %v13839_v25 = vadd.f32 %v10921_v51, %v5452_v12 }
 0x7c9   :  { %v13837_v3 = vadd.f32 %v10921_v51, %v5451_v37  ;;  %15395 = vst [vmem:[#allocation37_spill] sm:$0xff] %v13839_v25 }
 0x7cb   :  { %15394 = vst [vmem:[#allocation33_spill] sm:$0xff] %v13837_v3  ;;  %10922 = vmatmul.mubr.msk.f32.vlgmr.msra.gmra.mxu1 %vm241_vm1, %v13837_v3  ;;  %11578 = vmatprep.mubr.msk.f32.mxu0 %vm241_vm1, %v13837_v3 }
 0x7cc   :  { %11579 = vmatmul.mubr.msk.f32.vlgmr.msra.gmra.mxu0 %vm241_vm1, %v13839_v25  ;;  %5564 = vmatprep.mubr.f32.mxu1 %v15379_v2 }
 0x7cd   :  { %11598 = vmatprep.mubr.msk.f32.mxu0 %vm12260_vm2, %v15379_v2 }
 0x7cf   :  { %10923 = vmatmul.mubr.msk.f32.gmra.mxu1 %vm241_vm1, %v13839_v25 }
 0x7d0   :  { %11583 = vmatprep.mubr.msk.f32.mxu1 %vm12260_vm2, %v15379_v2 }
 0x88b   :  { %v5560_v61 = vpop.f32.mrf.mxu1 }
 0x88c   :  { %5648 = vrot.lane.b32.xlu0 %v5560_v61, %s12259_s8  ;;  %v14041_v17 = vpop.f32.mrf.mxu0 }
 0x88d   :  { %v13855_v54 = vpop.f32.mrf.mxu1 }
 0x88e   :  { %v6997_v39 = vrot.slane %v13855_v54, %v15396_v4  ;;  %v6990_v29 = vcombine.high %v13855_v54, %v13855_v54  ;;  %v5637_v42 = vpop.f32.mrf.mxu0 }
 0x88f   :  { %v5566_v59 = vpop.f32.mrf.mxu1  ;;  %v7369_v12 = vrot.slane %v5637_v42, %v15396_v4 }
 0x890   :  { %5652 = vrot.lane.b32.xlu0 %v5560_v61, %s12258_s4  ;;  %5650 = vrot.lane.b32.xlu1 %v5566_v59, %s12259_s8  ;;  %v13879_v0 = vrot.slane %v6997_v39, %v15396_v4  ;;  %v7005_v43 = vcombine.high %v6997_v39, %v6997_v39  ;;  %v7004_v50 = vrot.slane %v6990_v29, %v15396_v4 }
 0x891   :  { %v13958_v36 = vpop.f32.mrf.mxu1  ;;  %v7377_v51 = vcombine.high %v7369_v12, %v7369_v12  ;;  %v14052_v37 = vrot.slane %v7369_v12, %v15396_v4 }
 0x892   :  { %v7107_v56 = vrot.slane %v13879_v0, %v12413_v52  ;;  %v13892_v18 = vrot.slane %v7005_v43, %v15396_v4  ;;  %v13911_v47 = vcombine.high %v13879_v0, %v13879_v0  ;;  %v13935_v62 = vrot.slane %v7004_v50, %v15396_v4 }
 0x893   :  { %v7006_v1 = vcombine.high %v7004_v50, %v7004_v50  ;;  %v7046_v24 = vrot.slane %v13958_v36, %v15396_v4  ;;  %v7039_v34 = vcombine.high %v13958_v36, %v13958_v36  ;;  %v7479_v39 = vrot.slane %v14052_v37, %v12413_v52 }
 0x894   :  { %5656 = vrot.lane.b32.xlu0 %v5560_v61, %s12261_s29  ;;  %5654 = vrot.lane.b32.xlu1 %v5566_v59, %s12258_s4  ;;  %v7111_v46 = vrot.slane %v13892_v18, %v12413_v52  ;;  %v7115_v45 = vrot.slane %v13911_v47, %v12413_v52  ;;  %v13925_v53 = vcombine.high %v13892_v18, %v13892_v18 }
 0x895   :  { %v7123_v28 = vrot.slane %v13935_v62, %v12413_v52  ;;  %v13942_v41 = vrot.slane %v7006_v1, %v15396_v4  ;;  %v13952_v21 = vcombine.high %v13935_v62, %v13935_v62  ;;  %v7054_v14 = vcombine.high %v7046_v24, %v7046_v24 }
 0x896   :  { %v7119_v63 = vrot.slane %v13925_v53, %v12413_v52  ;;  %v13973_v20 = vrot.slane %v7046_v24, %v15396_v4  ;;  %v7053_v32 = vrot.slane %v7039_v34, %v15396_v4  ;;  %v14103_v29 = vcombine.high %v14052_v37, %v14052_v37 }
 0x897   :  { %v7127_v15 = vrot.slane %v13942_v41, %v12413_v52  ;;  %v7131_v57 = vrot.slane %v13952_v21, %v12413_v52  ;;  %v13962_v58 = vcombine.high %v13942_v41, %v13942_v41  ;;  %v13978_v23 = vrot.slane %v7054_v14, %v15396_v4 }
 0x898   :  { %5680 = vrot.lane.b32.xlu0 %v5560_v61, %s12262_s1  ;;  %5658 = vrot.lane.b32.xlu1 %v5566_v59, %s12261_s29  ;;  %v7139_v30 = vrot.slane %v13973_v20, %v12413_v52  ;;  %v13990_v49 = vcombine.high %v13973_v20, %v13973_v20  ;;  %v7055_v55 = vcombine.high %v7053_v32, %v7053_v32 }
 0x899   :  { %v7135_v11 = vrot.slane %v13962_v58, %v12413_v52  ;;  %v7143_v60 = vrot.slane %v13978_v23, %v12413_v52  ;;  %v13998_v19 = vcombine.high %v13978_v23, %v13978_v23  ;;  %v14010_v38 = vrot.slane %v7053_v32, %v15396_v4 }
 0x89a   :  { %v7147_v5 = vrot.slane %v13990_v49, %v12413_v52  ;;  %v14015_v16 = vrot.slane %v7055_v55, %v15396_v4  ;;  %v7487_v50 = vrot.slane %v14103_v29, %v12413_v52  ;;  %v7418_v34 = vrot.slane %v14041_v17, %v15396_v4 }
 0x89b   :  { %v7151_v48 = vrot.slane %v13998_v19, %v12413_v52  ;;  %v7155_v31 = vrot.slane %v14010_v38, %v12413_v52  ;;  %v14027_v40 = vcombine.high %v14010_v38, %v14010_v38 }
 0x89c   :  { %5756 = vrot.lane.b32.xlu1 %v5566_v59, %s12262_s1  ;;  %v7159_v33 = vrot.slane %v14015_v16, %v12413_v52  ;;  %v14033_v10 = vcombine.high %v14015_v16, %v14015_v16  ;;  %v14222_v25 = vrot.slane %v7418_v34, %v15396_v4 }
 0x89d   :  { %v7163_v9 = vrot.slane %v14027_v40, %v12413_v52 }
 0x89e   :  { %v7167_v35 = vrot.slane %v14033_v10, %v12413_v52  ;;  %15401 = vst [vmem:[#allocation25_spill] sm:$0xff] %v14222_v25 }
 0x8fe   :  { %v13864_v27 = vpop.permute.xlu0 %5648 }
 0x8ff   :  { %5832 = vrot.lane.b32.xlu0 %v13864_v27, %s12262_s1 }
 0x902   :  { %v13870_v22 = vpop.permute.xlu0 %5652  ;;  %v13872_v26 = vpop.permute.xlu1 %5650 }
 0x903   :  { %5984 = vrot.lane.b32.xlu0 %v13870_v22, %s12262_s1  ;;  %5908 = vrot.lane.b32.xlu1 %v13872_v26, %s12262_s1 }
 0x906   :  { %v13881_v13 = vpop.permute.xlu0 %5656  ;;  %v13883_v7 = vpop.permute.xlu1 %5654 }
 0x907   :  { %6136 = vrot.lane.b32.xlu0 %v13881_v13, %s12262_s1  ;;  %6060 = vrot.lane.b32.xlu1 %v13883_v7, %s12262_s1 }
 0x90a   :  { %v5681_v6 = vpop.permute.xlu0 %5680  ;;  %v13894_v8 = vpop.permute.xlu1 %5658 }
 0x90b   :  { %11582 = vmatpush3.xpose.msk.msra.mxu1 %vm131_vm0, %v5681_v6  ;;  %7168 = vrot.lane.b32.xlu0 %v7107_v56, %s12259_s8 }
 0x90c   :  { %6212 = vrot.lane.b32.xlu1 %v13894_v8, %s12262_s1  ;;  %11586 = vmatprep.subr.mxu1 %v15379_v2 }
 0x90e   :  { %11584 = vmatmul.mubr.msk.f32.vlgmr.msra.gmra.mxu1 %vm131_vm0, %v5560_v61  ;;  %v5757_v44 = vpop.permute.xlu1 %5756  ;;  %v14059_v61 = vrot.slane %v7377_v51, %v15396_v4 }
 0x90f   :  { %7216 = vrot.lane.b32.xlu0 %v7107_v56, %s12258_s4  ;;  %11588 = vmatprep.mubr.msk.f32.mxu1 %vm12260_vm2, %v15379_v2 }
 0x910   :  { %7170 = vrot.lane.b32.xlu1 %v7111_v46, %s12259_s8  ;;  %11587 = vmatpush3.xpose.msk.msra.mxu1 %vm131_vm0, %v5757_v44  ;;  %v7483_v6 = vrot.slane %v14059_v61, %v12413_v52 }
 0x911   :  { %11591 = vmatprep.subr.mxu1 %v15379_v2 }
 0x913   :  { %11589 = vmatmul.mubr.msk.f32.vlgmr.msra.gmra.mxu1 %vm131_vm0, %v5566_v59  ;;  %7264 = vrot.lane.b32.xlu0 %v7107_v56, %s12261_s29 }
 0x914   :  { %7218 = vrot.lane.b32.xlu1 %v7111_v46, %s12258_s4  ;;  %11593 = vmatprep.mubr.msk.f32.mxu1 %vm12260_vm2, %v15379_v2 }
 0x917   :  { %7172 = vrot.lane.b32.xlu0 %v7115_v45, %s12259_s8 }
 0x918   :  { %7266 = vrot.lane.b32.xlu1 %v7111_v46, %s12261_s29 }
 0x91b   :  { %7220 = vrot.lane.b32.xlu0 %v7115_v45, %s12258_s4 }
 0x91c   :  { %7174 = vrot.lane.b32.xlu1 %v7119_v63, %s12259_s8 }
 0x91f   :  { %7268 = vrot.lane.b32.xlu0 %v7115_v45, %s12261_s29 }
 0x920   :  { %7222 = vrot.lane.b32.xlu1 %v7119_v63, %s12258_s4 }
 0x923   :  { %7176 = vrot.lane.b32.xlu0 %v7123_v28, %s12259_s8 }
 0x924   :  { %7270 = vrot.lane.b32.xlu1 %v7119_v63, %s12261_s29 }
 0x927   :  { %7224 = vrot.lane.b32.xlu0 %v7123_v28, %s12258_s4 }
 0x928   :  { %7178 = vrot.lane.b32.xlu1 %v7127_v15, %s12259_s8 }
 0x92b   :  { %7272 = vrot.lane.b32.xlu0 %v7123_v28, %s12261_s29 }
 0x92c   :  { %7226 = vrot.lane.b32.xlu1 %v7127_v15, %s12258_s4 }
 0x92f   :  { %7180 = vrot.lane.b32.xlu0 %v7131_v57, %s12259_s8 }
 0x930   :  { %7274 = vrot.lane.b32.xlu1 %v7127_v15, %s12261_s29 }
 0x933   :  { %7228 = vrot.lane.b32.xlu0 %v7131_v57, %s12258_s4 }
 0x934   :  { %7182 = vrot.lane.b32.xlu1 %v7135_v11, %s12259_s8 }
 0x937   :  { %7276 = vrot.lane.b32.xlu0 %v7131_v57, %s12261_s29 }
 0x938   :  { %7230 = vrot.lane.b32.xlu1 %v7135_v11, %s12258_s4 }
 0x93b   :  { %7278 = vrot.lane.b32.xlu0 %v7135_v11, %s12261_s29 }
 0x93c   :  { %7184 = vrot.lane.b32.xlu1 %v7139_v30, %s12259_s8 }
 0x93f   :  { %7186 = vrot.lane.b32.xlu0 %v7143_v60, %s12259_s8 }
 0x940   :  { %7232 = vrot.lane.b32.xlu1 %v7139_v30, %s12258_s4 }
 0x943   :  { %7280 = vrot.lane.b32.xlu0 %v7139_v30, %s12261_s29 }
 0x944   :  { %7234 = vrot.lane.b32.xlu1 %v7143_v60, %s12258_s4 }
 0x947   :  { %7282 = vrot.lane.b32.xlu0 %v7143_v60, %s12261_s29 }
 0x948   :  { %7188 = vrot.lane.b32.xlu1 %v7147_v5, %s12259_s8 }
 0x94b   :  { %7190 = vrot.lane.b32.xlu0 %v7151_v48, %s12259_s8 }
 0x94c   :  { %7236 = vrot.lane.b32.xlu1 %v7147_v5, %s12258_s4 }
 0x94f   :  { %7284 = vrot.lane.b32.xlu0 %v7147_v5, %s12261_s29 }
 0x950   :  { %7238 = vrot.lane.b32.xlu1 %v7151_v48, %s12258_s4 }
 0x953   :  { %7286 = vrot.lane.b32.xlu0 %v7151_v48, %s12261_s29 }
 0x954   :  { %7192 = vrot.lane.b32.xlu1 %v7155_v31, %s12259_s8 }
 0x957   :  { %7194 = vrot.lane.b32.xlu0 %v7159_v33, %s12259_s8 }
 0x958   :  { %7240 = vrot.lane.b32.xlu1 %v7155_v31, %s12258_s4 }
 0x95b   :  { %7288 = vrot.lane.b32.xlu0 %v7155_v31, %s12261_s29  ;;  %v7426_v31 = vcombine.high %v7418_v34, %v7418_v34  ;;  %v7511_v34 = vrot.slane %v14222_v25, %v12413_v52 }
 0x95c   :  { %7242 = vrot.lane.b32.xlu1 %v7159_v33, %s12258_s4 }
 0x95f   :  { %7290 = vrot.lane.b32.xlu0 %v7159_v33, %s12261_s29 }
 0x960   :  { %7196 = vrot.lane.b32.xlu1 %v7163_v9, %s12259_s8 }
 0x963   :  { %7198 = vrot.lane.b32.xlu0 %v7167_v35, %s12259_s8 }
 0x964   :  { %7244 = vrot.lane.b32.xlu1 %v7163_v9, %s12258_s4 }
 0x967   :  { %7292 = vrot.lane.b32.xlu0 %v7163_v9, %s12261_s29 }
 0x968   :  { %7246 = vrot.lane.b32.xlu1 %v7167_v35, %s12258_s4 }
 0x96b   :  { %5662 = vrot.lane.b32.xlu0 %v13855_v54, %s12259_s8 }
 0x96c   :  { %7294 = vrot.lane.b32.xlu1 %v7167_v35, %s12261_s29 }
 0x96f   :  { %5668 = vrot.lane.b32.xlu0 %v13855_v54, %s12258_s4 }
 0x970   :  { %5664 = vrot.lane.b32.xlu1 %v13958_v36, %s12259_s8 }
 0x971   :  { %v5833_v59 = vpop.permute.xlu0 %5832 }
 0x972   :  { %11592 = vmatpush3.xpose.msk.msra.mxu1 %vm131_vm0, %v5833_v59 }
 0x973   :  { %7540 = vrot.lane.b32.xlu0 %v7479_v39, %s12259_s8  ;;  %11601 = vmatprep.subr.mxu1 %v15379_v2 }
 0x974   :  { %5670 = vrot.lane.b32.xlu1 %v13958_v36, %s12258_s4 }
 0x975   :  { %v5985_v43 = vpop.permute.xlu0 %5984  ;;  %11594 = vmatmul.mubr.msk.f32.vlgmr.msra.gmra.mxu1 %vm131_vm0, %v13864_v27  ;;  %v5909_v56 = vpop.permute.xlu1 %5908 }
 0x976   :  { %11597 = vmatpush3.xpose.msk.msra.mxu0 %vm131_vm0, %v5909_v56  ;;  %11602 = vmatpush3.xpose.msk.msra.mxu1 %vm131_vm0, %v5985_v43 }
 0x977   :  { %7542 = vrot.lane.b32.xlu0 %v7483_v6, %s12259_s8  ;;  %11603 = vmatprep.mubr.msk.f32.mxu1 %vm12260_vm2, %v15379_v2 }
 0x978   :  { %5674 = vrot.lane.b32.xlu1 %v13855_v54, %s12261_s29  ;;  %11606 = vmatprep.subr.mxu0 %v15379_v2 }
 0x979   :  { %v6137_v46 = vpop.permute.xlu0 %6136  ;;  %11599 = vmatmul.mubr.msk.f32.vlgmr.msra.gmra.mxu0 %vm131_vm0, %v13872_v26  ;;  %11604 = vmatmul.mubr.msk.f32.vlgmr.msra.gmra.mxu1 %vm131_vm0, %v13870_v22  ;;  %v6061_v27 = vpop.permute.xlu1 %6060  ;;  %v7362_v22 = vcombine.high %v5637_v42, %v5637_v42  ;;  %v14180_v42 = vrot.slane %v7426_v31, %v15396_v4 }
 0x97a   :  { %11611 = vmatprep.subr.mxu1 %v15379_v2  ;;  %11608 = vmatprep.mubr.msk.f32.mxu0 %vm12260_vm2, %v15379_v2 }
 0x97b   :  { %11607 = vmatpush3.xpose.msk.msra.mxu0 %vm131_vm0, %v6061_v27  ;;  %11612 = vmatpush3.xpose.msk.msra.mxu1 %vm131_vm0, %v6137_v46  ;;  %15398 = vst [vmem:[#allocation23_spill] sm:$0xff] %v14180_v42  ;;  %v14194_v46 = vcombine.high %v14180_v42, %v14180_v42 }
 0x97c   :  { %7588 = vrot.lane.b32.xlu1 %v7479_v39, %s12258_s4  ;;  %5676 = vrot.lane.b32.xlu0 %v13958_v36, %s12261_s29 }
 0x97d   :  { %11613 = vmatprep.mubr.msk.f32.mxu1 %vm12260_vm2, %v15379_v2  ;;  %v14094_v26 = vpop.permute.xlu0 %7168  ;;  %11616 = vmatprep.subr.mxu0 %v15379_v2  ;;  %15400 = vst [vmem:[#allocation40_spill] sm:$0xff] %v14194_v46 }
 0x97e   :  { %11609 = vmatmul.mubr.msk.f32.vlgmr.msra.gmra.mxu0 %vm131_vm0, %v13883_v7  ;;  %11614 = vmatmul.mubr.msk.f32.vlgmr.msra.gmra.mxu1 %vm131_vm0, %v13881_v13  ;;  %v6213_v44 = vpop.permute.xlu1 %6212  ;;  %v7376_v13 = vrot.slane %v7362_v22, %v15396_v4 }
 0x97f   :  { %11621 = vmatprep.subr.mxu1 %v15379_v2  ;;  %11617 = vmatpush3.xpose.msk.msra.mxu0 %vm131_vm0, %v6213_v44 }
 0x980   :  { %11622 = vmatpush3.msra.mxu1 %v13855_v54  ;;  %7590 = vrot.lane.b32.xlu1 %v7483_v6, %s12258_s4  ;;  %v14122_v54 = vcombine.high %v14059_v61, %v14059_v61  ;;  %v7378_v63 = vcombine.high %v7376_v13, %v7376_v13  ;;  %v14157_v30 = vrot.slane %v7376_v13, %v15396_v4 }
 0x981   :  { %7636 = vrot.lane.b32.xlu0 %v7479_v39, %s12261_s29  ;;  %11618 = vmatprep.mubr.msk.f32.mxu0 %vm12260_vm2, %v15379_v2  ;;  %v14112_v7 = vpop.permute.xlu0 %7216  ;;  %v7515_v39 = vrot.slane %v14180_v42, %v12413_v52  ;;  %v14204_v13 = vrot.slane %v14194_v46, %v12413_v52 }
 0x982   :  { %11619 = vmatmul.mubr.msk.f32.vlgmr.msra.gmra.mxu0 %vm131_vm0, %v13894_v8  ;;  %11626 = vmatprep.subr.mxu0 %v15379_v2  ;;  %v14118_v45 = vpop.permute.xlu1 %7170  ;;  %v7491_v28 = vrot.slane %v14122_v54, %v12413_v52  ;;  %v14146_v57 = vrot.slane %v7378_v63, %v15396_v4  ;;  %v7495_v48 = vrot.slane %v14157_v30, %v12413_v52 }
 0x983   :  { %11627 = vmatpush3.msra.mxu0 %v13958_v36  ;;  %11628 = vmatprep.mubr.msk.f32.mxu0 %vm12260_vm2, %v15379_v2  ;;  %v14188_v43 = vcombine.high %v14157_v30, %v14157_v30 }
 0x984   :  { %7638 = vrot.lane.b32.xlu1 %v7483_v6, %s12261_s29  ;;  %11636 = vmatprep.subr.mxu0 %v15379_v2  ;;  %v7499_v14 = vrot.slane %v14146_v57, %v12413_v52  ;;  %v14167_v32 = vcombine.high %v14146_v57, %v14146_v57 }
 0x985   :  { %7544 = vrot.lane.b32.xlu0 %v7487_v50, %s12259_s8  ;;  %v14132_v8 = vpop.permute.xlu0 %7264  ;;  %11623 = vmatprep.mubr.msk.f32.mxu1 %vm12260_vm2, %v15379_v2  ;;  %15399 = vst [vmem:[#allocation38_spill] sm:$0xff] %v14188_v43  ;;  %v7503_v27 = vrot.slane %v14188_v43, %v12413_v52 }
 0x986   :  { %v14136_v1 = vpop.permute.xlu1 %7218  ;;  %11631 = vmatprep.subr.mxu1 %v15379_v2  ;;  %15397 = vst [vmem:[#allocation36_spill] sm:$0xff] %v14167_v32  ;;  %v7507_v9 = vrot.slane %v14167_v32, %v12413_v52 }
 0x988   :  { %7546 = vrot.lane.b32.xlu1 %v7491_v28, %s12259_s8 }
 0x989   :  { %7592 = vrot.lane.b32.xlu0 %v7487_v50, %s12258_s4  ;;  %v14143_v15 = vpop.permute.xlu0 %7172 }
 0x98a   :  { %v7267_v36 = vpop.permute.xlu1 %7266 }
 0x98c   :  { %7594 = vrot.lane.b32.xlu1 %v7491_v28, %s12258_s4 }
 0x98d   :  { %7640 = vrot.lane.b32.xlu0 %v7487_v50, %s12261_s29  ;;  %v14150_v24 = vpop.permute.xlu0 %7220 }
 0x98e   :  { %v14152_v11 = vpop.permute.xlu1 %7174 }
 0x990   :  { %7550 = vrot.lane.b32.xlu1 %v7499_v14, %s12259_s8 }
 0x991   :  { %7642 = vrot.lane.b32.xlu0 %v7491_v28, %s12261_s29  ;;  %v7269_v60 = vpop.permute.xlu0 %7268  ;;  %v7312_v28 = vsel %vm2069_vm3, %v13879_v0, %v14094_v26  ;;  %v7313_v0 = vsel %vm2069_vm3, %v13892_v18, %v14118_v45 }
 0x992   :  { %v14163_v5 = vpop.permute.xlu1 %7222 }
 0x994   :  { %7598 = vrot.lane.b32.xlu1 %v7499_v14, %s12258_s4 }
 0x995   :  { %7548 = vrot.lane.b32.xlu0 %v7495_v48, %s12259_s8  ;;  %v7177_v55 = vpop.permute.xlu0 %7176 }
 0x996   :  { %v14173_v33 = vpop.permute.xlu1 %7270 }
 0x998   :  { %7554 = vrot.lane.b32.xlu1 %v7507_v9, %s12259_s8 }
 0x999   :  { %7596 = vrot.lane.b32.xlu0 %v7495_v48, %s12258_s4  ;;  %v7225_v35 = vpop.permute.xlu0 %7224 }
 0x99a   :  { %v7179_v12 = vpop.permute.xlu1 %7178 }
 0x99c   :  { %7602 = vrot.lane.b32.xlu1 %v7507_v9, %s12258_s4 }
 0x99d   :  { %7644 = vrot.lane.b32.xlu0 %v7495_v48, %s12261_s29  ;;  %v7273_v51 = vpop.permute.xlu0 %7272  ;;  %v7328_v48 = vsel %vm2086_vm4, %v7312_v28, %v14112_v7 }
 0x99e   :  { %v7227_v59 = vpop.permute.xlu1 %7226  ;;  %v7344_v3 = vsel %vm2103_vm5, %v7328_v48, %v14132_v8 }
 0x9a0   :  { %7558 = vrot.lane.b32.xlu1 %v7515_v39, %s12259_s8 }
 0x9a1   :  { %7646 = vrot.lane.b32.xlu0 %v7499_v14, %s12261_s29  ;;  %v7181_v56 = vpop.permute.xlu0 %7180 }
 0x9a2   :  { %v7275_v6 = vpop.permute.xlu1 %7274 }
 0x9a4   :  { %7606 = vrot.lane.b32.xlu1 %v7515_v39, %s12258_s4 }
 0x9a5   :  { %7552 = vrot.lane.b32.xlu0 %v7503_v27, %s12259_s8  ;;  %v7229_v22 = vpop.permute.xlu0 %7228 }
 0x9a6   :  { %v14200_v44 = vpop.permute.xlu1 %7182 }
 0x9a8   :  { %7562 = vrot.lane.b32.xlu1 %v14204_v13, %s12259_s8 }
 0x9a9   :  { %7600 = vrot.lane.b32.xlu0 %v7503_v27, %s12258_s4  ;;  %v7277_v50 = vpop.permute.xlu0 %7276 }
 0x9aa   :  { %v14209_v63 = vpop.permute.xlu1 %7230 }
 0x9ac   :  { %7610 = vrot.lane.b32.xlu1 %v14204_v13, %s12258_s4 }
 0x9ad   :  { %7648 = vrot.lane.b32.xlu0 %v7503_v27, %s12261_s29  ;;  %v14217_v14 = vpop.permute.xlu0 %7278  ;;  %v7329_v27 = vsel %vm2086_vm4, %v7313_v0, %v14136_v1 }
 0x9ae   :  { %v7185_v31 = vpop.permute.xlu1 %7184  ;;  %v7345_v28 = vsel %vm2103_vm5, %v7329_v27, %v7267_v36  ;;  %v7316_v36 = vsel %vm2069_vm3, %v13935_v62, %v7177_v55 }
 0x9af   :  { %v7332_v48 = vsel %vm2086_vm4, %v7316_v36, %v7225_v35  ;;  %v14265_v35 = vcombine.high %v14222_v25, %v14222_v25 }
 0x9b0   :  { %7733 = vrot.lane.b32.xlu1 %v7344_v3, %s12262_s1  ;;  %v7314_v3 = vsel %vm2069_vm3, %v13911_v47, %v14143_v15  ;;  %v7348_v15 = vsel %vm2103_vm5, %v7332_v48, %v7273_v51 }
 0x9b1   :  { %7650 = vrot.lane.b32.xlu0 %v7507_v9, %s12261_s29  ;;  %v7187_v26 = vpop.permute.xlu0 %7186  ;;  %v7330_v45 = vsel %vm2086_vm4, %v7314_v3, %v14150_v24  ;;  %v7315_v24 = vsel %vm2069_vm3, %v13925_v53, %v14152_v11  ;;  %15402 = vst [vmem:[#allocation43_spill] sm:$0xff] %v14265_v35  ;;  %v7317_v53 = vsel %vm2069_vm3, %v13942_v41, %v7179_v12 }
 0x9b2   :  { %v7233_v7 = vpop.permute.xlu1 %7232  ;;  %v7346_v1 = vsel %vm2103_vm5, %v7330_v45, %v7269_v60  ;;  %v7331_v62 = vsel %vm2086_vm4, %v7315_v24, %v14163_v5  ;;  %v7333_v5 = vsel %vm2086_vm4, %v7317_v53, %v7227_v59  ;;  %v12073_v53 = vld [vmem:[#allocation8] sm:$0xff] }
 0x9b3   :  { %v7347_v51 = vsel %vm2103_vm5, %v7331_v62, %v14173_v33  ;;  %v7349_v27 = vsel %vm2103_vm5, %v7333_v5, %v7275_v6  ;;  %v7318_v33 = vsel %vm2069_vm3, %v13952_v21, %v7181_v56  ;;  %v7320_v6 = vsel %vm2069_vm3, %v13973_v20, %v7185_v31 }
 0x9b4   :  { %7811 = vrot.lane.b32.xlu1 %v7345_v28, %s12262_s1  ;;  %v7519_v28 = vrot.slane %v14265_v35, %v12413_v52  ;;  %v7334_v12 = vsel %vm2086_vm4, %v7318_v33, %v7229_v22  ;;  %v7336_v21 = vsel %vm2086_vm4, %v7320_v6, %v7233_v7  ;;  %v7319_v22 = vsel %vm2069_vm3, %v13962_v58, %v14200_v44 }
 0x9b5   :  { %7556 = vrot.lane.b32.xlu0 %v7511_v34, %s12259_s8  ;;  %v7281_v18 = vpop.permute.xlu0 %7280  ;;  %v7350_v59 = vsel %vm2103_vm5, %v7334_v12, %v7277_v50  ;;  %v7335_v20 = vsel %vm2086_vm4, %v7319_v22, %v14209_v63 }
 0x9b6   :  { %v7235_v8 = vpop.permute.xlu1 %7234  ;;  %v7352_v3 = vsel %vm2103_vm5, %v7336_v21, %v7281_v18  ;;  %v7351_v45 = vsel %vm2103_vm5, %v7335_v20, %v14217_v14 }
 0x9b8   :  { %7889 = vrot.lane.b32.xlu1 %v7346_v1, %s12262_s1  ;;  %v7321_v1 = vsel %vm2069_vm3, %v13978_v23, %v7187_v26 }
 0x9b9   :  { %7604 = vrot.lane.b32.xlu0 %v7511_v34, %s12258_s4  ;;  %v7283_v9 = vpop.permute.xlu0 %7282  ;;  %v7337_v44 = vsel %vm2086_vm4, %v7321_v1, %v7235_v8 }
 0x9ba   :  { %v14249_v47 = vpop.permute.xlu1 %7188  ;;  %v7353_v36 = vsel %vm2103_vm5, %v7337_v44, %v7283_v9 }
 0x9bc   :  { %8045 = vrot.lane.b32.xlu1 %v7348_v15, %s12262_s1 }
 0x9bd   :  { %7652 = vrot.lane.b32.xlu0 %v7511_v34, %s12261_s29  ;;  %v14257_v60 = vpop.permute.xlu0 %7190 }
 0x9be   :  { %v14261_v55 = vpop.permute.xlu1 %7236 }
 0x9c0   :  { %7967 = vrot.lane.b32.xlu1 %v7347_v51, %s12262_s1 }
 0x9c1   :  { %7654 = vrot.lane.b32.xlu0 %v7515_v39, %s12261_s29  ;;  %v14273_v11 = vpop.permute.xlu0 %7284 }
 0x9c2   :  { %v14276_v0 = vpop.permute.xlu1 %7238 }
 0x9c4   :  { %8123 = vrot.lane.b32.xlu1 %v7349_v27, %s12262_s1 }
 0x9c5   :  { %7560 = vrot.lane.b32.xlu0 %v7519_v28, %s12259_s8  ;;  %v14285_v41 = vpop.permute.xlu0 %7286 }
 0x9c6   :  { %v14288_v39 = vpop.permute.xlu1 %7192 }
 0x9c8   :  { %8201 = vrot.lane.b32.xlu1 %v7350_v59, %s12262_s1 }
 0x9c9   :  { %7608 = vrot.lane.b32.xlu0 %v7519_v28, %s12258_s4  ;;  %v14295_v34 = vpop.permute.xlu0 %7194 }
 0x9ca   :  { %v14298_v56 = vpop.permute.xlu1 %7240 }
 0x9cc   :  { %8357 = vrot.lane.b32.xlu1 %v7352_v3, %s12262_s1 }
 0x9cd   :  { %7656 = vrot.lane.b32.xlu0 %v7519_v28, %s12261_s29  ;;  %v14306_v50 = vpop.permute.xlu0 %7288 }
 0x9ce   :  { %v14310_v31 = vpop.permute.xlu1 %7242  ;;  %v5752_v7 = vpop.f32.mrf.mxu1 }
 0x9cf   :  { %v14352_v12 = vadd.f32 %v12073_v53, %v5752_v7 }
 0x9d0   :  { %8279 = vrot.lane.b32.xlu1 %v7351_v45, %s12262_s1  ;;  %v11585_v18 = vpop.f32.mrf.mxu1 }
 0x9d1   :  { %7658 = vrot.lane.b32.xlu0 %v14204_v13, %s12261_s29  ;;  %v14319_v58 = vpop.permute.xlu0 %7290  ;;  %15407 = vst [vmem:[#allocation27_spill] sm:$0xff] %v14352_v12  ;;  %v6288_v21 = vsel %vm1042_vm6, %v14352_v12, -inf }
 0x9d2   :  { %v14322_v63 = vpop.permute.xlu1 %7196 }
 0x9d3   :  { %v5828_v48 = vpop.f32.mrf.mxu1 }
 0x9d4   :  { %8435 = vrot.lane.b32.xlu1 %v7353_v36, %s12262_s1  ;;  %v14344_v5 = vadd.f32 %v12073_v53, %v5828_v48 }
 0x9d5   :  { %v11590_v14 = vpop.f32.mrf.mxu1  ;;  %v14326_v15 = vpop.permute.xlu0 %7198 }
 0x9d6   :  { %v14328_v24 = vpop.permute.xlu1 %7244  ;;  %v6291_v28 = vsel %vm1042_vm6, %v14344_v5, -inf }
 0x9d9   :  { %v14330_v23 = vpop.permute.xlu0 %7292 }
 0x9da   :  { %v14332_v26 = vpop.permute.xlu1 %7246 }
 0x9dd   :  { %v14334_v13 = vpop.permute.xlu0 %5662 }
 0x9de   :  { %15403 = vst [vmem:[#allocation48_spill] sm:$0xff] %v14334_v13  ;;  %v14336_v62 = vpop.permute.xlu1 %7294 }
 0x9e1   :  { %v14338_v8 = vpop.permute.xlu0 %5668 }
 0x9e2   :  { %15404 = vst [vmem:[#allocation39_spill] sm:$0xff] %v14338_v8  ;;  %v14340_v51 = vpop.permute.xlu1 %5664 }
 0x9e3   :  { %15405 = vst [vmem:[#allocation24_spill] sm:$0xff] %v14340_v51 }
 0x9e5   :  { %v14342_v9 = vpop.permute.xlu0 %7540 }
 0x9e6   :  { %v14346_v27 = vpop.permute.xlu1 %5670 }
 0x9e7   :  { %15406 = vst [vmem:[#allocation41_spill] sm:$0xff] %v14346_v27 }
 0x9e9   :  { %v14350_v33 = vpop.permute.xlu0 %7542 }
 0x9ea   :  { %v14354_v59 = vpop.permute.xlu1 %5674 }
 0x9eb   :  { %15408 = vst [vmem:[#allocation46_spill] sm:$0xff] %v14354_v59 }
 0x9ee   :  { %v14356_v6 = vpop.permute.xlu0 %5676  ;;  %v14360_v3 = vpop.permute.xlu1 %7588 }
 0x9ef   :  { %15409 = vst [vmem:[#allocation26_spill] sm:$0xff] %v14356_v6 }
 0x9f0   :  { %6292 = vmax.xlane.f32.xlu0 %v6291_v28 }
 0x9f2   :  { %v14364_v20 = vpop.permute.xlu1 %7590 }
 0x9f3   :  { %v14362_v22 = vpop.permute.xlu0 %7636 }
 0x9f6   :  { %v14368_v18 = vpop.permute.xlu1 %7638 }
 0x9f7   :  { %v14366_v45 = vpop.permute.xlu0 %7544 }
 0x9f8   :  { %6289 = vmax.xlane.f32.xlu1 %v6288_v21 }
 0x9fa   :  { %v14372_v1 = vpop.permute.xlu1 %7546 }
 0x9fb   :  { %v14370_v7 = vpop.permute.xlu0 %7592 }
 0x9fe   :  { %v14376_v36 = vpop.permute.xlu1 %7594 }
 0x9ff   :  { %v14374_v44 = vpop.permute.xlu0 %7640 }
 0xa02   :  { %v14380_v14 = vpop.permute.xlu1 %7550 }
 0xa03   :  { %v14378_v48 = vpop.permute.xlu0 %7642 }
 0xa06   :  { %v14384_v21 = vpop.permute.xlu1 %7598 }
 0xa07   :  { %v14382_v28 = vpop.permute.xlu0 %7548 }
 0xa0a   :  { %v14388_v59 = vpop.permute.xlu1 %7554 }
 0xa0b   :  { %v14386_v6 = vpop.permute.xlu0 %7596  ;;  %15410 = vst [vmem:[#allocation49_spill] sm:$0xff] %v14388_v59 }
 0xa0e   :  { %v14392_v8 = vpop.permute.xlu1 %7602 }
 0xa0f   :  { %v14390_v27 = vpop.permute.xlu0 %7644  ;;  %15412 = vst [vmem:[#allocation31_spill] sm:$0xff] %v14392_v8 }
 0xa10   :  { %15411 = vst [vmem:[#allocation28_spill] sm:$0xff] %v14390_v27 }
 0xa12   :  { %v14396_v2 = vpop.permute.xlu1 %7558 }
 0xa13   :  { %v14394_v13 = vpop.permute.xlu0 %7646  ;;  %15414 = vst [vmem:[#allocation42_spill] sm:$0xff] %v14396_v2 }
 0xa14   :  { %15413 = vst [vmem:[#allocation29_spill] sm:$0xff] %v14394_v13 }
 0xa16   :  { %v14400_v51 = vpop.permute.xlu1 %7606 }
 0xa17   :  { %v14398_v35 = vpop.permute.xlu0 %7552  ;;  %15416 = vst [vmem:[#allocation45_spill] sm:$0xff] %v14400_v51 }
 0xa18   :  { %15415 = vst [vmem:[#allocation44_spill] sm:$0xff] %v14398_v35 }
 0xa1a   :  { %v14412_v2 = vpop.permute.xlu1 %7562 }
 0xa1b   :  { %v14404_v43 = vpop.permute.xlu0 %7600  ;;  %15421 = vst [vmem:[#allocation35_spill] sm:$0xff] %v14412_v2 }
 0xa1c   :  { %15418 = vst [vmem:[#allocation30_spill] sm:$0xff] %v14404_v43 }
 0xa1e   :  { %v14424_v2 = vpop.permute.xlu1 %7610 }
 0xa1f   :  { %v14418_v43 = vpop.permute.xlu0 %7648  ;;  %15423 = vst [vmem:[#allocation51_spill] sm:$0xff] %v14424_v2 }
 0xa35   :  { %v5904_v46 = vpop.f32.mrf.mxu1 }
 0xa36   :  { %v14402_v25 = vadd.f32 %v12073_v53, %v5904_v46 }
 0xa37   :  { %v11595_v42 = vpop.f32.mrf.mxu1 }
 0xa38   :  { %15417 = vst [vmem:[#allocation47_spill] sm:$0xff] %v14402_v25  ;;  %v6294_v32 = vsel %vm1042_vm6, %v14402_v25, -inf }
 0xa39   :  { %v5980_v59 = vpop.f32.mrf.mxu0  ;;  %6295 = vmax.xlane.f32.xlu1 %v6294_v32  ;;  %v6056_v8 = vpop.f32.mrf.mxu1 }
 0xa3a   :  { %v14408_v27 = vadd.f32 %v12073_v53, %v5980_v59  ;;  %v14410_v13 = vadd.f32 %v12073_v53, %v6056_v8 }
 0xa3b   :  { %v11600_v35 = vpop.f32.mrf.mxu0  ;;  %v11605_v51 = vpop.f32.mrf.mxu1 }
 0xa3c   :  { %15419 = vst [vmem:[#allocation34_spill] sm:$0xff] %v14408_v27  ;;  %15420 = vst [vmem:[#allocation32_spill] sm:$0xff] %v14410_v13  ;;  %v6297_v46 = vsel %vm1042_vm6, %v14408_v27, -inf  ;;  %v6300_v42 = vsel %vm1042_vm6, %v14410_v13, -inf  ;;  %v7411_v13 = vcombine.high %v14041_v17, %v14041_v17  ;;  %v14434_v27 = vpop.permute.xlu0 %7650 }
 0xa3d   :  { %6298 = vmax.xlane.f32.xlu0 %v6297_v46  ;;  %6301 = vmax.xlane.f32.xlu1 %v6300_v42 }
 0xa3e   :  { %v6132_v25 = vpop.f32.mrf.mxu0  ;;  %v6208_v59 = vpop.f32.mrf.mxu1 }
 0xa3f   :  { %v14420_v32 = vadd.f32 %v12073_v53, %v6132_v25  ;;  %v14422_v8 = vadd.f32 %v12073_v53, %v6208_v59 }
 0xa40   :  { %v11610_v12 = vpop.f32.mrf.mxu0  ;;  %v11615_v35 = vpop.f32.mrf.mxu1 }
 0xa41   :  { %15422 = vst [vmem:[#allocation50_spill] sm:$0xff] %v14420_v32  ;;  %v6303_v51 = vsel %vm1042_vm6, %v14420_v32, -inf  ;;  %v6306_v42 = vsel %vm1042_vm6, %v14422_v8, -inf  ;;  %v7425_v35 = vrot.slane %v7411_v13, %v15396_v4  ;;  %v14439_v32 = vpop.permute.xlu1 %7733  ;;  %v14441_v2 = vpop.permute.xlu0 %7556 }
 0xa42   :  { %v6284_v46 = vpop.f32.mrf.mxu0  ;;  %6304 = vmax.xlane.f32.xlu0 %v6303_v51  ;;  %6307 = vmax.xlane.f32.xlu1 %v6306_v42  ;;  %15424 = vst [vmem:[#allocation52_spill] sm:$0xff] %v14439_v32 }
 0xa43   :  { %v14432_v25 = vadd.f32 %v12073_v53, %v6284_v46  ;;  %v7427_v17 = vcombine.high %v7425_v35, %v7425_v35  ;;  %v14456_v13 = vrot.slane %v7425_v35, %v15396_v4  ;;  %v7323_v35 = vsel %vm2069_vm3, %v13998_v19, %v14257_v60 }
 0xa44   :  { %v11620_v59 = vpop.f32.mrf.mxu0 }
 0xa45   :  { %v6309_v12 = vsel %vm1042_vm6, %v14432_v25, -inf  ;;  %v14443_v51 = vpop.permute.xlu1 %7811  ;;  %v14446_v53 = vrot.slane %v7427_v17, %v15396_v4  ;;  %v14448_v46 = vpop.permute.xlu0 %7604  ;;  %v7322_v17 = vsel %vm2069_vm3, %v13990_v49, %v14249_v47  ;;  %v7339_v47 = vsel %vm2086_vm4, %v7323_v35, %v14276_v0 }
 0xa46   :  { %6310 = vmax.xlane.f32.xlu0 %v6309_v12  ;;  %15425 = vst [vmem:[#allocation20_spill] sm:$0xff] %v14443_v51  ;;  %v7338_v32 = vsel %vm2086_vm4, %v7322_v17, %v14261_v55  ;;  %v7324_v17 = vsel %vm2069_vm3, %v14010_v38, %v14288_v39  ;;  %v7325_v38 = vsel %vm2069_vm3, %v14015_v16, %v14295_v34 }
 0xa47   :  { %v7531_v42 = vrot.slane %v14446_v53, %v12413_v52  ;;  %v7354_v4 = vsel %vm2103_vm5, %v7338_v32, %v14273_v11  ;;  %v14483_v55 = vcombine.high %v14446_v53, %v14446_v53  ;;  %v7355_v11 = vsel %vm2103_vm5, %v7339_v47, %v14285_v41 }
 0xa48   :  { %v14501_v41 = vcombine.high %v14456_v13, %v14456_v13  ;;  %v7340_v35 = vsel %vm2086_vm4, %v7324_v17, %v14298_v56  ;;  %v7341_v39 = vsel %vm2086_vm4, %v7325_v38, %v14310_v31  ;;  %v7684_v31 = vsel %vm2069_vm3, %v14052_v37, %v14342_v9 }
 0xa49   :  { %v14452_v59 = vpop.permute.xlu1 %7889  ;;  %v14458_v12 = vpop.permute.xlu0 %7652  ;;  %v7539_v19 = vrot.slane %v14483_v55, %v12413_v52  ;;  %v7356_v47 = vsel %vm2103_vm5, %v7340_v35, %v14306_v50  ;;  %v7357_v56 = vsel %vm2103_vm5, %v7341_v39, %v14319_v58  ;;  %v7327_v50 = vsel %vm2069_vm3, %v14033_v10, %v14326_v15  ;;  %v15434_v39 = vld [vmem:[#allocation31_spill] sm:$0xff] }
 0xa4a   :  { %15426 = vst [vmem:[#allocation21_spill] sm:$0xff] %v14452_v59  ;;  %v7527_v59 = vrot.slane %v14456_v13, %v12413_v52  ;;  %v7343_v16 = vsel %vm2086_vm4, %v7327_v50, %v14332_v26  ;;  %v7700_v10 = vsel %vm2086_vm4, %v7684_v31, %v14360_v3  ;;  %v7326_v37 = vsel %vm2069_vm3, %v14027_v40, %v14322_v63  ;;  %v15435_v50 = vld [vmem:[#allocation30_spill] sm:$0xff] }
 0xa4b   :  { %v7359_v34 = vsel %vm2103_vm5, %v7343_v16, %v14336_v62  ;;  %v14551_v15 = vsel %vm2103_vm5, %v7700_v10, %v14362_v22  ;;  %v7686_v62 = vsel %vm2069_vm3, %v14103_v29, %v14366_v45  ;;  %v7342_v3 = vsel %vm2086_vm4, %v7326_v37, %v14328_v24  ;;  %v15436_v10 = vld [vmem:[#allocation42_spill] sm:$0xff]  ;;  %v15437_v37 = vld [vmem:[#allocation23_spill] sm:$0xff] }
 0xa4c   :  { %v7702_v22 = vsel %vm2086_vm4, %v7686_v62, %v14370_v7  ;;  %v7685_v29 = vsel %vm2069_vm3, %v14059_v61, %v14350_v33  ;;  %v7687_v63 = vsel %vm2069_vm3, %v14122_v54, %v14372_v1  ;;  %v7689_v54 = vsel %vm2069_vm3, %v14146_v57, %v14380_v14  ;;  %v15427_v1 = vld [vmem:[#allocation27_spill] sm:$0xff] }
 0xa4d   :  { %v14464_v51 = vpop.permute.xlu1 %8045  ;;  %v14477_v49 = vpop.permute.xlu0 %7654  ;;  %v14573_v35 = vsel %vm2103_vm5, %v7702_v22, %v14374_v44  ;;  %v7688_v33 = vsel %vm2069_vm3, %v14157_v30, %v14382_v28  ;;  %v15430_v30 = vld [vmem:[#allocation49_spill] sm:$0xff]  ;;  %v15431_v28 = vld [vmem:[#allocation36_spill] sm:$0xff]  ;;  %v7693_v62 = vsel %vm2069_vm3, %v15437_v37, %v15436_v10 }
 0xa4e   :  { %v7704_v7 = vsel %vm2086_vm4, %v7688_v33, %v14386_v6  ;;  %v7691_v6 = vsel %vm2069_vm3, %v15431_v28, %v15430_v30  ;;  %v15449_v30 = vld [vmem:[#allocation32_spill] sm:$0xff] }
 0xa51   :  { %v14487_v32 = vpop.permute.xlu1 %7967  ;;  %v14493_v60 = vpop.permute.xlu0 %7560 }
 0xa53   :  { %7566 = vrot.lane.b32.xlu1 %v7531_v42, %s12259_s8 }
 0xa55   :  { %v14497_v0 = vpop.permute.xlu1 %8123 }
 0xa57   :  { %7614 = vrot.lane.b32.xlu1 %v7531_v42, %s12258_s4 }
 0xa5b   :  { %8513 = vrot.lane.b32.xlu1 %v7354_v4, %s12262_s1  ;;  %v14508_v4 = vpop.permute.xlu0 %7608 }
 0xa5c   :  { %7564 = vrot.lane.b32.xlu0 %v7527_v59, %s12259_s8 }
 0xa5f   :  { %8591 = vrot.lane.b32.xlu1 %v7355_v11, %s12262_s1  ;;  %v14516_v11 = vpop.permute.xlu1 %8201 }
 0xa60   :  { %7612 = vrot.lane.b32.xlu0 %v7527_v59, %s12258_s4 }
 0xa63   :  { %7570 = vrot.lane.b32.xlu1 %v7539_v19, %s12259_s8 }
 0xa64   :  { %7660 = vrot.lane.b32.xlu0 %v7527_v59, %s12261_s29  ;;  %v7535_v59 = vrot.slane %v14501_v41, %v12413_v52  ;;  %v14527_v52 = vpop.permute.xlu0 %7656 }
 0xa67   :  { %7618 = vrot.lane.b32.xlu1 %v7539_v19, %s12258_s4 }
 0xa68   :  { %7662 = vrot.lane.b32.xlu0 %v7531_v42, %s12261_s29  ;;  %v14534_v42 = vpop.permute.xlu1 %8357  ;;  %v14545_v58 = vpop.permute.xlu0 %7658 }
 0xa6b   :  { %8669 = vrot.lane.b32.xlu1 %v7356_v47, %s12262_s1  ;;  %v15433_v47 = vld [vmem:[#allocation38_spill] sm:$0xff] }
 0xa6c   :  { %7568 = vrot.lane.b32.xlu0 %v7535_v59, %s12259_s8  ;;  %v14553_v26 = vpop.permute.xlu1 %8279 }
 0xa6f   :  { %8747 = vrot.lane.b32.xlu1 %v7357_v56, %s12262_s1  ;;  %v7707_v56 = vsel %vm2086_vm4, %v7691_v6, %v15434_v39 }
 0xa70   :  { %7616 = vrot.lane.b32.xlu0 %v7535_v59, %s12258_s4  ;;  %v14584_v24 = vpop.permute.xlu1 %8435  ;;  %v14641_v31 = vsel %vm2103_vm5, %v7707_v56, %v14434_v27 }
 0xa73   :  { %8903 = vrot.lane.b32.xlu1 %v7359_v34, %s12262_s1 }
 0xa74   :  { %7664 = vrot.lane.b32.xlu0 %v7535_v59, %s12261_s29  ;;  %v15429_v59 = vld [vmem:[#allocation29_spill] sm:$0xff] }
 0xa77   :  { %9124 = vrot.lane.b32.xlu1 %v14551_v15, %s12262_s1 }
 0xa78   :  { %7666 = vrot.lane.b32.xlu0 %v7539_v19, %s12261_s29  ;;  %v7358_v19 = vsel %vm2103_vm5, %v7342_v3, %v14330_v23  ;;  %v7701_v23 = vsel %vm2086_vm4, %v7685_v29, %v14364_v20  ;;  %v15441_v29 = vld [vmem:[#allocation40_spill] sm:$0xff] }
 0xa79   :  { %v6293_v9 = vpop.xlane.xlu0 %6292  ;;  %v14592_v45 = vsel %vm2103_vm5, %v7701_v23, %v14368_v18  ;;  %v7705_v18 = vsel %vm2086_vm4, %v7689_v54, %v14384_v21  ;;  %v15432_v21 = vld [vmem:[#allocation44_spill] sm:$0xff]  ;;  %v15445_v54 = vmov 0.0  }
 0xa7a   :  { %v6313_v17 = vsub.f32 %v14344_v5, %v6293_v9  ;;  %v7703_v5 = vsel %vm2086_vm4, %v7687_v63, %v14376_v36  ;;  %v15428_v36 = vld [vmem:[#allocation28_spill] sm:$0xff]  ;;  %v14619_v57 = vsel %vm2103_vm5, %v7705_v18, %v15429_v59  ;;  %v7690_v38 = vsel %vm2069_vm3, %v15433_v47, %v15432_v21  ;;  %v15438_v9 = vld [vmem:[#allocation45_spill] sm:$0xff]  ;;  %v15448_v59 = vld [vmem:[#allocation34_spill] sm:$0xff] }
 0xa7b   :  { %9278 = vrot.lane.b32.xlu1 %v14573_v35, %s12262_s1  ;;  %v14596_v61 = vsel %vm2103_vm5, %v7703_v5, %v14378_v48  ;;  %v14615_v48 = vsel %vm2103_vm5, %v7704_v7, %v15428_v36  ;;  %v7706_v16 = vsel %vm2086_vm4, %v7690_v38, %v15435_v50  ;;  %v7709_v3 = vsel %vm2086_vm4, %v7693_v62, %v15438_v9  ;;  %v15442_v23 = vld [vmem:[#allocation24_spill] sm:$0xff]  ;;  %v15450_v38 = vld [vmem:[#allocation50_spill] sm:$0xff] }
 0xa7c   :  { %v6322_v40 = vmul.f32 1.442695, %v6313_v17  ;;  %8825 = vrot.lane.b32.xlu0 %v7358_v19, %s12262_s1  ;;  %v14637_v34 = vsel %vm2103_vm5, %v7706_v16, %v14418_v43  ;;  %v15439_v43 = vld [vmem:[#allocation25_spill] sm:$0xff]  ;;  %v14661_v19 = vsel %vm2103_vm5, %v7709_v3, %v14477_v49 }
 0xa7d   :  { %v7692_v22 = vsel %vm2069_vm3, %v15439_v43, %v14441_v2  ;;  %v15440_v2 = vld [vmem:[#allocation35_spill] sm:$0xff] }
 0xa7e   :  { %11977 = vpow2.f32 %v6322_v40  ;;  %v7708_v27 = vsel %vm2086_vm4, %v7692_v22, %v14448_v46  ;;  %v7695_v63 = vsel %vm2069_vm3, %v15441_v29, %v15440_v2  ;;  %v15443_v46 = vld [vmem:[#allocation51_spill] sm:$0xff] }
 0xa7f   :  { %9355 = vrot.lane.b32.xlu1 %v14596_v61, %s12262_s1  ;;  %v14665_v40 = vsel %vm2103_vm5, %v7708_v27, %v14458_v12  ;;  %v7711_v49 = vsel %vm2086_vm4, %v7695_v63, %v15443_v46  ;;  %v15444_v12 = vld [vmem:[#allocation43_spill] sm:$0xff]  ;;  %v15452_v46 = vld [vmem:[#allocation41_spill] sm:$0xff] }
 0xa80   :  { %9201 = vrot.lane.b32.xlu0 %v14592_v45, %s12262_s1  ;;  %v7694_v5 = vsel %vm2069_vm3, %v15444_v12, %v14493_v60  ;;  %v15451_v2 = vld [vmem:[#allocation39_spill] sm:$0xff]  ;;  %v15453_v12 = vld [vmem:[#allocation46_spill] sm:$0xff] }
 0xa81   :  { %v6290_v20 = vpop.xlane.xlu1 %6289  ;;  %v7710_v33 = vsel %vm2086_vm4, %v7694_v5, %v14508_v4  ;;  %v15446_v4 = vld [vmem:[#allocation48_spill] sm:$0xff] }
 0xa82   :  { %v6312_v44 = vsub.f32 %v15427_v1, %v6290_v20  ;;  %v14689_v20 = vsel %vm2103_vm5, %v7711_v49, %v14545_v58  ;;  %v14693_v18 = vsel %vm2103_vm5, %v7710_v33, %v14527_v52  ;;  %v15447_v58 = vld [vmem:[#allocation47_spill] sm:$0xff] }
 0xa83   :  { %9509 = vrot.lane.b32.xlu1 %v14619_v57, %s12262_s1 }
 0xa84   :  { %v6320_v14 = vmul.f32 1.442695, %v6312_v44  ;;  %9432 = vrot.lane.b32.xlu0 %v14615_v48, %s12262_s1 }
 0xa86   :  { %11979 = vpow2.f32 %v6320_v14 }
 0xa87   :  { %9663 = vrot.lane.b32.xlu1 %v14641_v31, %s12262_s1 }
 0xa88   :  { %9586 = vrot.lane.b32.xlu0 %v14637_v34, %s12262_s1 }
 0xa8b   :  { %v14655_v17 = vpop.eup %11977  ;;  %9817 = vrot.lane.b32.xlu1 %v14661_v19, %s12262_s1 }
 0xa8c   :  { %11629 = vmatmul.mubr.msk.f32.vlgmr.msra.gmra.mxu0 %vm1042_vm6, %v14655_v17  ;;  %9740 = vrot.lane.b32.xlu0 %v14665_v40, %s12262_s1 }
 0xa8d   :  { %11637 = vmatpush3.msra.mxu0 %v15442_v23  ;;  %11638 = vmatprep.mubr.msk.f32.mxu0 %vm12260_vm2, %v15445_v54 }
 0xa8e   :  { %11646 = vmatprep.subr.mxu0 %v15445_v54 }
 0xa8f   :  { %9971 = vrot.lane.b32.xlu1 %v14689_v20, %s12262_s1 }
 0xa90   :  { %9894 = vrot.lane.b32.xlu0 %v14693_v18, %s12262_s1 }
 0xa93   :  { %v14699_v60 = vpop.eup %11979 }
 0xa94   :  { %11624 = vmatmul.mubr.msk.f32.vlgmr.msra.gmra.mxu1 %vm1042_vm6, %v14699_v60 }
 0xa95   :  { %11632 = vmatpush3.msra.mxu1 %v15446_v4  ;;  %11633 = vmatprep.mubr.msk.f32.mxu1 %vm12260_vm2, %v15445_v54 }
 0xa96   :  { %11641 = vmatprep.subr.mxu1 %v15445_v54 }
 0xac2   :  { %v6296_v52 = vpop.xlane.xlu1 %6295 }
 0xac3   :  { %v6314_v7 = vsub.f32 %v15447_v58, %v6296_v52 }
 0xac5   :  { %v6324_v1 = vmul.f32 1.442695, %v6314_v7 }
 0xac6   :  { %v6299_v44 = vpop.xlane.xlu0 %6298  ;;  %v6302_v36 = vpop.xlane.xlu1 %6301 }
 0xac7   :  { %11981 = vpow2.f32 %v6324_v1  ;;  %v6315_v14 = vsub.f32 %v15448_v59, %v6299_v44  ;;  %v6316_v28 = vsub.f32 %v15449_v30, %v6302_v36  ;;  %v15454_v1 = vld [vmem:[#allocation26_spill] sm:$0xff] }
 0xac9   :  { %v6326_v6 = vmul.f32 1.442695, %v6315_v14  ;;  %v6328_v21 = vmul.f32 1.442695, %v6316_v28  ;;  %v15456_v28 = vld [vmem:[#allocation20_spill] sm:$0xff] }
 0xacb   :  { %11983 = vpow2.f32 %v6326_v6  ;;  %v6305_v47 = vpop.xlane.xlu0 %6304  ;;  %v6308_v56 = vpop.xlane.xlu1 %6307  ;;  %v15457_v6 = vld [vmem:[#allocation21_spill] sm:$0xff] }
 0xacc   :  { %11985 = vpow2.f32 %v6328_v21  ;;  %v6317_v39 = vsub.f32 %v15450_v38, %v6305_v47  ;;  %v6318_v50 = vsub.f32 %v14422_v8, %v6308_v56 }
 0xace   :  { %v6330_v16 = vmul.f32 1.442695, %v6317_v39  ;;  %v6332_v10 = vmul.f32 1.442695, %v6318_v50 }
 0xacf   :  { %v6311_v37 = vpop.xlane.xlu0 %6310  ;;  %v7567_v9 = vpop.permute.xlu1 %7566 }
 0xad0   :  { %11987 = vpow2.f32 %v6330_v16  ;;  %v6319_v62 = vsub.f32 %v14432_v25, %v6311_v37  ;;  %v7697_v58 = vsel %vm2069_vm3, %v14446_v53, %v7567_v9 }
 0xad1   :  { %11989 = vpow2.f32 %v6332_v10 }
 0xad2   :  { %v6334_v3 = vmul.f32 1.442695, %v6319_v62 }
 0xad3   :  { %v7565_v43 = vpop.permute.xlu0 %7564  ;;  %v7615_v27 = vpop.permute.xlu1 %7614 }
 0xad4   :  { %v14713_v22 = vpop.eup %11981  ;;  %11991 = vpow2.f32 %v6334_v3  ;;  %v7696_v23 = vsel %vm2069_vm3, %v14456_v13, %v7565_v43  ;;  %v7713_v7 = vsel %vm2086_vm4, %v7697_v58, %v7615_v27 }
 0xad5   :  { %11634 = vmatmul.mubr.msk.f32.vlgmr.msra.gmra.mxu1 %vm1042_vm6, %v14713_v22 }
 0xad6   :  { %11642 = vmatpush3.msra.mxu1 %v15451_v2  ;;  %11643 = vmatprep.mubr.msk.f32.mxu1 %vm12260_vm2, %v15445_v54 }
 0xad7   :  { %v7613_v8 = vpop.permute.xlu0 %7612  ;;  %11651 = vmatprep.subr.mxu1 %v15445_v54  ;;  %v14723_v29 = vpop.permute.xlu1 %8513 }
 0xad8   :  { %v14721_v25 = vpop.eup %11983  ;;  %v7712_v49 = vsel %vm2086_vm4, %v7696_v23, %v7613_v8 }
 0xad9   :  { %v14725_v63 = vpop.eup %11985  ;;  %11639 = vmatmul.mubr.msk.f32.vlgmr.msra.gmra.mxu0 %vm1042_vm6, %v14721_v25 }
 0xada   :  { %11644 = vmatmul.mubr.msk.f32.vlgmr.msra.gmra.mxu1 %vm1042_vm6, %v14725_v63  ;;  %11647 = vmatpush3.msra.mxu0 %v15452_v46 }
 0xadb   :  { %11652 = vmatpush3.msra.mxu1 %v15453_v12  ;;  %v7661_v5 = vpop.permute.xlu0 %7660  ;;  %11648 = vmatprep.mubr.msk.f32.mxu0 %vm12260_vm2, %v15445_v54  ;;  %v14741_v4 = vpop.permute.xlu1 %8591 }
 0xadc   :  { %v14739_v33 = vsel %vm2103_vm5, %v7712_v49, %v7661_v5  ;;  %11656 = vmatprep.subr.mxu0 %v15445_v54  ;;  %11653 = vmatprep.mubr.msk.f32.mxu1 %vm12260_vm2, %v15445_v54 }
 0xadd   :  { %v14746_v13 = vpop.eup %11987  ;;  %10048 = vrot.lane.b32.xlu0 %v14739_v33, %s12262_s1  ;;  %11661 = vmatprep.subr.mxu1 %v15445_v54 }
 0xade   :  { %v14751_v52 = vpop.eup %11989  ;;  %11649 = vmatmul.mubr.msk.f32.vlgmr.msra.gmra.mxu0 %vm1042_vm6, %v14746_v13 }
 0xadf   :  { %11654 = vmatmul.mubr.msk.f32.vlgmr.msra.gmra.mxu1 %vm1042_vm6, %v14751_v52  ;;  %11657 = vmatpush3.msra.mxu0 %v15454_v1  ;;  %v7663_v44 = vpop.permute.xlu0 %7662  ;;  %v14770_v59 = vpop.permute.xlu1 %7570 }
 0xae0   :  { %11662 = vmatpush3.xpose.msk.msra.mxu1 %vm131_vm0, %v14551_v15  ;;  %v14764_v36 = vsel %vm2103_vm5, %v7713_v7, %v7663_v44  ;;  %11658 = vmatprep.mubr.msk.f32.mxu0 %vm12260_vm2, %v15445_v54  ;;  %v15455_v15 = vld [vmem:[#allocation52_spill] sm:$0xff] }
 0xae1   :  { %v14768_v53 = vpop.eup %11991  ;;  %11663 = vmatprep.mubr.msk.f32.mxu1 %vm12260_vm2, %v15445_v54  ;;  %11666 = vmatprep.subr.mxu0 %v15445_v54 }
 0xae2   :  { %11671 = vmatprep.subr.mxu1 %v15445_v54  ;;  %10125 = vrot.lane.b32.xlu1 %v14764_v36, %s12262_s1 }
 0xae3   :  { %11659 = vmatmul.mubr.msk.f32.vlgmr.msra.gmra.mxu0 %vm1042_vm6, %v14768_v53  ;;  %11664 = vmatmul.mubr.msk.f32.vlgmr.msra.gmra.mxu1 %vm131_vm0, %v15455_v15  ;;  %v7569_v14 = vpop.permute.xlu0 %7568  ;;  %v7619_v30 = vpop.permute.xlu1 %7618 }
 0xae4   :  { %11667 = vmatpush3.xpose.msk.msra.mxu0 %vm131_vm0, %v14592_v45  ;;  %11672 = vmatpush3.xpose.msk.msra.mxu1 %vm131_vm0, %v14573_v35 }
 0xae5   :  { %11668 = vmatprep.mubr.msk.f32.mxu0 %vm12260_vm2, %v15445_v54  ;;  %11673 = vmatprep.mubr.msk.f32.mxu1 %vm12260_vm2, %v15445_v54 }
 0xae6   :  { %11676 = vmatprep.subr.mxu0 %v15445_v54  ;;  %11681 = vmatprep.subr.mxu1 %v15445_v54 }
 0xae7   :  { %11669 = vmatmul.mubr.msk.f32.vlgmr.msra.gmra.mxu0 %vm131_vm0, %v15456_v28  ;;  %11674 = vmatmul.mubr.msk.f32.vlgmr.msra.gmra.mxu1 %vm131_vm0, %v15457_v6  ;;  %v7617_v35 = vpop.permute.xlu0 %7616  ;;  %v8670_v45 = vpop.permute.xlu1 %8669 }
 0xae8   :  { %11677 = vmatpush3.xpose.msk.msra.mxu0 %vm131_vm0, %v14596_v61  ;;  %11682 = vmatpush3.xpose.msk.msra.mxu1 %vm131_vm0, %v14615_v48 }
 0xae9   :  { %11678 = vmatprep.mubr.msk.f32.mxu0 %vm12260_vm2, %v15445_v54  ;;  %11683 = vmatprep.mubr.msk.f32.mxu1 %vm12260_vm2, %v15445_v54 }
 0xaea   :  { %11686 = vmatprep.subr.mxu0 %v15445_v54  ;;  %11691 = vmatprep.subr.mxu1 %v15445_v54 }
 0xaeb   :  { %11679 = vmatmul.mubr.msk.f32.vlgmr.msra.gmra.mxu0 %vm131_vm0, %v14487_v32  ;;  %11684 = vmatmul.mubr.msk.f32.vlgmr.msra.gmra.mxu1 %vm131_vm0, %v14464_v51  ;;  %v7665_v51 = vpop.permute.xlu0 %7664  ;;  %v8748_v32 = vpop.permute.xlu1 %8747 }
 0xaec   :  { %11687 = vmatpush3.xpose.msk.msra.mxu0 %vm131_vm0, %v14619_v57  ;;  %11692 = vmatpush3.xpose.msk.msra.mxu1 %vm131_vm0, %v14637_v34 }
 0xaed   :  { %11688 = vmatprep.mubr.msk.f32.mxu0 %vm12260_vm2, %v15445_v54  ;;  %11693 = vmatprep.mubr.msk.f32.mxu1 %vm12260_vm2, %v15445_v54 }
 0xaee   :  { %11696 = vmatprep.subr.mxu0 %v15445_v54  ;;  %11701 = vmatprep.subr.mxu1 %v15445_v54 }
 0xaef   :  { %11689 = vmatmul.mubr.msk.f32.vlgmr.msra.gmra.mxu0 %vm131_vm0, %v14497_v0  ;;  %11694 = vmatmul.mubr.msk.f32.vlgmr.msra.gmra.mxu1 %vm131_vm0, %v14516_v11  ;;  %v7667_v0 = vpop.permute.xlu0 %7666  ;;  %v7698_v11 = vsel %vm2069_vm3, %v14501_v41, %v7569_v14  ;;  %v7699_v41 = vsel %vm2069_vm3, %v14483_v55, %v14770_v59  ;;  %vm15458_vm3 = vcmask 31744  }
 0xaf0   :  { %11697 = vmatpush3.xpose.msk.msra.mxu0 %vm131_vm0, %v14641_v31  ;;  %11702 = vmatpush3.xpose.msk.msra.mxu1 %vm131_vm0, %v14665_v40  ;;  %v7715_v48 = vsel %vm2086_vm4, %v7699_v41, %v7619_v30 }
 0xaf1   :  { %11698 = vmatprep.mubr.msk.f32.mxu0 %vm12260_vm2, %v15445_v54  ;;  %11703 = vmatprep.mubr.msk.f32.mxu1 %vm12260_vm2, %v15445_v54  ;;  %v14886_v57 = vsel %vm2103_vm5, %v7715_v48, %v7667_v0 }
 0xaf2   :  { %11706 = vmatprep.subr.mxu0 %v15445_v54  ;;  %11711 = vmatprep.subr.mxu1 %v15445_v54 }
 0xaf3   :  { %11699 = vmatmul.mubr.msk.f32.vlgmr.msra.gmra.mxu0 %vm131_vm0, %v14553_v26  ;;  %11704 = vmatmul.mubr.msk.f32.vlgmr.msra.gmra.mxu1 %vm131_vm0, %v14534_v42  ;;  %v8904_v42 = vpop.permute.xlu1 %8903  ;;  %v7714_v26 = vsel %vm2086_vm4, %v7698_v11, %v7617_v35  ;;  %v8826_v61 = vpop.permute.xlu0 %8825  ;;  %vm15459_vm4 = vmmov %vm15458_vm3 }
 0xaf4   :  { %11707 = vmatpush3.xpose.msk.msra.mxu0 %vm131_vm0, %v14661_v19  ;;  %11712 = vmatpush3.xpose.msk.msra.mxu1 %vm131_vm0, %v14693_v18 }
 0xaf5   :  { %11708 = vmatprep.mubr.msk.f32.mxu0 %vm12260_vm2, %v15445_v54  ;;  %11713 = vmatprep.mubr.msk.f32.mxu1 %vm12260_vm2, %v15445_v54 }
 0xaf6   :  { %11716 = vmatprep.subr.mxu0 %v15445_v54  ;;  %11721 = vmatprep.subr.mxu1 %v15445_v54 }
 0xaf7   :  { %11709 = vmatmul.mubr.msk.f32.vlgmr.msra.gmra.mxu0 %vm131_vm0, %v14584_v24  ;;  %11714 = vmatmul.mubr.msk.f32.vlgmr.msra.gmra.mxu1 %vm131_vm0, %v14723_v29  ;;  %v14866_v24 = vsel %vm2103_vm5, %v7714_v26, %v7665_v51  ;;  %v9125_v34 = vpop.permute.xlu1 %9124  ;;  %v9202_v55 = vpop.permute.xlu0 %9201  ;;  %vm15460_vm5 = vmmov %vm15458_vm3 }
 0xaf8   :  { %11717 = vmatpush3.xpose.msk.msra.mxu0 %vm131_vm0, %v14689_v20  ;;  %11722 = vmatpush3.xpose.msk.msra.mxu1 %vm131_vm0, %v14739_v33 }
 0xaf9   :  { %11718 = vmatprep.mubr.msk.f32.mxu0 %vm12260_vm2, %v15445_v54  ;;  %11723 = vmatprep.mubr.msk.f32.mxu1 %vm12260_vm2, %v15445_v54 }
 0xafa   :  { %11726 = vmatprep.subr.mxu0 %v15445_v54  ;;  %11731 = vmatprep.subr.mxu1 %v15445_v54 }
 0xafb   :  { %11719 = vmatmul.mubr.msk.f32.vlgmr.msra.gmra.mxu0 %vm131_vm0, %v14741_v4  ;;  %11724 = vmatmul.mubr.msk.f32.vlgmr.msra.gmra.mxu1 %vm131_vm0, %v8670_v45 }
 0xafc   :  { %11727 = vmatpush3.xpose.msk.msra.mxu0 %vm131_vm0, %v14764_v36  ;;  %11732 = vmatpush3.xpose.msk.msra.mxu1 %vm131_vm0, %v14866_v24 }
 0xafd   :  { %11728 = vmatprep.mubr.msk.f32.mxu0 %vm12260_vm2, %v15445_v54  ;;  %11733 = vmatprep.mubr.msk.f32.mxu1 %vm12260_vm2, %v15445_v54 }
 0xafe   :  { %11736 = vmatprep.subr.mxu0 %v15445_v54  ;;  %11741 = vmatprep.subr.mxu1 %v15445_v54 }
 0xaff   :  { %11729 = vmatmul.mubr.msk.f32.vlgmr.msra.gmra.mxu0 %vm131_vm0, %v8748_v32  ;;  %11734 = vmatmul.mubr.msk.f32.vlgmr.msra.gmra.mxu1 %vm131_vm0, %v8826_v61 }
 0xb00   :  { %11737 = vmatpush3.xpose.msk.msra.mxu0 %vm131_vm0, %v14886_v57  ;;  %11742 = vmatpush3.msk.msra.mxu1 %vm3891_vm7, %v9125_v34 }
 0xb01   :  { %11738 = vmatprep.mubr.msk.f32.mxu0 %vm12260_vm2, %v15445_v54  ;;  %11746 = vmatprep.subr.mxu0 %v15445_v54 }
 0xb02   :  { %11743 = vmatprep.mubr.msk.f32.mxu1 %vm12260_vm2, %v15445_v54  ;;  %11751 = vmatprep.subr.mxu1 %v15445_v54 }
 0xb03   :  { %11739 = vmatmul.mubr.msk.f32.vlgmr.msra.gmra.mxu0 %vm131_vm0, %v8904_v42 }
 0xb04   :  { %11747 = vmatpush3.msk.msra.mxu0 %vm3891_vm7, %v9202_v55  ;;  %11748 = vmatprep.mubr.msk.f32.mxu0 %vm12260_vm2, %v15445_v54 }
 0xb05   :  { %11756 = vmatprep.subr.mxu0 %v15445_v54 }
 0xb4c   :  { %v14904_v31 = vpop.f32.mrf.mxu0 }
 0xb4e   :  { %v11630_v19 = vpop.f32.mrf.mxu0 }
 0xb54   :  { %v14906_v40 = vpop.f32.mrf.mxu1 }
 0xb56   :  { %v11625_v20 = vpop.f32.mrf.mxu1 }
 0xb95   :  { %v14908_v18 = vpop.f32.mrf.mxu1 }
 0xb97   :  { %v11635_v21 = vpop.f32.mrf.mxu1 }
 0xb99   :  { %v14910_v47 = vpop.f32.mrf.mxu0 }
 0xb9a   :  { %v14912_v38 = vpop.f32.mrf.mxu1 }
 0xb9b   :  { %v11640_v39 = vpop.f32.mrf.mxu0 }
 0xb9c   :  { %v11645_v56 = vpop.f32.mrf.mxu1 }
 0xb9e   :  { %v14914_v50 = vpop.f32.mrf.mxu0 }
 0xb9f   :  { %v14916_v16 = vpop.f32.mrf.mxu1 }
 0xba0   :  { %v11650_v10 = vpop.f32.mrf.mxu0 }
 0xba1   :  { %v11655_v37 = vpop.f32.mrf.mxu1 }
 0xba3   :  { %v14918_v62 = vpop.f32.mrf.mxu0  ;;  %v14920_v9 = vpop.f32.mrf.mxu1 }
 0xba4   :  { %v8980_v3 = vsel %vm3740_vm8, %v14920_v9, -inf }
 0xba5   :  { %v11660_v43 = vpop.f32.mrf.mxu0  ;;  %8981 = vmax.xlane.f32.xlu0 %v8980_v3  ;;  %v11665_v27 = vpop.f32.mrf.mxu1 }
 0xba7   :  { %v14924_v2 = vpop.f32.mrf.mxu0  ;;  %v14926_v8 = vpop.f32.mrf.mxu1 }
 0xba8   :  { %v8983_v29 = vsel %vm3740_vm8, %v14924_v2, -inf  ;;  %v8986_v23 = vsel %vm3740_vm8, %v14926_v8, -inf }
 0xba9   :  { %v11670_v46 = vpop.f32.mrf.mxu0  ;;  %8984 = vmax.xlane.f32.xlu1 %v8983_v29  ;;  %8987 = vmax.xlane.f32.xlu0 %v8986_v23  ;;  %v11675_v49 = vpop.f32.mrf.mxu1  ;;  %v6342_v23 = vsel %vm1042_vm6, %v14713_v22, 0.0 }
 0xbaa   :  { %v6345_v46 = vsel %vm1042_vm6, %v14721_v25, 0.0  ;;  %v9279_v49 = vpop.permute.xlu1 %9278 }
 0xbab   :  { %v14932_v12 = vpop.f32.mrf.mxu0  ;;  %v14934_v5 = vpop.f32.mrf.mxu1 }
 0xbac   :  { %v8989_v33 = vsel %vm3740_vm8, %v14932_v12, -inf  ;;  %v8992_v4 = vsel %vm3740_vm8, %v14934_v5, -inf }
 0xbad   :  { %v11680_v58 = vpop.f32.mrf.mxu0  ;;  %8990 = vmax.xlane.f32.xlu0 %v8989_v33  ;;  %8993 = vmax.xlane.f32.xlu1 %v8992_v4  ;;  %v11685_v7 = vpop.f32.mrf.mxu1 }
 0xbae   :  { %v14992_v33 = vpop.permute.xlu1 %9355  ;;  %v14994_v4 = vpop.permute.xlu0 %9432 }
 0xbaf   :  { %v14940_v1 = vpop.f32.mrf.mxu0  ;;  %v14942_v44 = vpop.f32.mrf.mxu1 }
 0xbb0   :  { %v8995_v36 = vsel %vm3740_vm8, %v14940_v1, -inf  ;;  %v8998_v59 = vsel %vm3740_vm8, %v14942_v44, -inf }
 0xbb1   :  { %v11690_v15 = vpop.f32.mrf.mxu0  ;;  %8996 = vmax.xlane.f32.xlu0 %v8995_v36  ;;  %8999 = vmax.xlane.f32.xlu1 %v8998_v59  ;;  %v11695_v14 = vpop.f32.mrf.mxu1 }
 0xbb2   :  { %v14996_v58 = vpop.permute.xlu1 %9509  ;;  %v14998_v7 = vpop.permute.xlu0 %9586 }
 0xbb3   :  { %v14948_v30 = vpop.f32.mrf.mxu0  ;;  %v14950_v28 = vpop.f32.mrf.mxu1 }
 0xbb4   :  { %v9001_v6 = vsel %vm3740_vm8, %v14948_v30, -inf  ;;  %v9004_v35 = vsel %vm3740_vm8, %v14950_v28, -inf }
 0xbb5   :  { %v11700_v45 = vpop.f32.mrf.mxu0  ;;  %9002 = vmax.xlane.f32.xlu0 %v9001_v6  ;;  %9005 = vmax.xlane.f32.xlu1 %v9004_v35  ;;  %v11705_v51 = vpop.f32.mrf.mxu1 }
 0xbb7   :  { %v14956_v32 = vpop.f32.mrf.mxu0  ;;  %v14958_v0 = vpop.f32.mrf.mxu1 }
 0xbb8   :  { %v9007_v11 = vsel %vm3740_vm8, %v14956_v32, -inf  ;;  %v9010_v42 = vsel %vm3740_vm8, %v14958_v0, -inf }
 0xbb9   :  { %v11710_v26 = vpop.f32.mrf.mxu0  ;;  %9008 = vmax.xlane.f32.xlu0 %v9007_v11  ;;  %9011 = vmax.xlane.f32.xlu1 %v9010_v42  ;;  %v11715_v41 = vpop.f32.mrf.mxu1 }
 0xbbb   :  { %v14964_v61 = vpop.f32.mrf.mxu0  ;;  %v14966_v48 = vpop.f32.mrf.mxu1 }
 0xbbc   :  { %v9013_v34 = vsel %vm3740_vm8, %v14964_v61, -inf  ;;  %v9016_v55 = vsel %vm3740_vm8, %v14966_v48, -inf }
 0xbbd   :  { %v11720_v19 = vpop.f32.mrf.mxu0  ;;  %9014 = vmax.xlane.f32.xlu0 %v9013_v34  ;;  %9017 = vmax.xlane.f32.xlu1 %v9016_v55  ;;  %v11725_v20 = vpop.f32.mrf.mxu1 }
 0xbbf   :  { %v14972_v21 = vpop.f32.mrf.mxu0  ;;  %v14974_v39 = vpop.f32.mrf.mxu1 }
 0xbc0   :  { %v9019_v56 = vsel %vm3740_vm8, %v14972_v21, -inf  ;;  %v9022_v10 = vsel %vm3740_vm8, %v14974_v39, -inf }
 0xbc1   :  { %v11730_v37 = vpop.f32.mrf.mxu0  ;;  %9020 = vmax.xlane.f32.xlu0 %v9019_v56  ;;  %9023 = vmax.xlane.f32.xlu1 %v9022_v10  ;;  %v11735_v3 = vpop.f32.mrf.mxu1 }
 0xbc3   :  { %v14980_v43 = vpop.f32.mrf.mxu0 }
 0xbc4   :  { %v9025_v27 = vsel %vm3740_vm8, %v14980_v43, -inf }
 0xbc5   :  { %v11740_v29 = vpop.f32.mrf.mxu0  ;;  %9026 = vmax.xlane.f32.xlu0 %v9025_v27 }
 0xbd2   :  { %10279 = vrot.lane.b32.xlu1 %v14886_v57, %s12262_s1  ;;  %v15000_v57 = vpop.permute.xlu1 %9663 }
 0xbd6   :  { %v15004_v36 = vpop.permute.xlu1 %9817 }
 0xbda   :  { %v15008_v59 = vpop.permute.xlu1 %9971 }
 0xbdb   :  { %10202 = vrot.lane.b32.xlu0 %v14866_v24, %s12262_s1  ;;  %v15002_v24 = vpop.permute.xlu0 %9740 }
 0xbde   :  { %v15012_v15 = vpop.permute.xlu1 %10125 }
 0xbdf   :  { %v15006_v22 = vpop.permute.xlu0 %9894 }
 0xbe3   :  { %v15010_v25 = vpop.permute.xlu0 %10048 }
 0xbf6   :  { %6343 = vadd.xlane.f32.xlu1 %v6342_v23 }
 0xbfa   :  { %6346 = vadd.xlane.f32.xlu0 %v6345_v46 }
 0xc2e   :  { %v8982_v14 = vpop.xlane.xlu0 %8981 }
 0xc2f   :  { %v9028_v6 = vsub.f32 %v14920_v9, %v8982_v14 }
 0xc31   :  { %v9044_v35 = vmul.f32 1.442695, %v9028_v6 }
 0xc32   :  { %v8985_v45 = vpop.xlane.xlu1 %8984  ;;  %v8988_v51 = vpop.xlane.xlu0 %8987 }
 0xc33   :  { %11993 = vpow2.f32 %v9044_v35  ;;  %v9029_v11 = vsub.f32 %v14924_v2, %v8985_v45  ;;  %v9030_v42 = vsub.f32 %v14926_v8, %v8988_v51 }
 0xc35   :  { %v9046_v26 = vmul.f32 1.442695, %v9029_v11  ;;  %v9048_v41 = vmul.f32 1.442695, %v9030_v42 }
 0xc36   :  { %v8991_v34 = vpop.xlane.xlu0 %8990  ;;  %v8994_v55 = vpop.xlane.xlu1 %8993 }
 0xc37   :  { %11995 = vpow2.f32 %v9046_v26  ;;  %v9031_v19 = vsub.f32 %v14932_v12, %v8991_v34  ;;  %v9032_v20 = vsub.f32 %v14934_v5, %v8994_v55 }
 0xc38   :  { %11997 = vpow2.f32 %v9048_v41 }
 0xc39   :  { %v9050_v56 = vmul.f32 1.442695, %v9031_v19  ;;  %v9052_v9 = vmul.f32 1.442695, %v9032_v20 }
 0xc3a   :  { %v8997_v10 = vpop.xlane.xlu0 %8996  ;;  %v9000_v37 = vpop.xlane.xlu1 %8999 }
 0xc3b   :  { %11999 = vpow2.f32 %v9050_v56  ;;  %v9033_v3 = vsub.f32 %v14940_v1, %v8997_v10  ;;  %v9034_v2 = vsub.f32 %v14942_v44, %v9000_v37 }
 0xc3c   :  { %12001 = vpow2.f32 %v9052_v9 }
 0xc3d   :  { %v9054_v8 = vmul.f32 1.442695, %v9033_v3  ;;  %v9056_v27 = vmul.f32 1.442695, %v9034_v2 }
 0xc3e   :  { %v9003_v29 = vpop.xlane.xlu0 %9002  ;;  %v9006_v23 = vpop.xlane.xlu1 %9005 }
 0xc3f   :  { %12003 = vpow2.f32 %v9054_v8  ;;  %v9035_v12 = vsub.f32 %v14948_v30, %v9003_v29  ;;  %v9036_v5 = vsub.f32 %v14950_v28, %v9006_v23 }
 0xc40   :  { %v11994_v46 = vpop.eup %11993  ;;  %12005 = vpow2.f32 %v9056_v27 }
 0xc41   :  { %v9058_v14 = vmul.f32 1.442695, %v9035_v12  ;;  %v9060_v6 = vmul.f32 1.442695, %v9036_v5  ;;  %11744 = vmatmul.mubr.msk.f32.vlgmr.msra.gmra.mxu1 %vm15458_vm3, %v11994_v46  ;;  %v9076_v1 = vsel %vm3740_vm8, %v11994_v46, 0.0 }
 0xc42   :  { %11752 = vmatpush3.msk.msra.mxu1 %vm3891_vm7, %v9279_v49  ;;  %9077 = vadd.xlane.f32.xlu0 %v9076_v1  ;;  %v9009_v44 = vpop.xlane.xlu0 %9008  ;;  %v9012_v35 = vpop.xlane.xlu1 %9011 }
 0xc43   :  { %12007 = vpow2.f32 %v9058_v14  ;;  %v9037_v45 = vsub.f32 %v14956_v32, %v9009_v44  ;;  %v9038_v30 = vsub.f32 %v14958_v0, %v9012_v35  ;;  %11753 = vmatprep.mubr.msk.f32.mxu1 %vm12260_vm2, %v15445_v54  ;;  %11761 = vmatprep.subr.mxu1 %v15445_v54 }
 0xc44   :  { %v11996_v28 = vpop.eup %11995  ;;  %12009 = vpow2.f32 %v9060_v6 }
 0xc45   :  { %v11998_v51 = vpop.eup %11997  ;;  %v9062_v11 = vmul.f32 1.442695, %v9037_v45  ;;  %v9064_v42 = vmul.f32 1.442695, %v9038_v30  ;;  %11749 = vmatmul.mubr.msk.f32.vlgmr.msra.gmra.mxu0 %vm15459_vm4, %v11996_v28  ;;  %v9079_v49 = vsel %vm3740_vm8, %v11996_v28, 0.0  ;;  %vm15461_vm4 = vmmov %vm15458_vm3  ;;  %v6351_v30 = vsel %vm1042_vm6, %v14746_v13, 0.0 }
 0xc46   :  { %11754 = vmatmul.mubr.msk.f32.vlgmr.msra.gmra.mxu1 %vm15460_vm5, %v11998_v51  ;;  %11757 = vmatpush3.msk.msra.mxu0 %vm3891_vm7, %v14992_v33  ;;  %v9082_v32 = vsel %vm3740_vm8, %v11998_v51, 0.0  ;;  %v9015_v0 = vpop.xlane.xlu0 %9014  ;;  %v9018_v26 = vpop.xlane.xlu1 %9017  ;;  %vm15462_vm5 = vmmov %vm15458_vm3  ;;  %v6357_v51 = vsel %vm1042_vm6, %v14768_v53, 0.0  ;;  %v6336_v13 = vsel %vm1042_vm6, %v14699_v60, 0.0 }
 0xc47   :  { %12011 = vpow2.f32 %v9062_v11  ;;  %11762 = vmatpush3.msk.msra.mxu1 %vm3891_vm7, %v14994_v4  ;;  %9083 = vadd.xlane.f32.xlu0 %v9082_v32  ;;  %v9039_v41 = vsub.f32 %v14964_v61, %v9015_v0  ;;  %v9040_v34 = vsub.f32 %v14966_v48, %v9018_v26  ;;  %v6339_v11 = vsel %vm1042_vm6, %v14655_v17, 0.0 }
 0xc48   :  { %v12000_v55 = vpop.eup %11999  ;;  %12013 = vpow2.f32 %v9064_v42  ;;  %9080 = vadd.xlane.f32.xlu1 %v9079_v49  ;;  %11758 = vmatprep.mubr.msk.f32.mxu0 %vm12260_vm2, %v15445_v54  ;;  %v6354_v42 = vsel %vm1042_vm6, %v14751_v52, 0.0 }
 0xc49   :  { %v12002_v33 = vpop.eup %12001  ;;  %v9066_v19 = vmul.f32 1.442695, %v9039_v41  ;;  %11763 = vmatprep.mubr.msk.f32.mxu1 %vm12260_vm2, %v15445_v54  ;;  %11766 = vmatprep.subr.mxu0 %v15445_v54  ;;  %v9068_v20 = vmul.f32 1.442695, %v9040_v34  ;;  %v9085_v4 = vsel %vm3740_vm8, %v12000_v55, 0.0 }
 0xc4a   :  { %11771 = vmatprep.subr.mxu1 %v15445_v54  ;;  %11759 = vmatmul.mubr.msk.f32.vlgmr.msra.gmra.mxu0 %vm15458_vm3, %v12000_v55  ;;  %v9021_v61 = vpop.xlane.xlu0 %9020  ;;  %v9088_v48 = vsel %vm3740_vm8, %v12002_v33, 0.0  ;;  %v9024_v56 = vpop.xlane.xlu1 %9023 }
 0xc4b   :  { %11764 = vmatmul.mubr.msk.f32.vlgmr.msra.gmra.mxu1 %vm15461_vm4, %v12002_v33  ;;  %11767 = vmatpush3.msk.msra.mxu0 %vm3891_vm7, %v14996_v58  ;;  %v9041_v9 = vsub.f32 %v14972_v21, %v9021_v61  ;;  %v9042_v10 = vsub.f32 %v14974_v39, %v9024_v56  ;;  %12015 = vpow2.f32 %v9066_v19  ;;  %vm15463_vm4 = vmmov %vm15458_vm3 }
 0xc4c   :  { %v12004_v37 = vpop.eup %12003  ;;  %11772 = vmatpush3.msk.msra.mxu1 %vm3891_vm7, %v14998_v7  ;;  %9089 = vadd.xlane.f32.xlu0 %v9088_v48  ;;  %12017 = vpow2.f32 %v9068_v20 }
 0xc4d   :  { %v12006_v3 = vpop.eup %12005  ;;  %v9070_v2 = vmul.f32 1.442695, %v9041_v9  ;;  %9086 = vadd.xlane.f32.xlu1 %v9085_v4  ;;  %11768 = vmatprep.mubr.msk.f32.mxu0 %vm12260_vm2, %v15445_v54  ;;  %v9072_v8 = vmul.f32 1.442695, %v9042_v10  ;;  %v9091_v39 = vsel %vm3740_vm8, %v12004_v37, 0.0 }
 0xc4e   :  { %11773 = vmatprep.mubr.msk.f32.mxu1 %vm12260_vm2, %v15445_v54  ;;  %11776 = vmatprep.subr.mxu0 %v15445_v54  ;;  %v9027_v21 = vpop.xlane.xlu0 %9026  ;;  %v10280_v1 = vpop.permute.xlu1 %10279 }
 0xc4f   :  { %11781 = vmatprep.subr.mxu1 %v15445_v54  ;;  %11769 = vmatmul.mubr.msk.f32.vlgmr.msra.gmra.mxu0 %vm15462_vm5, %v12004_v37  ;;  %v9043_v58 = vsub.f32 %v14980_v43, %v9027_v21  ;;  %12019 = vpow2.f32 %v9070_v2  ;;  %vm15464_vm5 = vmmov %vm15458_vm3 }
 0xc50   :  { %v12008_v7 = vpop.eup %12007  ;;  %11774 = vmatmul.mubr.msk.f32.vlgmr.msra.gmra.mxu1 %vm15458_vm3, %v12006_v3  ;;  %11777 = vmatpush3.msk.msra.mxu0 %vm3891_vm7, %v15000_v57  ;;  %12021 = vpow2.f32 %v9072_v8 }
 0xc51   :  { %v12010_v27 = vpop.eup %12009  ;;  %11782 = vmatpush3.msk.msra.mxu1 %vm3891_vm7, %v15002_v24  ;;  %v9074_v29 = vmul.f32 1.442695, %v9043_v58  ;;  %9092 = vadd.xlane.f32.xlu0 %v9091_v39  ;;  %v9094_v24 = vsel %vm3740_vm8, %v12006_v3, 0.0 }
 0xc52   :  { %11778 = vmatprep.mubr.msk.f32.mxu0 %vm12260_vm2, %v15445_v54  ;;  %11783 = vmatprep.mubr.msk.f32.mxu1 %vm12260_vm2, %v15445_v54  ;;  %v10203_v46 = vpop.permute.xlu0 %10202 }
 0xc53   :  { %11786 = vmatprep.subr.mxu0 %v15445_v54  ;;  %11791 = vmatprep.subr.mxu1 %v15445_v54  ;;  %12023 = vpow2.f32 %v9074_v29 }
 0xc54   :  { %v12012_v43 = vpop.eup %12011  ;;  %11779 = vmatmul.mubr.msk.f32.vlgmr.msra.gmra.mxu0 %vm15463_vm4, %v12008_v7  ;;  %11784 = vmatmul.mubr.msk.f32.vlgmr.msra.gmra.mxu1 %vm15464_vm5, %v12010_v27  ;;  %vm15465_vm4 = vmmov %vm15458_vm3 }
 0xc55   :  { %v12014_v57 = vpop.eup %12013  ;;  %11787 = vmatpush3.msk.msra.mxu0 %vm3891_vm7, %v15004_v36  ;;  %11792 = vmatpush3.msk.msra.mxu1 %vm3891_vm7, %v15006_v22  ;;  %v9100_v22 = vsel %vm3740_vm8, %v12010_v27, 0.0  ;;  %vm15466_vm5 = vmmov %vm15458_vm3 }
 0xc56   :  { %9095 = vadd.xlane.f32.xlu0 %v9094_v24  ;;  %11788 = vmatprep.mubr.msk.f32.mxu0 %vm12260_vm2, %v15445_v54  ;;  %v9106_v36 = vsel %vm3740_vm8, %v12014_v57, 0.0 }
 0xc57   :  { %11793 = vmatprep.mubr.msk.f32.mxu1 %vm12260_vm2, %v15445_v54  ;;  %11796 = vmatprep.subr.mxu0 %v15445_v54 }
 0xc58   :  { %11801 = vmatprep.subr.mxu1 %v15445_v54  ;;  %11789 = vmatmul.mubr.msk.f32.vlgmr.msra.gmra.mxu0 %vm15458_vm3, %v12012_v43  ;;  %v12016_v23 = vpop.eup %12015 }
 0xc59   :  { %11794 = vmatmul.mubr.msk.f32.vlgmr.msra.gmra.mxu1 %vm15465_vm4, %v12014_v57  ;;  %11797 = vmatpush3.msk.msra.mxu0 %vm3891_vm7, %v15008_v59  ;;  %v12018_v12 = vpop.eup %12017  ;;  %v9109_v59 = vsel %vm3740_vm8, %v12016_v23, 0.0  ;;  %vm15467_vm4 = vmmov %vm15458_vm3 }
 0xc5a   :  { %11802 = vmatpush3.msk.msra.mxu1 %vm3891_vm7, %v15010_v25  ;;  %9101 = vadd.xlane.f32.xlu0 %v9100_v22  ;;  %v9097_v25 = vsel %vm3740_vm8, %v12008_v7, 0.0  ;;  %v9112_v44 = vsel %vm3740_vm8, %v12018_v12, 0.0 }
 0xc5b   :  { %9107 = vadd.xlane.f32.xlu1 %v9106_v36  ;;  %11798 = vmatprep.mubr.msk.f32.mxu0 %vm12260_vm2, %v15445_v54 }
 0xc5c   :  { %11803 = vmatprep.mubr.msk.f32.mxu1 %vm12260_vm2, %v15445_v54  ;;  %11806 = vmatprep.subr.mxu0 %v15445_v54  ;;  %v12020_v5 = vpop.eup %12019 }
 0xc5d   :  { %11811 = vmatprep.subr.mxu1 %v15445_v54  ;;  %11799 = vmatmul.mubr.msk.f32.vlgmr.msra.gmra.mxu0 %vm15466_vm5, %v12016_v23  ;;  %v12022_v14 = vpop.eup %12021  ;;  %vm15468_vm5 = vmmov %vm15458_vm3  ;;  %v9115_v45 = vsel %vm3740_vm8, %v12020_v5, 0.0 }
 0xc5e   :  { %11804 = vmatmul.mubr.msk.f32.vlgmr.msra.gmra.mxu1 %vm15458_vm3, %v12018_v12  ;;  %11807 = vmatpush3.msk.msra.mxu0 %vm3891_vm7, %v15012_v15  ;;  %v9103_v15 = vsel %vm3740_vm8, %v12012_v43, 0.0  ;;  %v9118_v28 = vsel %vm3740_vm8, %v12022_v14, 0.0 }
 0xc5f   :  { %11812 = vmatpush3.msk.msra.mxu1 %vm3891_vm7, %v10203_v46  ;;  %9098 = vadd.xlane.f32.xlu0 %v9097_v25 }
 0xc60   :  { %9110 = vadd.xlane.f32.xlu1 %v9109_v59  ;;  %11808 = vmatprep.mubr.msk.f32.mxu0 %vm12260_vm2, %v15445_v54  ;;  %v12024_v6 = vpop.eup %12023 }
 0xc61   :  { %11813 = vmatprep.mubr.msk.f32.mxu1 %vm12260_vm2, %v15445_v54  ;;  %11816 = vmatprep.subr.mxu0 %v15445_v54  ;;  %v9121_v35 = vsel %vm3740_vm8, %v12024_v6, 0.0 }
 0xc62   :  { %11809 = vmatmul.mubr.msk.f32.vlgmr.msra.gmra.mxu0 %vm15467_vm4, %v12020_v5  ;;  %11814 = vmatmul.mubr.msk.f32.vlgmr.msra.gmra.mxu1 %vm15468_vm5, %v12022_v14 }
 0xc63   :  { %11817 = vmatpush3.msk.msra.mxu0 %vm3891_vm7, %v10280_v1  ;;  %9104 = vadd.xlane.f32.xlu0 %v9103_v15  ;;  %vm15471_vm7 = vcmask 1047559  }
 0xc64   :  { %9113 = vadd.xlane.f32.xlu1 %v9112_v44  ;;  %11818 = vmatprep.mubr.msk.f32.mxu0 %vm12260_vm2, %v15445_v54  ;;  %v6348_v54 = vsel %vm1042_vm6, %v14725_v63, 0.0  ;;  %vm15469_vm2 = vcmask 1046534   ;;  %vm15473_vm4 = vmmov %vm15471_vm7 }
 0xc65   :  { %vm15470_vm6 = vmmov %vm15469_vm2 }
 0xc66   :  { %11819 = vmatmul.mubr.msk.f32.vlgmr.msra.gmra.mxu0 %vm15458_vm3, %v12024_v6  ;;  %vm15472_vm8 = vmmov %vm15469_vm2 }
 0xc67   :  { %9122 = vadd.xlane.f32.xlu0 %v9121_v35  ;;  %vm15474_vm5 = vmmov %vm15469_vm2 }
 0xc68   :  { %9116 = vadd.xlane.f32.xlu1 %v9115_v45  ;;  %vm15475_vm3 = vmmov %vm15473_vm4 }
 0xc6b   :  { %6352 = vadd.xlane.f32.xlu0 %v6351_v30 }
 0xc6c   :  { %9119 = vadd.xlane.f32.xlu1 %v9118_v28 }
 0xc6f   :  { %6358 = vadd.xlane.f32.xlu0 %v6357_v51 }
 0xc70   :  { %6349 = vadd.xlane.f32.xlu1 %v6348_v54 }
 0xc73   :  { %6340 = vadd.xlane.f32.xlu0 %v6339_v11 }
 0xc74   :  { %6355 = vadd.xlane.f32.xlu1 %v6354_v42 }
 0xc78   :  { %6337 = vadd.xlane.f32.xlu1 %v6336_v13 }
 0xc7f   :  { %v6344_v49 = vpop.xlane.xlu1 %6343 }
 0xc80   :  { %12025 = vrcp.f32 %v6344_v49 }
 0xc83   :  { %v6347_v53 = vpop.xlane.xlu0 %6346 }
 0xc84   :  { %12027 = vrcp.f32 %v6347_v53 }
 0xc8d   :  { %v12026_v32 = vpop.eup %12025 }
 0xc8e   :  { %v6954_v63 = vmul.f32 %v12026_v32, %v14908_v18 }
 0xc90   :  { %6962 = vrot.lane.b32.xlu1 %v6954_v63, %s12264_s30 }
 0xc91   :  { %v12028_v0 = vpop.eup %12027 }
 0xc92   :  { %v6955_v17 = vmul.f32 %v12028_v0, %v14910_v47 }
 0xc94   :  { %6964 = vrot.lane.b32.xlu1 %v6955_v17, %s12264_s30 }
 0xccb   :  { %v9078_v52 = vpop.xlane.xlu0 %9077 }
 0xcd0   :  { %v9084_v26 = vpop.xlane.xlu0 %9083 }
 0xcd1   :  { %v9081_v34 = vpop.xlane.xlu1 %9080 }
 0xcd5   :  { %v9090_v41 = vpop.xlane.xlu0 %9089 }
 0xcd6   :  { %v9087_v33 = vpop.xlane.xlu1 %9086 }
 0xcda   :  { %v9093_v60 = vpop.xlane.xlu0 %9092 }
 0xcdf   :  { %v9096_v55 = vpop.xlane.xlu0 %9095 }
 0xce3   :  { %v9102_v19 = vpop.xlane.xlu0 %9101 }
 0xce4   :  { %v9108_v20 = vpop.xlane.xlu1 %9107 }
 0xce8   :  { %v9099_v61 = vpop.xlane.xlu0 %9098 }
 0xce9   :  { %v15143_v48 = vpop.xlane.xlu1 %9110 }
 0xcec   :  { %v9105_v18 = vpop.xlane.xlu0 %9104 }
 0xced   :  { %v15145_v4 = vpop.xlane.xlu1 %9113 }
 0xcf0   :  { %v15147_v56 = vpop.xlane.xlu0 %9122 }
 0xcf1   :  { %v15149_v47 = vpop.xlane.xlu1 %9116 }
 0xcf4   :  { %v6353_v9 = vpop.xlane.xlu0 %6352 }
 0xcf5   :  { %12029 = vrcp.f32 %v6353_v9  ;;  %v15151_v10 = vpop.xlane.xlu1 %9119 }
 0xcf6   :  { %12031 = vrcp.f32 %v9078_v52 }
 0xcf7   :  { %12033 = vrcp.f32 %v9081_v34 }
 0xcf8   :  { %12035 = vrcp.f32 %v9084_v26 }
 0xcf9   :  { %v6350_v37 = vpop.xlane.xlu1 %6349 }
 0xcfa   :  { %12037 = vrcp.f32 %v6350_v37 }
 0xcfb   :  { %12039 = vrcp.f32 %v9090_v41 }
 0xcfc   :  { %12041 = vrcp.f32 %v9087_v33 }
 0xcfd   :  { %v6356_v3 = vpop.xlane.xlu1 %6355 }
 0xcfe   :  { %12043 = vrcp.f32 %v6356_v3 }
 0xcff   :  { %12045 = vrcp.f32 %v9093_v60 }
 0xd00   :  { %12047 = vrcp.f32 %v9096_v55 }
 0xd01   :  { %v9197_v2 = vpop.f32.mrf.mxu1  ;;  %12049 = vrcp.f32 %v9102_v19 }
 0xd02   :  { %v12030_v8 = vpop.eup %12029  ;;  %12051 = vrcp.f32 %v9099_v61 }
 0xd03   :  { %v6957_v21 = vmul.f32 %v12030_v8, %v14914_v50  ;;  %v11745_v39 = vpop.f32.mrf.mxu1  ;;  %v12032_v58 = vpop.eup %12031  ;;  %12053 = vrcp.f32 %v9108_v20 }
 0xd04   :  { %v12034_v7 = vpop.eup %12033  ;;  %v10372_v27 = vmul.f32 %v12032_v58, %v9197_v2  ;;  %12055 = vrcp.f32 %v9105_v18 }
 0xd05   :  { %6972 = vrot.lane.b32.xlu0 %v6957_v21, %s12265_s3  ;;  %v9274_v29 = vpop.f32.mrf.mxu0  ;;  %v12036_v43 = vpop.eup %12035  ;;  %12057 = vrcp.f32 %v15143_v48 }
 0xd06   :  { %v10373_v57 = vmul.f32 %v12034_v7, %v9274_v29  ;;  %v9351_v24 = vpop.f32.mrf.mxu1  ;;  %v10434_v25 = vrot.slane %v10372_v27, 1  ;;  %v10468_v14 = vrot.slane %v10372_v27, 2  ;;  %v10502_v44 = vrot.slane %v10372_v27, 3 }
 0xd07   :  { %v12038_v36 = vpop.eup %12037  ;;  %v10374_v22 = vmul.f32 %v12036_v43, %v9351_v24  ;;  %v11750_v23 = vpop.f32.mrf.mxu0  ;;  %12059 = vrcp.f32 %v15145_v4 }
 0xd08   :  { %v6956_v12 = vmul.f32 %v12038_v36, %v14912_v38  ;;  %v10404_v59 = vrot.slane %v10373_v57, 7  ;;  %v10469_v50 = vrot.slane %v10373_v57, 1  ;;  %v11755_v5 = vpop.f32.mrf.mxu1  ;;  %v12040_v46 = vpop.eup %12039  ;;  %v10503_v6 = vrot.slane %v10373_v57, 2 }
 0xd09   :  { %v10406_v1 = vrot.slane %v10374_v22, 6  ;;  %v12042_v15 = vpop.eup %12041  ;;  %v10505_v45 = vrot.slane %v10374_v22, 1  ;;  %v10435_v38 = vsel %vm5168_vm10, %v10373_v57, %v10434_v25  ;;  %v10436_v54 = vrot.slane %v10374_v22, 7 }
 0xd0a   :  { %6970 = vrot.lane.b32.xlu1 %v6956_v12, %s12265_s3  ;;  %v10405_v35 = vsel %vm5168_vm10, %v10404_v59, %v10372_v27  ;;  %v9428_v30 = vpop.f32.mrf.mxu0  ;;  %v10470_v11 = vsel %vm5168_vm10, %v10469_v50, %v10468_v14  ;;  %v10504_v53 = vsel %vm5168_vm10, %v10503_v6, %v10502_v44  ;;  %12061 = vrcp.f32 %v15149_v47 }
 0xd0b   :  { %v12044_v28 = vpop.eup %12043  ;;  %v10407_v51 = vsel %vm5171_vm11, %v10406_v1, %v10405_v35  ;;  %v9505_v42 = vpop.f32.mrf.mxu1  ;;  %v10375_v49 = vmul.f32 %v12042_v15, %v9428_v30  ;;  %v10506_v26 = vsel %vm5171_vm11, %v10505_v45, %v10504_v53  ;;  %v10437_v34 = vsel %vm5171_vm11, %v10436_v54, %v10435_v38 }
 0xd0c   :  { %v6958_v13 = vmul.f32 %v12044_v28, %v14916_v16  ;;  %v10376_v32 = vmul.f32 %v12040_v46, %v9505_v42  ;;  %v11760_v63 = vpop.f32.mrf.mxu0  ;;  %v12046_v41 = vpop.eup %12045  ;;  %v10471_v16 = vsel %vm5171_vm11, %v10374_v22, %v10470_v11  ;;  %12063 = vrcp.f32 %v15151_v10 }
 0xd0d   :  { %v11765_v0 = vpop.f32.mrf.mxu1  ;;  %v10438_v17 = vrot.slane %v10375_v49, 6  ;;  %v10472_v52 = vrot.slane %v10375_v49, 7  ;;  %v12048_v19 = vpop.eup %12047  ;;  %v10408_v20 = vrot.slane %v10375_v49, 5  ;;  %v10507_v9 = vsel %vm5174_vm12, %v10375_v49, %v10506_v26 }
 0xd0e   :  { %6978 = vrot.lane.b32.xlu1 %v6958_v13, %s12266_s11  ;;  %v10440_v60 = vrot.slane %v10376_v32, 5  ;;  %v10474_v55 = vrot.slane %v10376_v32, 6  ;;  %v10410_v37 = vrot.slane %v10376_v32, 4  ;;  %v10508_v8 = vrot.slane %v10376_v32, 7  ;;  %v12050_v27 = vpop.eup %12049 }
 0xd0f   :  { %v9582_v33 = vpop.f32.mrf.mxu0  ;;  %v10473_v18 = vsel %vm5174_vm12, %v10472_v52, %v10471_v16  ;;  %v10439_v4 = vsel %vm5174_vm12, %v10438_v17, %v10437_v34  ;;  %v12052_v36 = vpop.eup %12051  ;;  %v10409_v50 = vsel %vm5174_vm12, %v10408_v20, %v10407_v51  ;;  %12065 = vrcp.f32 %v15147_v56 }
 0xd10   :  { %v10377_v61 = vmul.f32 %v12046_v41, %v9582_v33  ;;  %v9659_v48 = vpop.f32.mrf.mxu1  ;;  %v10475_v7 = vsel %vm5177_vm13, %v10474_v55, %v10473_v18  ;;  %v10441_v24 = vsel %vm5177_vm13, %v10440_v60, %v10439_v4  ;;  %v12054_v5 = vpop.eup %12053  ;;  %v10509_v44 = vsel %vm5177_vm13, %v10508_v8, %v10507_v9 }
 0xd11   :  { %v10378_v3 = vmul.f32 %v12048_v19, %v9659_v48  ;;  %v11770_v2 = vpop.f32.mrf.mxu0  ;;  %v10411_v35 = vsel %vm5177_vm13, %v10410_v37, %v10409_v50  ;;  %v12056_v45 = vpop.eup %12055 }
 0xd12   :  { %v10442_v21 = vrot.slane %v10377_v61, 4  ;;  %v10476_v39 = vrot.slane %v10377_v61, 5  ;;  %v11775_v58 = vpop.f32.mrf.mxu1  ;;  %v10510_v29 = vrot.slane %v10377_v61, 6  ;;  %v10412_v22 = vrot.slane %v10377_v61, 3  ;;  %v12058_v0 = vpop.eup %12057 }
 0xd13   :  { %v10444_v43 = vrot.slane %v10378_v3, 3  ;;  %v10478_v57 = vrot.slane %v10378_v3, 4  ;;  %v10414_v46 = vrot.slane %v10378_v3, 2  ;;  %v10512_v6 = vrot.slane %v10378_v3, 5 }
 0xd14   :  { %v9736_v47 = vpop.f32.mrf.mxu0  ;;  %v9813_v23 = vpop.f32.mrf.mxu1  ;;  %v10477_v12 = vsel %vm5180_vm14, %v10476_v39, %v10475_v7  ;;  %v10443_v59 = vsel %vm5180_vm14, %v10442_v21, %v10441_v24  ;;  %v10511_v10 = vsel %vm5180_vm14, %v10510_v29, %v10509_v44  ;;  %v10413_v56 = vsel %vm5180_vm14, %v10412_v22, %v10411_v35  ;;  %v10593_v22 = vld [vmem:[#allocation11 + $0x70] sm:$0xff] }
 0xd15   :  { %v10379_v25 = vmul.f32 %v12052_v36, %v9736_v47  ;;  %v10380_v14 = vmul.f32 %v12050_v27, %v9813_v23  ;;  %v10479_v30 = vsel %vm15469_vm2, %v10478_v57, %v10477_v12  ;;  %v10445_v38 = vsel %vm15470_vm6, %v10444_v43, %v10443_v59  ;;  %v12060_v16 = vpop.eup %12059  ;;  %vm15476_vm2 = vmmov %vm15475_vm3  ;;  %v6359_v27 = vpop.xlane.xlu0 %6358  ;;  %v10594_v36 = vld [vmem:[#allocation11 + $0x78] sm:$0xff] }
 0xd16   :  { %v11780_v1 = vpop.f32.mrf.mxu0  ;;  %v11785_v15 = vpop.f32.mrf.mxu1  ;;  %v10415_v63 = vsel %vm15472_vm8, %v10414_v46, %v10413_v56  ;;  %v10513_v20 = vsel %vm15474_vm5, %v10512_v6, %v10511_v10  ;;  %11821 = vmatprep.subr.mxu1 %v10594_v36  ;;  %12067 = vrcp.f32 %v6359_v27  ;;  %vm15480_vm6 = vmmov %vm15476_vm2 }
 0xd17   :  { %v10480_v28 = vrot.slane %v10379_v25, 3  ;;  %v10448_v51 = vrot.slane %v10380_v14, 1  ;;  %v10446_v11 = vrot.slane %v10379_v25, 2  ;;  %v10514_v42 = vrot.slane %v10379_v25, 4  ;;  %v12062_v21 = vpop.eup %12061  ;;  %11822 = vmatpush3.msra.mxu1 %v10594_v36  ;;  %vm15483_vm8 = vmmov %vm15474_vm5  ;;  %v10588_v36 = vld [vmem:[#allocation11 + $0x48] sm:$0xff] }
 0xd18   :  { %v9890_v54 = vpop.f32.mrf.mxu0  ;;  %v10416_v32 = vrot.slane %v10379_v25, 1  ;;  %v10482_v17 = vrot.slane %v10380_v14, 2  ;;  %v10516_v52 = vrot.slane %v10380_v14, 3  ;;  %11823 = vmatprep.subr.mxu1 %v10593_v22 }
 0xd19   :  { %v10381_v13 = vmul.f32 %v12056_v45, %v9890_v54  ;;  %v9967_v49 = vpop.f32.mrf.mxu1  ;;  %v10481_v53 = vsel %vm15471_vm7, %v10480_v28, %v10479_v30  ;;  %v10447_v34 = vsel %vm15473_vm4, %v10446_v11, %v10445_v38  ;;  %v10515_v8 = vsel %vm15476_vm2, %v10514_v42, %v10513_v20  ;;  %v12064_v6 = vpop.eup %12063  ;;  %11824 = vmatpush3.msra.mxu1 %v10593_v22  ;;  %vm15481_vm7 = vmmov %vm15476_vm2  ;;  %v10703_v22 = vld [vmem:[#allocation13 + $0x38] sm:$0xff] }
 0xd1a   :  { %v10382_v26 = vmul.f32 %v12054_v5, %v9967_v49  ;;  %v11790_v41 = vpop.f32.mrf.mxu0  ;;  %10496 = vrot.lane.b32.xlu1 %v10481_v53, %s12265_s3  ;;  %10462 = vrot.lane.b32.xlu0 %v10447_v34, %s12264_s30  ;;  %v15193_v4 = vsel %vm15475_vm3, %v10416_v32, %v10415_v63  ;;  %v10592_v63 = vld [vmem:[#allocation11 + $0x68] sm:$0xff] }
 0xd1b   :  { %v10418_v60 = vrot.slane %v10381_v13, 7  ;;  %v10483_v55 = vrot.slane %v10381_v13, 1  ;;  %v10517_v33 = vrot.slane %v10381_v13, 2  ;;  %v11795_v19 = vpop.f32.mrf.mxu1  ;;  %v10449_v37 = vsel %vm5168_vm10, %v10381_v13, %v10448_v51  ;;  %11825 = vmatprep.subr.mxu1 %v10592_v63  ;;  %11840 = vmatprep.subr.mxu0 %v10703_v22 }
 0xd1c   :  { %v10420_v61 = vrot.slane %v10382_v26, 6  ;;  %v10450_v48 = vrot.slane %v10382_v26, 7  ;;  %v10519_v18 = vrot.slane %v10382_v26, 1  ;;  %v12066_v45 = vpop.eup %12065  ;;  %11826 = vmatpush3.msra.mxu1 %v10592_v63  ;;  %11841 = vmatpush3.msra.mxu0 %v10703_v22  ;;  %v11027_v22 = vld [vmem:[%s15290_s7 + $0x3] ss:$0 sm:$0xff] }
 0xd1d   :  { %v10419_v9 = vsel %vm5168_vm10, %v10418_v60, %v10380_v14  ;;  %v10044_v3 = vpop.f32.mrf.mxu0  ;;  %v10518_v2 = vsel %vm5168_vm10, %v10517_v33, %v10516_v52  ;;  %v10484_v29 = vsel %vm5168_vm10, %v10483_v55, %v10482_v17  ;;  %vm15477_vm10 = vmmov %vm15474_vm5 }
 0xd1e   :  { %v10421_v39 = vsel %vm5171_vm11, %v10420_v61, %v10419_v9  ;;  %v10383_v58 = vmul.f32 %v12058_v0, %v10044_v3  ;;  %v10121_v7 = vpop.f32.mrf.mxu1  ;;  %10530 = vrot.lane.b32.xlu1 %v10515_v8, %s12266_s11  ;;  %v10520_v43 = vsel %vm5171_vm11, %v10519_v18, %v10518_v2  ;;  %v10451_v47 = vsel %vm5171_vm11, %v10450_v48, %v10449_v37  ;;  %v10591_v0 = vld [vmem:[#allocation11 + $0x60] sm:$0xff] }
 0xd1f   :  { %v10384_v57 = vmul.f32 %v12060_v16, %v10121_v7  ;;  %v11800_v24 = vpop.f32.mrf.mxu0  ;;  %v10485_v30 = vsel %vm5171_vm11, %v10382_v26, %v10484_v29  ;;  %11827 = vmatprep.subr.mxu1 %v10591_v0  ;;  %vm15478_vm11 = vmmov %vm15474_vm5  ;;  %v10590_v29 = vld [vmem:[#allocation11 + $0x58] sm:$0xff] }
 0xd20   :  { %v10422_v23 = vrot.slane %v10383_v58, 5  ;;  %v10452_v12 = vrot.slane %v10383_v58, 6  ;;  %v10486_v59 = vrot.slane %v10383_v58, 7  ;;  %v11805_v50 = vpop.f32.mrf.mxu1  ;;  %v10521_v5 = vsel %vm5174_vm12, %v10383_v58, %v10520_v43  ;;  %11828 = vmatpush3.msra.mxu1 %v10591_v0  ;;  %v10589_v43 = vld [vmem:[#allocation11 + $0x50] sm:$0xff] }
 0xd21   :  { %v10424_v46 = vrot.slane %v10384_v57, 4  ;;  %v10454_v25 = vrot.slane %v10384_v57, 5  ;;  %v10522_v14 = vrot.slane %v10384_v57, 7  ;;  %v10488_v10 = vrot.slane %v10384_v57, 6  ;;  %11829 = vmatprep.subr.mxu1 %v10590_v29  ;;  %v6338_v50 = vpop.xlane.xlu1 %6337 }
 0xd22   :  { %v10198_v1 = vpop.f32.mrf.mxu0  ;;  %v10275_v15 = vpop.f32.mrf.mxu1  ;;  %v10453_v44 = vsel %vm5174_vm12, %v10452_v12, %v10451_v47  ;;  %v10423_v35 = vsel %vm5174_vm12, %v10422_v23, %v10421_v39  ;;  %v10487_v42 = vsel %vm5174_vm12, %v10486_v59, %v10485_v30  ;;  %vm15479_vm12 = vmmov %vm15474_vm5  ;;  %11830 = vmatpush3.msra.mxu1 %v10590_v29  ;;  %v10702_v47 = vld [vmem:[#allocation13 + $0x30] sm:$0xff]  ;;  %v10587_v12 = vld [vmem:[#allocation11 + $0x40] sm:$0xff]  ;;  %12069 = vrcp.f32 %v6338_v50 }
 0xd23   :  { %v10385_v28 = vmul.f32 %v12062_v21, %v10198_v1  ;;  %v10386_v38 = vmul.f32 %v12064_v6, %v10275_v15  ;;  %v10523_v11 = vsel %vm5177_vm13, %v10522_v14, %v10521_v5  ;;  %v10425_v56 = vsel %vm5177_vm13, %v10424_v46, %v10423_v35  ;;  %v12068_v57 = vpop.eup %12067  ;;  %11831 = vmatprep.subr.mxu1 %v10589_v43  ;;  %v10701_v59 = vld [vmem:[#allocation13 + $0x28] sm:$0xff] }
 0xd24   :  { %v11810_v51 = vpop.f32.mrf.mxu0  ;;  %v11815_v54 = vpop.f32.mrf.mxu1  ;;  %v10455_v32 = vsel %vm5177_vm13, %v10454_v25, %v10453_v44  ;;  %v10489_v19 = vsel %vm5177_vm13, %v10488_v10, %v10487_v42  ;;  %vm15482_vm13 = vmmov %vm15476_vm2  ;;  %v6959_v23 = vmul.f32 %v12068_v57, %v14918_v62  ;;  %11832 = vmatpush3.msra.mxu1 %v10589_v43  ;;  %11842 = vmatprep.subr.mxu0 %v10702_v47  ;;  %v11025_v43 = vld [vmem:[%s15289_s6 + $0x7] ss:$0 sm:$0xff] }
 0xd25   :  { %v10426_v13 = vrot.slane %v10385_v28, 3  ;;  %v10456_v49 = vrot.slane %v10385_v28, 4  ;;  %v10524_v53 = vrot.slane %v10385_v28, 6  ;;  %v10490_v17 = vrot.slane %v10385_v28, 5  ;;  %11833 = vmatprep.subr.mxu1 %v10588_v36  ;;  %11843 = vmatpush3.msra.mxu0 %v10702_v47  ;;  %v6963_v5 = vpop.permute.xlu1 %6962  ;;  %v6341_v62 = vpop.xlane.xlu0 %6340 }
 0xd26   :  { %v10428_v52 = vrot.slane %v10386_v38, 2  ;;  %v10458_v26 = vrot.slane %v10386_v38, 3  ;;  %v10526_v41 = vrot.slane %v10386_v38, 5  ;;  %v10352_v34 = vpop.f32.mrf.mxu0  ;;  %v10492_v61 = vrot.slane %v10386_v38, 4  ;;  %11834 = vmatpush3.msra.mxu1 %v10588_v36  ;;  %11844 = vmatprep.subr.mxu0 %v10701_v59  ;;  %v11015_v38 = vld [vmem:[%s15289_s6 + $0x4] ss:$0 sm:$0xff] }
 0xd27   :  { %v10387_v16 = vmul.f32 %v12066_v45, %v10352_v34  ;;  %v10525_v60 = vsel %vm5180_vm14, %v10524_v53, %v10523_v11  ;;  %v10457_v55 = vsel %vm5180_vm14, %v10456_v49, %v10455_v32  ;;  %v10427_v20 = vsel %vm5180_vm14, %v10426_v13, %v10425_v56  ;;  %11835 = vmatprep.subr.mxu1 %v10587_v12  ;;  %v15485_v13 = vld [vmem:[#allocation33_spill] sm:$0xff]  ;;  %v11021_v32 = vld [vmem:[%s15290_s7 + $0x2] ss:$0 sm:$0xff] }
 0xd28   :  { %v11820_v33 = vpop.f32.mrf.mxu0  ;;  %v10527_v37 = vsel %vm15477_vm10, %v10526_v41, %v10525_v60  ;;  %v10459_v3 = vsel %vm15478_vm11, %v10458_v26, %v10457_v55  ;;  %v10491_v2 = vsel %vm5180_vm14, %v10490_v17, %v10489_v19  ;;  %v10429_v8 = vsel %vm15479_vm12, %v10428_v52, %v10427_v20  ;;  %vm15484_vm14 = vmmov %vm15476_vm2  ;;  %11836 = vmatpush3.msra.mxu1 %v10587_v12 }
 0xd29   :  { %v10528_v48 = vrot.slane %v10387_v16, 4  ;;  %v10460_v18 = vrot.slane %v10387_v16, 2  ;;  %v10430_v9 = vrot.slane %v10387_v16, 1  ;;  %v10494_v58 = vrot.slane %v10387_v16, 3  ;;  %11845 = vmatpush3.msra.mxu0 %v10701_v59  ;;  %v6965_v46 = vpop.permute.xlu1 %6964  ;;  %v11028_v59 = vld [vmem:[%s15292_s9] ss:$0 sm:$0xff] }
 0xd2a   :  { %v10493_v27 = vsel %vm15483_vm8, %v10492_v61, %v10491_v2  ;;  %12071 = vrcp.f32 %v6341_v62 }
 0xd2b   :  { %v10529_v21 = vsel %vm15480_vm6, %v10528_v48, %v10527_v37  ;;  %v10461_v39 = vsel %vm15481_vm7, %v10460_v18, %v10459_v3  ;;  %v15223_v7 = vsel %vm15482_vm13, %v10430_v9, %v10429_v8  ;;  %v10495_v24 = vsel %vm15484_vm14, %v10494_v58, %v10493_v27  ;;  %v15486_v9 = vld [vmem:[#allocation37_spill] sm:$0xff]  ;;  %v10700_v8 = vld [vmem:[#allocation13 + $0x20] sm:$0xff]  ;;  %v10697_v58 = vld [vmem:[#allocation13 + $0x8] sm:$0xff] }
 0xd2c   :  { %10532 = vrot.lane.b32.xlu1 %v10529_v21, %s12266_s11  ;;  %10464 = vrot.lane.b32.xlu0 %v10461_v39, %s12264_s30  ;;  %v10699_v21 = vld [vmem:[#allocation13 + $0x18] sm:$0xff]  ;;  %v10698_v39 = vld [vmem:[#allocation13 + $0x10] sm:$0xff] }
 0xd2d   :  { %11846 = vmatprep.subr.mxu0 %v10700_v8 }
 0xd2e   :  { %11847 = vmatpush3.msra.mxu0 %v10700_v8 }
 0xd2f   :  { %v12070_v14 = vpop.eup %12069  ;;  %11848 = vmatprep.subr.mxu0 %v10699_v21 }
 0xd30   :  { %10498 = vrot.lane.b32.xlu0 %v10495_v24, %s12265_s3  ;;  %v6952_v1 = vmul.f32 %v12070_v14, %v14906_v40  ;;  %v11017_v40 = vld [vmem:[%s15289_s6 + $0x5] ss:$0 sm:$0xff]  ;;  %11849 = vmatpush3.msra.mxu0 %v10699_v21 }
 0xd31   :  { %11850 = vmatprep.subr.mxu0 %v10698_v39 }
 0xd32   :  { %v6984_v35 = vsel %vm131_vm0, %v6952_v1, %v6963_v5  ;;  %11851 = vmatpush3.msra.mxu0 %v10698_v39 }
 0xd33   :  { %11852 = vmatprep.subr.mxu0 %v10697_v58 }
 0xd34   :  { %6980 = vrot.lane.b32.xlu0 %v6959_v23, %s12266_s11  ;;  %11853 = vmatpush3.msra.mxu0 %v10697_v58 }
 0xd37   :  { %v12072_v17 = vpop.eup %12071 }
 0xd38   :  { %v6953_v26 = vmul.f32 %v12072_v17, %v14904_v31 }
 0xd3a   :  { %v6985_v55 = vsel %vm131_vm0, %v6953_v26, %v6965_v46 }
 0xd77   :  { %v6973_v15 = vpop.permute.xlu0 %6972 }
 0xd78   :  { %v6987_v19 = vsel %vm1741_vm15, %v6985_v55, %v6973_v15 }
 0xd7c   :  { %v6971_v25 = vpop.permute.xlu1 %6970 }
 0xd7d   :  { %v6986_v30 = vsel %vm1741_vm15, %v6984_v35, %v6971_v25  ;;  %v12074_v25 = vld [vmem:[#allocation2 + $0x8] sm:$0xff] }
 0xd80   :  { %v6979_v6 = vpop.permute.xlu1 %6978 }
 0xd81   :  { %v6988_v10 = vsel %vm1744_vm9, %v6986_v30, %v6979_v6  ;;  %v12075_v6 = vld [vmem:[#allocation2] sm:$0xff] }
 0xd82   :  { %v10550_v42 = vmul.f32 %v11015_v38, %v6988_v10 }
 0xd8c   :  { %v10497_v44 = vpop.permute.xlu1 %10496  ;;  %v10463_v45 = vpop.permute.xlu0 %10462 }
 0xd8d   :  { %v10536_v28 = vsel %vm131_vm0, %v15193_v4, %v10463_v45  ;;  %v11019_v4 = vld [vmem:[%s15289_s6 + $0x6] ss:$0 sm:$0xff]  ;;  %s12267_s6 = smov [#allocation14]  }
 0xd8e   :  { %v10538_v54 = vsel %vm1741_vm15, %v10536_v28, %v10497_v44  ;;  %v10572_v49 = vmul.f32 %v11019_v4, %v15485_v13  ;;  %v10573_v31 = vmul.f32 %v11019_v4, %v15486_v9  ;;  %s10801_s13 = sshll.u32 %s12267_s6, 4  ;;  %s10802_s13 = int_to_ptr.vmem [resolvable:$true] %s10801_s13 }
 0xd8f   :  { %s12216_s7 = scalar_lea.vmem %s10802_s13, 256  ;;  %p12221_p8 = scmp.lt.s32.totalorder %s10802_s13, %s10802_s13 }
 0xd90   :  { %v10531_v51 = vpop.permute.xlu1 %10530  ;;  %p12217_p7 = scmp.ne.s32.totalorder %s10802_s13, %s12216_s7  ;;  %p12222_p9 = scmp.lt.s32.totalorder %s12216_s7, %s12216_s7 }
 0xd91   :  { %v10540_v11 = vsel %vm1744_vm9, %v10538_v54, %v10531_v51 }
 0xd92   :  { %v10560_v56 = vmul.f32 %v11017_v40, %v10540_v11  ;;  %p12223_p10 = por %p12222_p9, %p12221_p8 }
 0xd94   :  { %v10562_v53 = vadd.f32 %v10560_v56, %v10550_v42  ;;  %p12224_p11 = pnand %p12223_p10, %p12217_p7 }
 0xd96   :  { %v10574_v63 = vadd.f32 %v10572_v49, %v10562_v53 }
 0xd98   :  { %v10584_v0 = vadd.f32 %v11021_v32, %v10574_v63 }
 0xd9a   :  { %11837 = vmatprep.mubr.msk.f32.mxu1 %vm241_vm1, %v10584_v0 }
 0xd9e   :  { %v10465_v52 = vpop.permute.xlu0 %10464  ;;  %v10533_v60 = vpop.permute.xlu1 %10532 }
 0xd9f   :  { %v10537_v41 = vsel %vm131_vm0, %v15223_v7, %v10465_v52  ;;  %v10696_v7 = vld [vmem:[#allocation13] sm:$0xff] }
 0xda0   :  { %11854 = vmatprep.subr.mxu0 %v10696_v7 }
 0xda1   :  { %11855 = vmatpush3.msra.mxu0 %v10696_v7 }
 0xda2   :  { %v10499_v34 = vpop.permute.xlu0 %10498 }
 0xda3   :  { %v10539_v16 = vsel %vm1741_vm15, %v10537_v41, %v10499_v34 }
 0xda4   :  { %v10541_v33 = vsel %vm1744_vm9, %v10539_v16, %v10533_v60 }
 0xda5   :  { %v10561_v48 = vmul.f32 %v11017_v40, %v10541_v33 }
 0xda6   :  { %v6981_v20 = vpop.permute.xlu0 %6980 }
 0xda7   :  { %v6989_v61 = vsel %vm1744_vm9, %v6987_v19, %v6981_v20 }
 0xda8   :  { %v10551_v18 = vmul.f32 %v11015_v38, %v6989_v61 }
 0xdaa   :  { %v10563_v37 = vadd.f32 %v10561_v48, %v10551_v18 }
 0xdac   :  { %v10575_v3 = vadd.f32 %v10573_v31, %v10563_v37 }
 0xdae   :  { %v10585_v2 = vadd.f32 %v11021_v32, %v10575_v3 }
 0xdb0   :  { %11838 = vmatmul.mubr.msk.f32.vlgmr.msra.gmra.mxu1 %vm241_vm1, %v10585_v2 }
 0xe70   :  { %v11839_v27 = vpop.f32.mrf.mxu1 }
 0xe71   :  { %v10673_v29 = vadd.f32 %v11839_v27, %v10585_v2 }
 0xe72   :  { %v10667_v57 = vpop.f32.mrf.mxu1 }
 0xe73   :  { %v10668_v24 = vadd.f32 %v10667_v57, %v10584_v0  ;;  %v10685_v36 = vmul.f32 %v11025_v43, %v10673_v29 }
 0xe75   :  { %v10684_v47 = vmul.f32 %v11025_v43, %v10668_v24  ;;  %v10695_v12 = vadd.f32 %v11027_v22, %v10685_v36 }
 0xe77   :  { %v10694_v23 = vadd.f32 %v11027_v22, %v10684_v47 }
 0xe79   :  { %11856 = vmatprep.mubr.msk.f32.mxu0 %vm241_vm1, %v10694_v23 }
 0xe7a   :  { %11857 = vmatmul.mubr.msk.f32.vlgmr.msra.gmra.mxu0 %vm241_vm1, %v10695_v12 }
 0xf3a   :  { %v11858_v50 = vpop.f32.mrf.mxu0 }
 0xf3b   :  { %v10789_v5 = vadd.f32 %v11858_v50, %v11028_v59 }
 0xf3c   :  { %v10783_v46 = vpop.f32.mrf.mxu0 }
 0xf3d   :  { %v10793_v62 = vadd.f32 %v12074_v25, %v10789_v5  ;;  %v10784_v14 = vadd.f32 %v11028_v59, %v10783_v46 }
 0xf3f   :  { %10795 = vst.msk [vmem:[#allocation14 + $0x8] sm:$0xff] %vm131_vm0, %v10793_v62  ;;  %v10792_v1 = vadd.f32 %v12075_v6, %v10784_v14 }
 0xf41   :  { %10794 = vst.msk [vmem:[#allocation14] sm:$0xff] %vm131_vm0, %v10792_v1 }
 0xf42   :  { %12227 = shalt.err (!%p12224_p11)
}
 0xf43   :  { %10807 = dma.vmem_to_hbm [thread:$0]  %s10802_s13, 256, %s15293_s10, [#allocation4], %s12248_s18, %s12248_s18, %s12249_s19  }
 0xf44   :  { %12244 = dma.done.wait [#allocation4], 256  }
 0xf45   :  { %12245 = vsyncadd [#allocation4], 4294967040 }
 0xf46   :  { %10811 = vsyncpa [#allocation3], 1 }
 0xf47   :  { %10812 = vsyncpa [#allocation6], 1 }
 0xf48   :  { %10813 = vsyncpa [#allocation9], 1 }
 0xf49   :  { %10814 = vsyncpa [#allocation12], 1 }
 0xf4a   :  { %10815 = vsyncpa [#allocation4], 1 }

</bundles_post_ra>
